<compile_context>
chip_gen: v7x
topology: tpu7x:2x2x1
jax: 0.10.0
libtpu: 0.0.40
codegen_flags: <defaults>
</compile_context>

<pallas_src>
import math

import numpy as np
import jax
import jax.numpy as jnp
from jax.experimental import pallas as pl
from jax.experimental.pallas import tpu as pltpu


# ---------------------------------------------------------------------------
# In-kernel helpers (all f32 elementwise math)
# ---------------------------------------------------------------------------
def _ln(x):
    mu = jnp.mean(x, axis=-1, keepdims=True)
    var = jnp.mean((x - mu) ** 2, axis=-1, keepdims=True)
    return (x - mu) * jax.lax.rsqrt(var + 1e-6)


# ---------------------------------------------------------------------------
# Pallas kernel: full encoder-decoder for one tile of TB = tb locations
#   src_ref: (tb*L, C)   tgt_ref: (tb, C)   out_ref: (tb, C)
#   emask_ref: (tb*L, tb*L) 0/1   dmask_ref: (tb, tb*L) 0/1
# ---------------------------------------------------------------------------
def period_kernel(src_ref, tgt_ref, emask_ref, dmask_ref,
                  w_src, b_src, w_tgt, b_tgt,
                  e_wqkv, e_w1, e_b1, e_w2, e_b2,
                  d_svo, d_cwq, d_ckv,
                  d_w1, d_b1, d_w2, d_b2,
                  w_gen, b_gen,
                  out_ref):
    f32 = jnp.float32
    bf16 = jnp.bfloat16

    D = w_src.shape[-1]
    nl = e_wqkv.shape[0]

    def mm(ab, wb):
        # MXU matmul: bf16 operands, f32 accumulation.
        return jnp.dot(ab, wb, preferred_element_type=f32)

    def gram(qb, kb):
        # (M, D) x (N, D) -> (M, N), contracting the last dim of both.
        return jax.lax.dot_general(
            qb, kb,
            dimension_numbers=(((1,), (1,)), ((), ())),
            preferred_element_type=f32)

    def softmax_masked(s, maskf):
        # Multiplicative masking after exp: off-block weights are exactly 0.
        m = jnp.max(s, axis=-1, keepdims=True)
        e = jnp.exp(s - m) * maskf
        # EUP reciprocal instead of a VALU divide.
        return e * pl.reciprocal(jnp.sum(e, axis=-1, keepdims=True),
                                 approx=True)

    emaskf = emask_ref[...]                     # (TBL, TBL) f32 0/1
    dmaskf = dmask_ref[...]                     # (TB, TBL)  f32 0/1

    srcb = src_ref[...].astype(bf16)            # (TBL, C)
    tgtb = tgt_ref[...].astype(bf16)            # (TB, C)

    # ---- linear "embeddings" (C -> D), batch*seq folded into M ------------
    x = mm(srcb, w_src[...]) + b_src[...]       # (TBL, D) f32
    y = mm(tgtb, w_tgt[...]) + b_tgt[...]       # (TB, D)  f32

    # ---- encoder stack -----------------------------------------------------
    for l in range(nl):
        xb = x.astype(bf16)
        qkv = mm(xb, e_wqkv[l])                 # (TBL, 3D); Wq pre-scaled,
        qb = qkv[:, :D].astype(bf16)            # "V" column is Wv@Wo
        kb = qkv[:, D:2 * D].astype(bf16)
        vb = qkv[:, 2 * D:].astype(bf16)
        a = softmax_masked(gram(qb, kb), emaskf)      # (TBL, TBL)
        o = mm(a.astype(bf16), vb)                    # (TBL, D)
        x = _ln(x + o)
        xb = x.astype(bf16)
        h = jnp.maximum(mm(xb, e_w1[l]) + e_b1[l], 0.0)
        x = _ln(x + mm(h.astype(bf16), e_w2[l]) + e_b2[l])

    memb = x.astype(bf16)                       # encoder memory, cast once

    # ---- decoder stack (target length == 1 per location) -------------------
    for l in range(nl):
        # Length-1 self-attention collapses exactly to a linear map (Wv@Wo).
        yb = y.astype(bf16)
        y = _ln(y + mm(yb, d_svo[l]))

        # Cross-attention to encoder memory (query length 1 per location):
        # one dense (TB, TB*L) Gram restricted to each location's L keys.
        yb = y.astype(bf16)
        q = mm(yb, d_cwq[l])                    # (TB, D); scale pre-folded
        kv = mm(memb, d_ckv[l])                 # (TBL, 2D); fused K | Wv@Wo
        kb = kv[:, :D].astype(bf16)
        vb = kv[:, D:].astype(bf16)
        a = softmax_masked(gram(q.astype(bf16), kb), dmaskf)   # (TB, TBL)
        o = mm(a.astype(bf16), vb)              # (TB, D)
        y = _ln(y + o)

        yb = y.astype(bf16)
        h = jnp.maximum(mm(yb, d_w1[l]) + d_b1[l], 0.0)
        y = _ln(y + mm(h.astype(bf16), d_w2[l]) + d_b2[l])

    # ---- generator (D -> C) -------------------------------------------------
    out = mm(y.astype(bf16), w_gen[...]) + b_gen[...]          # (TB, C)
    out_ref[...] = out.astype(out_ref.dtype)


# ---------------------------------------------------------------------------
# Parameter fusion / folding (done once, outside the kernel)
# ---------------------------------------------------------------------------
def prepare_params(params):
    D = params["w_src"].shape[-1]
    scale = 1.0 / math.sqrt(D)

    def matstack(a, b):                 # per-layer A @ B for (nl, D, D) stacks
        return jnp.einsum("lij,ljk->lik", a, b)

    # Encoder: [ Wq/sqrt(D) | Wk | Wv@Wo ]  -> one (D, 3D) matmul per layer.
    e_wqkv = jnp.concatenate(
        [params["e_wq"] * scale, params["e_wk"],
         matstack(params["e_wv"], params["e_wo"])], axis=-1)
    # Decoder self-attn (len-1): collapses to Wv@Wo.
    d_svo = matstack(params["d_swv"], params["d_swo"])
    # Decoder cross-attn: [ Wk | Wv@Wo ] -> one (D, 2D) matmul per layer.
    d_ckv = jnp.concatenate(
        [params["d_cwk"], matstack(params["d_cwv"], params["d_cwo"])], axis=-1)
    d_cwq = params["d_cwq"] * scale

    bf16, f32 = jnp.bfloat16, jnp.float32
    # Weight matrices -> bf16 (MXU operands); biases stay f32 (VPU adds).
    return [
        params["w_src"].astype(bf16), params["b_src"].astype(f32),
        params["w_tgt"].astype(bf16), params["b_tgt"].astype(f32),
        e_wqkv.astype(bf16),
        params["e_w1"].astype(bf16), params["e_b1"].astype(f32),
        params["e_w2"].astype(bf16), params["e_b2"].astype(f32),
        d_svo.astype(bf16),
        d_cwq.astype(bf16), d_ckv.astype(bf16),
        params["d_w1"].astype(bf16), params["d_b1"].astype(f32),
        params["d_w2"].astype(bf16), params["d_b2"].astype(f32),
        params["w_gen"].astype(bf16), params["b_gen"].astype(f32),
    ]


def _const_index_map(ndim):
    return lambda i: (0,) * ndim


def _make_masks(tb, L):
    g = np.arange(tb * L) // L
    enc = (g[:, None] == g[None, :]).astype(np.float32)           # (tb*L, tb*L)
    dec = (np.arange(tb)[:, None] == g[None, :]).astype(np.float32)  # (tb, tb*L)
    return jnp.asarray(enc), jnp.asarray(dec)


def _default_tb(B, L):
    # Single grid step (lane-dense Gram) on single-TensorCore v5e/v6e;
    # 2-way "parallel" split only on dual-TC v7x.
    try:
        kind = jax.devices()[0].device_kind.lower()
    except Exception:
        kind = ""
    if "v7" in kind and B % 2 == 0:
        half = B // 2
        if half % 8 == 0 and (half * L) % 8 == 0:
            return half
    return B


# ---------------------------------------------------------------------------
# pallas_call wrapper
# ---------------------------------------------------------------------------
def period_pallas(src_flat, tgt_flat, flat_params, L, tb=None):
    BL, C = src_flat.shape
    B = tgt_flat.shape[0]
    assert BL == B * L

    if tb is None:
        tb = _default_tb(B, L)
    assert B % tb == 0
    num_tiles = B // tb
    tbl = tb * L

    enc_maskf, dec_maskf = _make_masks(tb, L)

    # Shapes for the cost hint.
    D = flat_params[0].shape[-1]          # w_src: (C, D)
    nl, _, F = flat_params[5].shape       # e_w1: (nl, D, F)
    flops = int(
        2 * B * (L + 1) * C * D                               # embeddings
        + nl * (2 * B * L * D * 3 * D                         # fused enc QKV
                + 4 * num_tiles * tbl * tbl * D               # enc Gram + ctx
                + 4 * B * L * D * F)                          # enc FFN
        + nl * (4 * B * D * D                                 # dec self + cross Q
                + 4 * B * L * D * D                           # fused cross KV
                + 4 * num_tiles * tb * tbl * D                # dec Gram + ctx
                + 4 * B * D * F)                              # dec FFN
        + 2 * B * D * C)                                      # generator
    transcendentals = int(nl * num_tiles * (tbl * tbl + tb * tbl))
    bytes_accessed = int(
        4 * (src_flat.size + tgt_flat.size + B * C
             + enc_maskf.size + dec_maskf.size)
        + sum(int(p.size) * p.dtype.itemsize for p in flat_params))

    in_specs = [
        pl.BlockSpec((tbl, C), lambda i: (i, 0)),        # src rows of this tile
        pl.BlockSpec((tb, C), lambda i: (i, 0)),         # tgt rows of this tile
        pl.BlockSpec(enc_maskf.shape, lambda i: (0, 0)),
        pl.BlockSpec(dec_maskf.shape, lambda i: (0, 0)),
    ] + [pl.BlockSpec(p.shape, _const_index_map(p.ndim)) for p in flat_params]

    return pl.pallas_call(
        period_kernel,
        out_shape=jax.ShapeDtypeStruct((B, C), jnp.float32),
        grid_spec=pltpu.PrefetchScalarGridSpec(
            num_scalar_prefetch=0,
            grid=(num_tiles,),
            in_specs=in_specs,
            out_specs=pl.BlockSpec((tb, C), lambda i: (i, 0)),
        ),
        compiler_params=pltpu.CompilerParams(
            dimension_semantics=("parallel",)),
        cost_estimate=pl.CostEstimate(
            flops=flops, transcendentals=transcendentals,
            bytes_accessed=bytes_accessed),
    )(src_flat, tgt_flat, enc_maskf, dec_maskf, *flat_params)


# ---------------------------------------------------------------------------
# Forward pass matching period.forward semantics
# ---------------------------------------------------------------------------
def period_forward(x_c, x_p, flow, params, tb=None):
    """x_c: (bs, closeness, 2, N)   x_p: (bs, len_period, closeness, 2, N)"""
    bs, len_c, _, N = x_c.shape
    len_p = x_p.shape[1]

    # Flow-select BEFORE transposing (half the data relaid out pre-kernel).
    # tgt = x_c.permute(0,2,3,1)[:, flow].unsqueeze(-2)   -> (bs, N, 1, C)
    tgt = jnp.transpose(x_c[:, :, flow, :], (0, 2, 1))            # (bs, N, C)
    # tx_p = x_p.permute(0,3,4,1,2).float()[:, flow]      -> (bs, N, L, C)
    src = jnp.transpose(x_p[:, :, :, flow, :], (0, 3, 1, 2))      # (bs, N, L, C)

    src_flat = src.reshape(bs * N * len_p, len_c).astype(jnp.float32)
    tgt_flat = tgt.reshape(bs * N, len_c).astype(jnp.float32)

    out = period_pallas(src_flat, tgt_flat, prepare_params(params),
                        len_p, tb=tb)                             # (bs*N, C)
    # squeeze(dim=-2) -> (bs, N, closeness)
    return out.reshape(bs, N, len_c)


# ---------------------------------------------------------------------------
# Deterministic parameter init (synthetic weights, no checkpoint)
# ---------------------------------------------------------------------------
def init_params(key, C, D, F, nl):
    keys = jax.random.split(key, 17)
    s_c, s_d, s_f = 1.0 / math.sqrt(C), 1.0 / math.sqrt(D), 1.0 / math.sqrt(F)
    w = lambda k, shape, s: jax.random.normal(k, shape, jnp.float32) * s
    z = lambda shape: jnp.zeros(shape, jnp.float32)
    return {
        "w_src": w(keys[0], (C, D), s_c), "b_src": z((1, D)),
        "w_tgt": w(keys[1], (C, D), s_c), "b_tgt": z((1, D)),
        "e_wq": w(keys[2], (nl, D, D), s_d), "e_wk": w(keys[3], (nl, D, D), s_d),
        "e_wv": w(keys[4], (nl, D, D), s_d), "e_wo": w(keys[5], (nl, D, D), s_d),
        "e_w1": w(keys[6], (nl, D, F), s_d), "e_b1": z((nl, 1, F)),
        "e_w2": w(keys[7], (nl, F, D), s_f), "e_b2": z((nl, 1, D)),
        "d_swv": w(keys[8], (nl, D, D), s_d), "d_swo": w(keys[9], (nl, D, D), s_d),
        "d_cwq": w(keys[10], (nl, D, D), s_d), "d_cwk": w(keys[11], (nl, D, D), s_d),
        "d_cwv": w(keys[12], (nl, D, D), s_d), "d_cwo": w(keys[13], (nl, D, D), s_d),
        "d_w1": w(keys[14], (nl, D, F), s_d), "d_b1": z((nl, 1, F)),
        "d_w2": w(keys[15], (nl, F, D), s_f), "d_b2": z((nl, 1, D)),
        "w_gen": w(keys[16], (D, C), s_d), "b_gen": z((1, C)),
    }


# ---------------------------------------------------------------------------
if __name__ == "__main__":
    bs, closeness, n_nodes, len_period = 2, 8, 16, 4
    model_d, d_ff, n_layers = 32, 64, 2
    flow = 0

    key = jax.random.PRNGKey(0)
    k1, k2, k3 = jax.random.split(key, 3)
    x_c = jax.random.normal(k1, (bs, closeness, 2, n_nodes), jnp.float32)
    x_p = jax.random.normal(k2, (bs, len_period, closeness, 2, n_nodes),
                            jnp.float32)
    params = init_params(k3, closeness, model_d, d_ff, n_layers)

    fwd = jax.jit(period_forward, static_argnums=(2,))
    out = fwd(x_c, x_p, flow, params)
    jax.block_until_ready(out)

    assert out.shape == (bs, n_nodes, closeness), out.shape
    assert out.dtype == jnp.float32
    assert bool(jnp.all(jnp.isfinite(out)))
    print("KERNEL_OK")
</pallas_src>

<mosaic_0001>
module attributes {stable_mosaic.version = 11 : i64} {
  func.func @period_kernel(%arg0: i32, %arg1: memref<128x8xf32, #tpu.memory_space<vmem>>, %arg2: memref<32x8xf32, #tpu.memory_space<vmem>>, %arg3: memref<128x128xf32, #tpu.memory_space<vmem>>, %arg4: memref<32x128xf32, #tpu.memory_space<vmem>>, %arg5: memref<8x32xbf16, #tpu.memory_space<vmem>>, %arg6: memref<1x32xf32, #tpu.memory_space<vmem>>, %arg7: memref<8x32xbf16, #tpu.memory_space<vmem>>, %arg8: memref<1x32xf32, #tpu.memory_space<vmem>>, %arg9: memref<2x32x96xbf16, #tpu.memory_space<vmem>>, %arg10: memref<2x32x64xbf16, #tpu.memory_space<vmem>>, %arg11: memref<2x1x64xf32, #tpu.memory_space<vmem>>, %arg12: memref<2x64x32xbf16, #tpu.memory_space<vmem>>, %arg13: memref<2x1x32xf32, #tpu.memory_space<vmem>>, %arg14: memref<2x32x32xbf16, #tpu.memory_space<vmem>>, %arg15: memref<2x32x32xbf16, #tpu.memory_space<vmem>>, %arg16: memref<2x32x64xbf16, #tpu.memory_space<vmem>>, %arg17: memref<2x32x64xbf16, #tpu.memory_space<vmem>>, %arg18: memref<2x1x64xf32, #tpu.memory_space<vmem>>, %arg19: memref<2x64x32xbf16, #tpu.memory_space<vmem>>, %arg20: memref<2x1x32xf32, #tpu.memory_space<vmem>>, %arg21: memref<32x8xbf16, #tpu.memory_space<vmem>>, %arg22: memref<1x8xf32, #tpu.memory_space<vmem>>, %arg23: memref<32x8xf32, #tpu.memory_space<vmem>>) attributes {dimension_semantics = [#tpu.dimension_semantics<parallel>], iteration_bounds = array<i64: 1>, scalar_prefetch = 0 : i64, scratch_operands = 0 : i64, tpu.core_type = #tpu.core_type<tc>, window_params = [{transform_indices = @transform_0, window_bounds = array<i64: 128, 8>}, {transform_indices = @transform_1, window_bounds = array<i64: 32, 8>}, {pipeline_mode = #tpu.pipeline_mode<synchronous>, transform_indices = @transform_2, window_bounds = array<i64: 128, 128>}, {pipeline_mode = #tpu.pipeline_mode<synchronous>, transform_indices = @transform_3, window_bounds = array<i64: 32, 128>}, {pipeline_mode = #tpu.pipeline_mode<synchronous>, transform_indices = @transform_4, window_bounds = array<i64: 8, 32>}, {pipeline_mode = #tpu.pipeline_mode<synchronous>, transform_indices = @transform_5, window_bounds = array<i64: 1, 32>}, {pipeline_mode = #tpu.pipeline_mode<synchronous>, transform_indices = @transform_6, window_bounds = array<i64: 8, 32>}, {pipeline_mode = #tpu.pipeline_mode<synchronous>, transform_indices = @transform_7, window_bounds = array<i64: 1, 32>}, {pipeline_mode = #tpu.pipeline_mode<synchronous>, transform_indices = @transform_8, window_bounds = array<i64: 2, 32, 96>}, {pipeline_mode = #tpu.pipeline_mode<synchronous>, transform_indices = @transform_9, window_bounds = array<i64: 2, 32, 64>}, {pipeline_mode = #tpu.pipeline_mode<synchronous>, transform_indices = @transform_10, window_bounds = array<i64: 2, 1, 64>}, {pipeline_mode = #tpu.pipeline_mode<synchronous>, transform_indices = @transform_11, window_bounds = array<i64: 2, 64, 32>}, {pipeline_mode = #tpu.pipeline_mode<synchronous>, transform_indices = @transform_12, window_bounds = array<i64: 2, 1, 32>}, {pipeline_mode = #tpu.pipeline_mode<synchronous>, transform_indices = @transform_13, window_bounds = array<i64: 2, 32, 32>}, {pipeline_mode = #tpu.pipeline_mode<synchronous>, transform_indices = @transform_14, window_bounds = array<i64: 2, 32, 32>}, {pipeline_mode = #tpu.pipeline_mode<synchronous>, transform_indices = @transform_15, window_bounds = array<i64: 2, 32, 64>}, {pipeline_mode = #tpu.pipeline_mode<synchronous>, transform_indices = @transform_16, window_bounds = array<i64: 2, 32, 64>}, {pipeline_mode = #tpu.pipeline_mode<synchronous>, transform_indices = @transform_17, window_bounds = array<i64: 2, 1, 64>}, {pipeline_mode = #tpu.pipeline_mode<synchronous>, transform_indices = @transform_18, window_bounds = array<i64: 2, 64, 32>}, {pipeline_mode = #tpu.pipeline_mode<synchronous>, transform_indices = @transform_19, window_bounds = array<i64: 2, 1, 32>}, {pipeline_mode = #tpu.pipeline_mode<synchronous>, transform_indices = @transform_20, window_bounds = array<i64: 32, 8>}, {pipeline_mode = #tpu.pipeline_mode<synchronous>, transform_indices = @transform_21, window_bounds = array<i64: 1, 8>}, {transform_indices = @transform_22, window_bounds = array<i64: 32, 8>}]} {
    %c0 = arith.constant 0 : index
    %c0_0 = arith.constant 0 : index
    %0 = vector.load %arg3[%c0, %c0_0] : memref<128x128xf32, #tpu.memory_space<vmem>>, vector<128x128xf32>
    %c0_1 = arith.constant 0 : index
    %c0_2 = arith.constant 0 : index
    %1 = vector.load %arg4[%c0_1, %c0_2] : memref<32x128xf32, #tpu.memory_space<vmem>>, vector<32x128xf32>
    %c0_3 = arith.constant 0 : index
    %c0_4 = arith.constant 0 : index
    %2 = vector.load %arg1[%c0_3, %c0_4] : memref<128x8xf32, #tpu.memory_space<vmem>>, vector<128x8xf32>
    %3 = arith.truncf %2 : vector<128x8xf32> to vector<128x8xbf16>
    %c0_5 = arith.constant 0 : index
    %c0_6 = arith.constant 0 : index
    %4 = vector.load %arg2[%c0_5, %c0_6] : memref<32x8xf32, #tpu.memory_space<vmem>>, vector<32x8xf32>
    %5 = arith.truncf %4 : vector<32x8xf32> to vector<32x8xbf16>
    %c0_7 = arith.constant 0 : index
    %c0_8 = arith.constant 0 : index
    %6 = vector.load %arg5[%c0_7, %c0_8] : memref<8x32xbf16, #tpu.memory_space<vmem>>, vector<8x32xbf16>
    %cst = arith.constant dense<0.000000e+00> : vector<128x32xf32>
    %7 = tpu.matmul %3, %6, %cst {dimension_numbers = #tpu.dot_dimension_numbers<[1], [0], [0], [1], [0, 0, 1, 1], [], []>} : vector<128x8xbf16>, vector<8x32xbf16>, vector<128x32xf32> -> vector<128x32xf32>
    %c0_9 = arith.constant 0 : index
    %c0_10 = arith.constant 0 : index
    %8 = vector.load %arg6[%c0_9, %c0_10] : memref<1x32xf32, #tpu.memory_space<vmem>>, vector<1x32xf32>
    %9 = vector.broadcast %8 : vector<1x32xf32> to vector<128x32xf32>
    %10 = arith.addf %7, %9 : vector<128x32xf32>
    %c0_11 = arith.constant 0 : index
    %c0_12 = arith.constant 0 : index
    %11 = vector.load %arg7[%c0_11, %c0_12] : memref<8x32xbf16, #tpu.memory_space<vmem>>, vector<8x32xbf16>
    %cst_13 = arith.constant dense<0.000000e+00> : vector<32x32xf32>
    %12 = tpu.matmul %5, %11, %cst_13 {dimension_numbers = #tpu.dot_dimension_numbers<[1], [0], [0], [1], [0, 0, 1, 1], [], []>} : vector<32x8xbf16>, vector<8x32xbf16>, vector<32x32xf32> -> vector<32x32xf32>
    %c0_14 = arith.constant 0 : index
    %c0_15 = arith.constant 0 : index
    %13 = vector.load %arg8[%c0_14, %c0_15] : memref<1x32xf32, #tpu.memory_space<vmem>>, vector<1x32xf32>
    %14 = vector.broadcast %13 : vector<1x32xf32> to vector<32x32xf32>
    %15 = arith.addf %12, %14 : vector<32x32xf32>
    %16 = arith.truncf %10 : vector<128x32xf32> to vector<128x32xbf16>
    %c0_16 = arith.constant 0 : index
    %c0_17 = arith.constant 0 : index
    %c0_18 = arith.constant 0 : index
    %17 = vector.load %arg9[%c0_16, %c0_17, %c0_18] : memref<2x32x96xbf16, #tpu.memory_space<vmem>>, vector<1x32x96xbf16>
    %18 = vector.shape_cast %17 : vector<1x32x96xbf16> to vector<32x96xbf16>
    %cst_19 = arith.constant dense<0.000000e+00> : vector<128x96xf32>
    %19 = tpu.matmul %16, %18, %cst_19 {dimension_numbers = #tpu.dot_dimension_numbers<[1], [0], [0], [1], [0, 0, 1, 1], [], []>} : vector<128x32xbf16>, vector<32x96xbf16>, vector<128x96xf32> -> vector<128x96xf32>
    %20 = vector.extract_strided_slice %19 {offsets = [0, 0], sizes = [128, 32], strides = [1, 1]} : vector<128x96xf32> to vector<128x32xf32>
    %21 = arith.truncf %20 : vector<128x32xf32> to vector<128x32xbf16>
    %22 = vector.extract_strided_slice %19 {offsets = [0, 32], sizes = [128, 32], strides = [1, 1]} : vector<128x96xf32> to vector<128x32xf32>
    %23 = arith.truncf %22 : vector<128x32xf32> to vector<128x32xbf16>
    %24 = vector.extract_strided_slice %19 {offsets = [0, 64], sizes = [128, 32], strides = [1, 1]} : vector<128x96xf32> to vector<128x32xf32>
    %25 = arith.truncf %24 : vector<128x32xf32> to vector<128x32xbf16>
    %cst_20 = arith.constant dense<0.000000e+00> : vector<128x128xf32>
    %26 = tpu.matmul %21, %23, %cst_20 {dimension_numbers = #tpu.dot_dimension_numbers<[1], [1], [0], [0], [0, 0, 1, 0], [], []>} : vector<128x32xbf16>, vector<128x32xbf16>, vector<128x128xf32> -> vector<128x128xf32>
    %cst_21 = arith.constant dense<0xFF800000> : vector<128xf32>
    %27 = vector.multi_reduction <maximumf>, %26, %cst_21 [1] : vector<128x128xf32> to vector<128xf32>
    %28 = vector.shape_cast %27 : vector<128xf32> to vector<128x1xf32>
    %29 = vector.broadcast %28 : vector<128x1xf32> to vector<128x128xf32>
    %30 = arith.subf %26, %29 : vector<128x128xf32>
    %31 = math.exp %30 : vector<128x128xf32>
    %32 = arith.mulf %31, %0 : vector<128x128xf32>
    %cst_22 = arith.constant dense<0.000000e+00> : vector<128xf32>
    %33 = vector.multi_reduction <add>, %32, %cst_22 [1] : vector<128x128xf32> to vector<128xf32>
    %34 = vector.shape_cast %33 : vector<128xf32> to vector<128x1xf32>
    %35 = tpu.reciprocal %34 {approx = true} : vector<128x1xf32> -> vector<128x1xf32>
    %36 = vector.broadcast %35 : vector<128x1xf32> to vector<128x128xf32>
    %37 = arith.mulf %32, %36 : vector<128x128xf32>
    %38 = arith.truncf %37 : vector<128x128xf32> to vector<128x128xbf16>
    %cst_23 = arith.constant dense<0.000000e+00> : vector<128x32xf32>
    %39 = tpu.matmul %38, %25, %cst_23 {dimension_numbers = #tpu.dot_dimension_numbers<[1], [0], [0], [1], [0, 0, 1, 1], [], []>} : vector<128x128xbf16>, vector<128x32xbf16>, vector<128x32xf32> -> vector<128x32xf32>
    %40 = arith.addf %10, %39 : vector<128x32xf32>
    %cst_24 = arith.constant dense<0.000000e+00> : vector<128xf32>
    %41 = vector.multi_reduction <add>, %40, %cst_24 [1] : vector<128x32xf32> to vector<128xf32>
    %42 = vector.shape_cast %41 : vector<128xf32> to vector<128x1xf32>
    %cst_25 = arith.constant 3.200000e+01 : f32
    %43 = vector.broadcast %cst_25 : f32 to vector<128x1xf32>
    %44 = arith.divf %42, %43 : vector<128x1xf32>
    %45 = vector.broadcast %44 : vector<128x1xf32> to vector<128x32xf32>
    %46 = arith.subf %40, %45 : vector<128x32xf32>
    %47 = arith.mulf %46, %46 : vector<128x32xf32>
    %cst_26 = arith.constant dense<0.000000e+00> : vector<128xf32>
    %48 = vector.multi_reduction <add>, %47, %cst_26 [1] : vector<128x32xf32> to vector<128xf32>
    %49 = vector.shape_cast %48 : vector<128xf32> to vector<128x1xf32>
    %cst_27 = arith.constant 3.200000e+01 : f32
    %50 = vector.broadcast %cst_27 : f32 to vector<128x1xf32>
    %51 = arith.divf %49, %50 : vector<128x1xf32>
    %52 = vector.broadcast %44 : vector<128x1xf32> to vector<128x32xf32>
    %53 = arith.subf %40, %52 : vector<128x32xf32>
    %cst_28 = arith.constant 9.99999997E-7 : f32
    %54 = vector.broadcast %cst_28 : f32 to vector<128x1xf32>
    %55 = arith.addf %51, %54 : vector<128x1xf32>
    %56 = math.rsqrt %55 : vector<128x1xf32>
    %57 = vector.broadcast %56 : vector<128x1xf32> to vector<128x32xf32>
    %58 = arith.mulf %53, %57 : vector<128x32xf32>
    %59 = arith.truncf %58 : vector<128x32xf32> to vector<128x32xbf16>
    %c0_29 = arith.constant 0 : index
    %c0_30 = arith.constant 0 : index
    %c0_31 = arith.constant 0 : index
    %60 = vector.load %arg10[%c0_29, %c0_30, %c0_31] : memref<2x32x64xbf16, #tpu.memory_space<vmem>>, vector<1x32x64xbf16>
    %61 = vector.shape_cast %60 : vector<1x32x64xbf16> to vector<32x64xbf16>
    %cst_32 = arith.constant dense<0.000000e+00> : vector<128x64xf32>
    %62 = tpu.matmul %59, %61, %cst_32 {dimension_numbers = #tpu.dot_dimension_numbers<[1], [0], [0], [1], [0, 0, 1, 1], [], []>} : vector<128x32xbf16>, vector<32x64xbf16>, vector<128x64xf32> -> vector<128x64xf32>
    %c0_33 = arith.constant 0 : index
    %c0_34 = arith.constant 0 : index
    %c0_35 = arith.constant 0 : index
    %63 = vector.load %arg11[%c0_33, %c0_34, %c0_35] : memref<2x1x64xf32, #tpu.memory_space<vmem>>, vector<1x1x64xf32>
    %64 = vector.shape_cast %63 : vector<1x1x64xf32> to vector<1x64xf32>
    %65 = vector.broadcast %64 : vector<1x64xf32> to vector<128x64xf32>
    %66 = arith.addf %62, %65 : vector<128x64xf32>
    %cst_36 = arith.constant 0.000000e+00 : f32
    %67 = vector.broadcast %cst_36 : f32 to vector<128x64xf32>
    %68 = arith.maximumf %66, %67 : vector<128x64xf32>
    %69 = arith.truncf %68 : vector<128x64xf32> to vector<128x64xbf16>
    %c0_37 = arith.constant 0 : index
    %c0_38 = arith.constant 0 : index
    %c0_39 = arith.constant 0 : index
    %70 = vector.load %arg12[%c0_37, %c0_38, %c0_39] : memref<2x64x32xbf16, #tpu.memory_space<vmem>>, vector<1x64x32xbf16>
    %71 = vector.shape_cast %70 : vector<1x64x32xbf16> to vector<64x32xbf16>
    %cst_40 = arith.constant dense<0.000000e+00> : vector<128x32xf32>
    %72 = tpu.matmul %69, %71, %cst_40 {dimension_numbers = #tpu.dot_dimension_numbers<[1], [0], [0], [1], [0, 0, 1, 1], [], []>} : vector<128x64xbf16>, vector<64x32xbf16>, vector<128x32xf32> -> vector<128x32xf32>
    %73 = arith.addf %58, %72 : vector<128x32xf32>
    %c0_41 = arith.constant 0 : index
    %c0_42 = arith.constant 0 : index
    %c0_43 = arith.constant 0 : index
    %74 = vector.load %arg13[%c0_41, %c0_42, %c0_43] : memref<2x1x32xf32, #tpu.memory_space<vmem>>, vector<1x1x32xf32>
    %75 = vector.shape_cast %74 : vector<1x1x32xf32> to vector<1x32xf32>
    %76 = vector.broadcast %75 : vector<1x32xf32> to vector<128x32xf32>
    %77 = arith.addf %73, %76 : vector<128x32xf32>
    %cst_44 = arith.constant dense<0.000000e+00> : vector<128xf32>
    %78 = vector.multi_reduction <add>, %77, %cst_44 [1] : vector<128x32xf32> to vector<128xf32>
    %79 = vector.shape_cast %78 : vector<128xf32> to vector<128x1xf32>
    %cst_45 = arith.constant 3.200000e+01 : f32
    %80 = vector.broadcast %cst_45 : f32 to vector<128x1xf32>
    %81 = arith.divf %79, %80 : vector<128x1xf32>
    %82 = vector.broadcast %81 : vector<128x1xf32> to vector<128x32xf32>
    %83 = arith.subf %77, %82 : vector<128x32xf32>
    %84 = arith.mulf %83, %83 : vector<128x32xf32>
    %cst_46 = arith.constant dense<0.000000e+00> : vector<128xf32>
    %85 = vector.multi_reduction <add>, %84, %cst_46 [1] : vector<128x32xf32> to vector<128xf32>
    %86 = vector.shape_cast %85 : vector<128xf32> to vector<128x1xf32>
    %cst_47 = arith.constant 3.200000e+01 : f32
    %87 = vector.broadcast %cst_47 : f32 to vector<128x1xf32>
    %88 = arith.divf %86, %87 : vector<128x1xf32>
    %89 = vector.broadcast %81 : vector<128x1xf32> to vector<128x32xf32>
    %90 = arith.subf %77, %89 : vector<128x32xf32>
    %cst_48 = arith.constant 9.99999997E-7 : f32
    %91 = vector.broadcast %cst_48 : f32 to vector<128x1xf32>
    %92 = arith.addf %88, %91 : vector<128x1xf32>
    %93 = math.rsqrt %92 : vector<128x1xf32>
    %94 = vector.broadcast %93 : vector<128x1xf32> to vector<128x32xf32>
    %95 = arith.mulf %90, %94 : vector<128x32xf32>
    %96 = arith.truncf %95 : vector<128x32xf32> to vector<128x32xbf16>
    %c1 = arith.constant 1 : index
    %c0_49 = arith.constant 0 : index
    %c0_50 = arith.constant 0 : index
    %97 = vector.load %arg9[%c1, %c0_49, %c0_50] : memref<2x32x96xbf16, #tpu.memory_space<vmem>>, vector<1x32x96xbf16>
    %98 = vector.shape_cast %97 : vector<1x32x96xbf16> to vector<32x96xbf16>
    %cst_51 = arith.constant dense<0.000000e+00> : vector<128x96xf32>
    %99 = tpu.matmul %96, %98, %cst_51 {dimension_numbers = #tpu.dot_dimension_numbers<[1], [0], [0], [1], [0, 0, 1, 1], [], []>} : vector<128x32xbf16>, vector<32x96xbf16>, vector<128x96xf32> -> vector<128x96xf32>
    %100 = vector.extract_strided_slice %99 {offsets = [0, 0], sizes = [128, 32], strides = [1, 1]} : vector<128x96xf32> to vector<128x32xf32>
    %101 = arith.truncf %100 : vector<128x32xf32> to vector<128x32xbf16>
    %102 = vector.extract_strided_slice %99 {offsets = [0, 32], sizes = [128, 32], strides = [1, 1]} : vector<128x96xf32> to vector<128x32xf32>
    %103 = arith.truncf %102 : vector<128x32xf32> to vector<128x32xbf16>
    %104 = vector.extract_strided_slice %99 {offsets = [0, 64], sizes = [128, 32], strides = [1, 1]} : vector<128x96xf32> to vector<128x32xf32>
    %105 = arith.truncf %104 : vector<128x32xf32> to vector<128x32xbf16>
    %cst_52 = arith.constant dense<0.000000e+00> : vector<128x128xf32>
    %106 = tpu.matmul %101, %103, %cst_52 {dimension_numbers = #tpu.dot_dimension_numbers<[1], [1], [0], [0], [0, 0, 1, 0], [], []>} : vector<128x32xbf16>, vector<128x32xbf16>, vector<128x128xf32> -> vector<128x128xf32>
    %cst_53 = arith.constant dense<0xFF800000> : vector<128xf32>
    %107 = vector.multi_reduction <maximumf>, %106, %cst_53 [1] : vector<128x128xf32> to vector<128xf32>
    %108 = vector.shape_cast %107 : vector<128xf32> to vector<128x1xf32>
    %109 = vector.broadcast %108 : vector<128x1xf32> to vector<128x128xf32>
    %110 = arith.subf %106, %109 : vector<128x128xf32>
    %111 = math.exp %110 : vector<128x128xf32>
    %112 = arith.mulf %111, %0 : vector<128x128xf32>
    %cst_54 = arith.constant dense<0.000000e+00> : vector<128xf32>
    %113 = vector.multi_reduction <add>, %112, %cst_54 [1] : vector<128x128xf32> to vector<128xf32>
    %114 = vector.shape_cast %113 : vector<128xf32> to vector<128x1xf32>
    %115 = tpu.reciprocal %114 {approx = true} : vector<128x1xf32> -> vector<128x1xf32>
    %116 = vector.broadcast %115 : vector<128x1xf32> to vector<128x128xf32>
    %117 = arith.mulf %112, %116 : vector<128x128xf32>
    %118 = arith.truncf %117 : vector<128x128xf32> to vector<128x128xbf16>
    %cst_55 = arith.constant dense<0.000000e+00> : vector<128x32xf32>
    %119 = tpu.matmul %118, %105, %cst_55 {dimension_numbers = #tpu.dot_dimension_numbers<[1], [0], [0], [1], [0, 0, 1, 1], [], []>} : vector<128x128xbf16>, vector<128x32xbf16>, vector<128x32xf32> -> vector<128x32xf32>
    %120 = arith.addf %95, %119 : vector<128x32xf32>
    %cst_56 = arith.constant dense<0.000000e+00> : vector<128xf32>
    %121 = vector.multi_reduction <add>, %120, %cst_56 [1] : vector<128x32xf32> to vector<128xf32>
    %122 = vector.shape_cast %121 : vector<128xf32> to vector<128x1xf32>
    %cst_57 = arith.constant 3.200000e+01 : f32
    %123 = vector.broadcast %cst_57 : f32 to vector<128x1xf32>
    %124 = arith.divf %122, %123 : vector<128x1xf32>
    %125 = vector.broadcast %124 : vector<128x1xf32> to vector<128x32xf32>
    %126 = arith.subf %120, %125 : vector<128x32xf32>
    %127 = arith.mulf %126, %126 : vector<128x32xf32>
    %cst_58 = arith.constant dense<0.000000e+00> : vector<128xf32>
    %128 = vector.multi_reduction <add>, %127, %cst_58 [1] : vector<128x32xf32> to vector<128xf32>
    %129 = vector.shape_cast %128 : vector<128xf32> to vector<128x1xf32>
    %cst_59 = arith.constant 3.200000e+01 : f32
    %130 = vector.broadcast %cst_59 : f32 to vector<128x1xf32>
    %131 = arith.divf %129, %130 : vector<128x1xf32>
    %132 = vector.broadcast %124 : vector<128x1xf32> to vector<128x32xf32>
    %133 = arith.subf %120, %132 : vector<128x32xf32>
    %cst_60 = arith.constant 9.99999997E-7 : f32
    %134 = vector.broadcast %cst_60 : f32 to vector<128x1xf32>
    %135 = arith.addf %131, %134 : vector<128x1xf32>
    %136 = math.rsqrt %135 : vector<128x1xf32>
    %137 = vector.broadcast %136 : vector<128x1xf32> to vector<128x32xf32>
    %138 = arith.mulf %133, %137 : vector<128x32xf32>
    %139 = arith.truncf %138 : vector<128x32xf32> to vector<128x32xbf16>
    %c1_61 = arith.constant 1 : index
    %c0_62 = arith.constant 0 : index
    %c0_63 = arith.constant 0 : index
    %140 = vector.load %arg10[%c1_61, %c0_62, %c0_63] : memref<2x32x64xbf16, #tpu.memory_space<vmem>>, vector<1x32x64xbf16>
    %141 = vector.shape_cast %140 : vector<1x32x64xbf16> to vector<32x64xbf16>
    %cst_64 = arith.constant dense<0.000000e+00> : vector<128x64xf32>
    %142 = tpu.matmul %139, %141, %cst_64 {dimension_numbers = #tpu.dot_dimension_numbers<[1], [0], [0], [1], [0, 0, 1, 1], [], []>} : vector<128x32xbf16>, vector<32x64xbf16>, vector<128x64xf32> -> vector<128x64xf32>
    %c1_65 = arith.constant 1 : index
    %c0_66 = arith.constant 0 : index
    %c0_67 = arith.constant 0 : index
    %143 = vector.load %arg11[%c1_65, %c0_66, %c0_67] : memref<2x1x64xf32, #tpu.memory_space<vmem>>, vector<1x1x64xf32>
    %144 = vector.shape_cast %143 : vector<1x1x64xf32> to vector<1x64xf32>
    %145 = vector.broadcast %144 : vector<1x64xf32> to vector<128x64xf32>
    %146 = arith.addf %142, %145 : vector<128x64xf32>
    %cst_68 = arith.constant 0.000000e+00 : f32
    %147 = vector.broadcast %cst_68 : f32 to vector<128x64xf32>
    %148 = arith.maximumf %146, %147 : vector<128x64xf32>
    %149 = arith.truncf %148 : vector<128x64xf32> to vector<128x64xbf16>
    %c1_69 = arith.constant 1 : index
    %c0_70 = arith.constant 0 : index
    %c0_71 = arith.constant 0 : index
    %150 = vector.load %arg12[%c1_69, %c0_70, %c0_71] : memref<2x64x32xbf16, #tpu.memory_space<vmem>>, vector<1x64x32xbf16>
    %151 = vector.shape_cast %150 : vector<1x64x32xbf16> to vector<64x32xbf16>
    %cst_72 = arith.constant dense<0.000000e+00> : vector<128x32xf32>
    %152 = tpu.matmul %149, %151, %cst_72 {dimension_numbers = #tpu.dot_dimension_numbers<[1], [0], [0], [1], [0, 0, 1, 1], [], []>} : vector<128x64xbf16>, vector<64x32xbf16>, vector<128x32xf32> -> vector<128x32xf32>
    %153 = arith.addf %138, %152 : vector<128x32xf32>
    %c1_73 = arith.constant 1 : index
    %c0_74 = arith.constant 0 : index
    %c0_75 = arith.constant 0 : index
    %154 = vector.load %arg13[%c1_73, %c0_74, %c0_75] : memref<2x1x32xf32, #tpu.memory_space<vmem>>, vector<1x1x32xf32>
    %155 = vector.shape_cast %154 : vector<1x1x32xf32> to vector<1x32xf32>
    %156 = vector.broadcast %155 : vector<1x32xf32> to vector<128x32xf32>
    %157 = arith.addf %153, %156 : vector<128x32xf32>
    %cst_76 = arith.constant dense<0.000000e+00> : vector<128xf32>
    %158 = vector.multi_reduction <add>, %157, %cst_76 [1] : vector<128x32xf32> to vector<128xf32>
    %159 = vector.shape_cast %158 : vector<128xf32> to vector<128x1xf32>
    %cst_77 = arith.constant 3.200000e+01 : f32
    %160 = vector.broadcast %cst_77 : f32 to vector<128x1xf32>
    %161 = arith.divf %159, %160 : vector<128x1xf32>
    %162 = vector.broadcast %161 : vector<128x1xf32> to vector<128x32xf32>
    %163 = arith.subf %157, %162 : vector<128x32xf32>
    %164 = arith.mulf %163, %163 : vector<128x32xf32>
    %cst_78 = arith.constant dense<0.000000e+00> : vector<128xf32>
    %165 = vector.multi_reduction <add>, %164, %cst_78 [1] : vector<128x32xf32> to vector<128xf32>
    %166 = vector.shape_cast %165 : vector<128xf32> to vector<128x1xf32>
    %cst_79 = arith.constant 3.200000e+01 : f32
    %167 = vector.broadcast %cst_79 : f32 to vector<128x1xf32>
    %168 = arith.divf %166, %167 : vector<128x1xf32>
    %169 = vector.broadcast %161 : vector<128x1xf32> to vector<128x32xf32>
    %170 = arith.subf %157, %169 : vector<128x32xf32>
    %cst_80 = arith.constant 9.99999997E-7 : f32
    %171 = vector.broadcast %cst_80 : f32 to vector<128x1xf32>
    %172 = arith.addf %168, %171 : vector<128x1xf32>
    %173 = math.rsqrt %172 : vector<128x1xf32>
    %174 = vector.broadcast %173 : vector<128x1xf32> to vector<128x32xf32>
    %175 = arith.mulf %170, %174 : vector<128x32xf32>
    %176 = arith.truncf %175 : vector<128x32xf32> to vector<128x32xbf16>
    %177 = arith.truncf %15 : vector<32x32xf32> to vector<32x32xbf16>
    %c0_81 = arith.constant 0 : index
    %c0_82 = arith.constant 0 : index
    %c0_83 = arith.constant 0 : index
    %178 = vector.load %arg14[%c0_81, %c0_82, %c0_83] : memref<2x32x32xbf16, #tpu.memory_space<vmem>>, vector<1x32x32xbf16>
    %179 = vector.shape_cast %178 : vector<1x32x32xbf16> to vector<32x32xbf16>
    %cst_84 = arith.constant dense<0.000000e+00> : vector<32x32xf32>
    %180 = tpu.matmul %177, %179, %cst_84 {dimension_numbers = #tpu.dot_dimension_numbers<[1], [0], [0], [1], [0, 0, 1, 1], [], []>} : vector<32x32xbf16>, vector<32x32xbf16>, vector<32x32xf32> -> vector<32x32xf32>
    %181 = arith.addf %15, %180 : vector<32x32xf32>
    %cst_85 = arith.constant dense<0.000000e+00> : vector<32xf32>
    %182 = vector.multi_reduction <add>, %181, %cst_85 [1] : vector<32x32xf32> to vector<32xf32>
    %183 = vector.shape_cast %182 : vector<32xf32> to vector<32x1xf32>
    %cst_86 = arith.constant 3.200000e+01 : f32
    %184 = vector.broadcast %cst_86 : f32 to vector<32x1xf32>
    %185 = arith.divf %183, %184 : vector<32x1xf32>
    %186 = vector.broadcast %185 : vector<32x1xf32> to vector<32x32xf32>
    %187 = arith.subf %181, %186 : vector<32x32xf32>
    %188 = arith.mulf %187, %187 : vector<32x32xf32>
    %cst_87 = arith.constant dense<0.000000e+00> : vector<32xf32>
    %189 = vector.multi_reduction <add>, %188, %cst_87 [1] : vector<32x32xf32> to vector<32xf32>
    %190 = vector.shape_cast %189 : vector<32xf32> to vector<32x1xf32>
    %cst_88 = arith.constant 3.200000e+01 : f32
    %191 = vector.broadcast %cst_88 : f32 to vector<32x1xf32>
    %192 = arith.divf %190, %191 : vector<32x1xf32>
    %193 = vector.broadcast %185 : vector<32x1xf32> to vector<32x32xf32>
    %194 = arith.subf %181, %193 : vector<32x32xf32>
    %cst_89 = arith.constant 9.99999997E-7 : f32
    %195 = vector.broadcast %cst_89 : f32 to vector<32x1xf32>
    %196 = arith.addf %192, %195 : vector<32x1xf32>
    %197 = math.rsqrt %196 : vector<32x1xf32>
    %198 = vector.broadcast %197 : vector<32x1xf32> to vector<32x32xf32>
    %199 = arith.mulf %194, %198 : vector<32x32xf32>
    %200 = arith.truncf %199 : vector<32x32xf32> to vector<32x32xbf16>
    %c0_90 = arith.constant 0 : index
    %c0_91 = arith.constant 0 : index
    %c0_92 = arith.constant 0 : index
    %201 = vector.load %arg15[%c0_90, %c0_91, %c0_92] : memref<2x32x32xbf16, #tpu.memory_space<vmem>>, vector<1x32x32xbf16>
    %202 = vector.shape_cast %201 : vector<1x32x32xbf16> to vector<32x32xbf16>
    %cst_93 = arith.constant dense<0.000000e+00> : vector<32x32xf32>
    %203 = tpu.matmul %200, %202, %cst_93 {dimension_numbers = #tpu.dot_dimension_numbers<[1], [0], [0], [1], [0, 0, 1, 1], [], []>} : vector<32x32xbf16>, vector<32x32xbf16>, vector<32x32xf32> -> vector<32x32xf32>
    %c0_94 = arith.constant 0 : index
    %c0_95 = arith.constant 0 : index
    %c0_96 = arith.constant 0 : index
    %204 = vector.load %arg16[%c0_94, %c0_95, %c0_96] : memref<2x32x64xbf16, #tpu.memory_space<vmem>>, vector<1x32x64xbf16>
    %205 = vector.shape_cast %204 : vector<1x32x64xbf16> to vector<32x64xbf16>
    %cst_97 = arith.constant dense<0.000000e+00> : vector<128x64xf32>
    %206 = tpu.matmul %176, %205, %cst_97 {dimension_numbers = #tpu.dot_dimension_numbers<[1], [0], [0], [1], [0, 0, 1, 1], [], []>} : vector<128x32xbf16>, vector<32x64xbf16>, vector<128x64xf32> -> vector<128x64xf32>
    %207 = vector.extract_strided_slice %206 {offsets = [0, 0], sizes = [128, 32], strides = [1, 1]} : vector<128x64xf32> to vector<128x32xf32>
    %208 = arith.truncf %207 : vector<128x32xf32> to vector<128x32xbf16>
    %209 = vector.extract_strided_slice %206 {offsets = [0, 32], sizes = [128, 32], strides = [1, 1]} : vector<128x64xf32> to vector<128x32xf32>
    %210 = arith.truncf %209 : vector<128x32xf32> to vector<128x32xbf16>
    %211 = arith.truncf %203 : vector<32x32xf32> to vector<32x32xbf16>
    %cst_98 = arith.constant dense<0.000000e+00> : vector<32x128xf32>
    %212 = tpu.matmul %211, %208, %cst_98 {dimension_numbers = #tpu.dot_dimension_numbers<[1], [1], [0], [0], [0, 0, 1, 0], [], []>} : vector<32x32xbf16>, vector<128x32xbf16>, vector<32x128xf32> -> vector<32x128xf32>
    %cst_99 = arith.constant dense<0xFF800000> : vector<32xf32>
    %213 = vector.multi_reduction <maximumf>, %212, %cst_99 [1] : vector<32x128xf32> to vector<32xf32>
    %214 = vector.shape_cast %213 : vector<32xf32> to vector<32x1xf32>
    %215 = vector.broadcast %214 : vector<32x1xf32> to vector<32x128xf32>
    %216 = arith.subf %212, %215 : vector<32x128xf32>
    %217 = math.exp %216 : vector<32x128xf32>
    %218 = arith.mulf %217, %1 : vector<32x128xf32>
    %cst_100 = arith.constant dense<0.000000e+00> : vector<32xf32>
    %219 = vector.multi_reduction <add>, %218, %cst_100 [1] : vector<32x128xf32> to vector<32xf32>
    %220 = vector.shape_cast %219 : vector<32xf32> to vector<32x1xf32>
    %221 = tpu.reciprocal %220 {approx = true} : vector<32x1xf32> -> vector<32x1xf32>
    %222 = vector.broadcast %221 : vector<32x1xf32> to vector<32x128xf32>
    %223 = arith.mulf %218, %222 : vector<32x128xf32>
    %224 = arith.truncf %223 : vector<32x128xf32> to vector<32x128xbf16>
    %cst_101 = arith.constant dense<0.000000e+00> : vector<32x32xf32>
    %225 = tpu.matmul %224, %210, %cst_101 {dimension_numbers = #tpu.dot_dimension_numbers<[1], [0], [0], [1], [0, 0, 1, 1], [], []>} : vector<32x128xbf16>, vector<128x32xbf16>, vector<32x32xf32> -> vector<32x32xf32>
    %226 = arith.addf %199, %225 : vector<32x32xf32>
    %cst_102 = arith.constant dense<0.000000e+00> : vector<32xf32>
    %227 = vector.multi_reduction <add>, %226, %cst_102 [1] : vector<32x32xf32> to vector<32xf32>
    %228 = vector.shape_cast %227 : vector<32xf32> to vector<32x1xf32>
    %cst_103 = arith.constant 3.200000e+01 : f32
    %229 = vector.broadcast %cst_103 : f32 to vector<32x1xf32>
    %230 = arith.divf %228, %229 : vector<32x1xf32>
    %231 = vector.broadcast %230 : vector<32x1xf32> to vector<32x32xf32>
    %232 = arith.subf %226, %231 : vector<32x32xf32>
    %233 = arith.mulf %232, %232 : vector<32x32xf32>
    %cst_104 = arith.constant dense<0.000000e+00> : vector<32xf32>
    %234 = vector.multi_reduction <add>, %233, %cst_104 [1] : vector<32x32xf32> to vector<32xf32>
    %235 = vector.shape_cast %234 : vector<32xf32> to vector<32x1xf32>
    %cst_105 = arith.constant 3.200000e+01 : f32
    %236 = vector.broadcast %cst_105 : f32 to vector<32x1xf32>
    %237 = arith.divf %235, %236 : vector<32x1xf32>
    %238 = vector.broadcast %230 : vector<32x1xf32> to vector<32x32xf32>
    %239 = arith.subf %226, %238 : vector<32x32xf32>
    %cst_106 = arith.constant 9.99999997E-7 : f32
    %240 = vector.broadcast %cst_106 : f32 to vector<32x1xf32>
    %241 = arith.addf %237, %240 : vector<32x1xf32>
    %242 = math.rsqrt %241 : vector<32x1xf32>
    %243 = vector.broadcast %242 : vector<32x1xf32> to vector<32x32xf32>
    %244 = arith.mulf %239, %243 : vector<32x32xf32>
    %245 = arith.truncf %244 : vector<32x32xf32> to vector<32x32xbf16>
    %c0_107 = arith.constant 0 : index
    %c0_108 = arith.constant 0 : index
    %c0_109 = arith.constant 0 : index
    %246 = vector.load %arg17[%c0_107, %c0_108, %c0_109] : memref<2x32x64xbf16, #tpu.memory_space<vmem>>, vector<1x32x64xbf16>
    %247 = vector.shape_cast %246 : vector<1x32x64xbf16> to vector<32x64xbf16>
    %cst_110 = arith.constant dense<0.000000e+00> : vector<32x64xf32>
    %248 = tpu.matmul %245, %247, %cst_110 {dimension_numbers = #tpu.dot_dimension_numbers<[1], [0], [0], [1], [0, 0, 1, 1], [], []>} : vector<32x32xbf16>, vector<32x64xbf16>, vector<32x64xf32> -> vector<32x64xf32>
    %c0_111 = arith.constant 0 : index
    %c0_112 = arith.constant 0 : index
    %c0_113 = arith.constant 0 : index
    %249 = vector.load %arg18[%c0_111, %c0_112, %c0_113] : memref<2x1x64xf32, #tpu.memory_space<vmem>>, vector<1x1x64xf32>
    %250 = vector.shape_cast %249 : vector<1x1x64xf32> to vector<1x64xf32>
    %251 = vector.broadcast %250 : vector<1x64xf32> to vector<32x64xf32>
    %252 = arith.addf %248, %251 : vector<32x64xf32>
    %cst_114 = arith.constant 0.000000e+00 : f32
    %253 = vector.broadcast %cst_114 : f32 to vector<32x64xf32>
    %254 = arith.maximumf %252, %253 : vector<32x64xf32>
    %255 = arith.truncf %254 : vector<32x64xf32> to vector<32x64xbf16>
    %c0_115 = arith.constant 0 : index
    %c0_116 = arith.constant 0 : index
    %c0_117 = arith.constant 0 : index
    %256 = vector.load %arg19[%c0_115, %c0_116, %c0_117] : memref<2x64x32xbf16, #tpu.memory_space<vmem>>, vector<1x64x32xbf16>
    %257 = vector.shape_cast %256 : vector<1x64x32xbf16> to vector<64x32xbf16>
    %cst_118 = arith.constant dense<0.000000e+00> : vector<32x32xf32>
    %258 = tpu.matmul %255, %257, %cst_118 {dimension_numbers = #tpu.dot_dimension_numbers<[1], [0], [0], [1], [0, 0, 1, 1], [], []>} : vector<32x64xbf16>, vector<64x32xbf16>, vector<32x32xf32> -> vector<32x32xf32>
    %259 = arith.addf %244, %258 : vector<32x32xf32>
    %c0_119 = arith.constant 0 : index
    %c0_120 = arith.constant 0 : index
    %c0_121 = arith.constant 0 : index
    %260 = vector.load %arg20[%c0_119, %c0_120, %c0_121] : memref<2x1x32xf32, #tpu.memory_space<vmem>>, vector<1x1x32xf32>
    %261 = vector.shape_cast %260 : vector<1x1x32xf32> to vector<1x32xf32>
    %262 = vector.broadcast %261 : vector<1x32xf32> to vector<32x32xf32>
    %263 = arith.addf %259, %262 : vector<32x32xf32>
    %cst_122 = arith.constant dense<0.000000e+00> : vector<32xf32>
    %264 = vector.multi_reduction <add>, %263, %cst_122 [1] : vector<32x32xf32> to vector<32xf32>
    %265 = vector.shape_cast %264 : vector<32xf32> to vector<32x1xf32>
    %cst_123 = arith.constant 3.200000e+01 : f32
    %266 = vector.broadcast %cst_123 : f32 to vector<32x1xf32>
    %267 = arith.divf %265, %266 : vector<32x1xf32>
    %268 = vector.broadcast %267 : vector<32x1xf32> to vector<32x32xf32>
    %269 = arith.subf %263, %268 : vector<32x32xf32>
    %270 = arith.mulf %269, %269 : vector<32x32xf32>
    %cst_124 = arith.constant dense<0.000000e+00> : vector<32xf32>
    %271 = vector.multi_reduction <add>, %270, %cst_124 [1] : vector<32x32xf32> to vector<32xf32>
    %272 = vector.shape_cast %271 : vector<32xf32> to vector<32x1xf32>
    %cst_125 = arith.constant 3.200000e+01 : f32
    %273 = vector.broadcast %cst_125 : f32 to vector<32x1xf32>
    %274 = arith.divf %272, %273 : vector<32x1xf32>
    %275 = vector.broadcast %267 : vector<32x1xf32> to vector<32x32xf32>
    %276 = arith.subf %263, %275 : vector<32x32xf32>
    %cst_126 = arith.constant 9.99999997E-7 : f32
    %277 = vector.broadcast %cst_126 : f32 to vector<32x1xf32>
    %278 = arith.addf %274, %277 : vector<32x1xf32>
    %279 = math.rsqrt %278 : vector<32x1xf32>
    %280 = vector.broadcast %279 : vector<32x1xf32> to vector<32x32xf32>
    %281 = arith.mulf %276, %280 : vector<32x32xf32>
    %282 = arith.truncf %281 : vector<32x32xf32> to vector<32x32xbf16>
    %c1_127 = arith.constant 1 : index
    %c0_128 = arith.constant 0 : index
    %c0_129 = arith.constant 0 : index
    %283 = vector.load %arg14[%c1_127, %c0_128, %c0_129] : memref<2x32x32xbf16, #tpu.memory_space<vmem>>, vector<1x32x32xbf16>
    %284 = vector.shape_cast %283 : vector<1x32x32xbf16> to vector<32x32xbf16>
    %cst_130 = arith.constant dense<0.000000e+00> : vector<32x32xf32>
    %285 = tpu.matmul %282, %284, %cst_130 {dimension_numbers = #tpu.dot_dimension_numbers<[1], [0], [0], [1], [0, 0, 1, 1], [], []>} : vector<32x32xbf16>, vector<32x32xbf16>, vector<32x32xf32> -> vector<32x32xf32>
    %286 = arith.addf %281, %285 : vector<32x32xf32>
    %cst_131 = arith.constant dense<0.000000e+00> : vector<32xf32>
    %287 = vector.multi_reduction <add>, %286, %cst_131 [1] : vector<32x32xf32> to vector<32xf32>
    %288 = vector.shape_cast %287 : vector<32xf32> to vector<32x1xf32>
    %cst_132 = arith.constant 3.200000e+01 : f32
    %289 = vector.broadcast %cst_132 : f32 to vector<32x1xf32>
    %290 = arith.divf %288, %289 : vector<32x1xf32>
    %291 = vector.broadcast %290 : vector<32x1xf32> to vector<32x32xf32>
    %292 = arith.subf %286, %291 : vector<32x32xf32>
    %293 = arith.mulf %292, %292 : vector<32x32xf32>
    %cst_133 = arith.constant dense<0.000000e+00> : vector<32xf32>
    %294 = vector.multi_reduction <add>, %293, %cst_133 [1] : vector<32x32xf32> to vector<32xf32>
    %295 = vector.shape_cast %294 : vector<32xf32> to vector<32x1xf32>
    %cst_134 = arith.constant 3.200000e+01 : f32
    %296 = vector.broadcast %cst_134 : f32 to vector<32x1xf32>
    %297 = arith.divf %295, %296 : vector<32x1xf32>
    %298 = vector.broadcast %290 : vector<32x1xf32> to vector<32x32xf32>
    %299 = arith.subf %286, %298 : vector<32x32xf32>
    %cst_135 = arith.constant 9.99999997E-7 : f32
    %300 = vector.broadcast %cst_135 : f32 to vector<32x1xf32>
    %301 = arith.addf %297, %300 : vector<32x1xf32>
    %302 = math.rsqrt %301 : vector<32x1xf32>
    %303 = vector.broadcast %302 : vector<32x1xf32> to vector<32x32xf32>
    %304 = arith.mulf %299, %303 : vector<32x32xf32>
    %305 = arith.truncf %304 : vector<32x32xf32> to vector<32x32xbf16>
    %c1_136 = arith.constant 1 : index
    %c0_137 = arith.constant 0 : index
    %c0_138 = arith.constant 0 : index
    %306 = vector.load %arg15[%c1_136, %c0_137, %c0_138] : memref<2x32x32xbf16, #tpu.memory_space<vmem>>, vector<1x32x32xbf16>
    %307 = vector.shape_cast %306 : vector<1x32x32xbf16> to vector<32x32xbf16>
    %cst_139 = arith.constant dense<0.000000e+00> : vector<32x32xf32>
    %308 = tpu.matmul %305, %307, %cst_139 {dimension_numbers = #tpu.dot_dimension_numbers<[1], [0], [0], [1], [0, 0, 1, 1], [], []>} : vector<32x32xbf16>, vector<32x32xbf16>, vector<32x32xf32> -> vector<32x32xf32>
    %c1_140 = arith.constant 1 : index
    %c0_141 = arith.constant 0 : index
    %c0_142 = arith.constant 0 : index
    %309 = vector.load %arg16[%c1_140, %c0_141, %c0_142] : memref<2x32x64xbf16, #tpu.memory_space<vmem>>, vector<1x32x64xbf16>
    %310 = vector.shape_cast %309 : vector<1x32x64xbf16> to vector<32x64xbf16>
    %cst_143 = arith.constant dense<0.000000e+00> : vector<128x64xf32>
    %311 = tpu.matmul %176, %310, %cst_143 {dimension_numbers = #tpu.dot_dimension_numbers<[1], [0], [0], [1], [0, 0, 1, 1], [], []>} : vector<128x32xbf16>, vector<32x64xbf16>, vector<128x64xf32> -> vector<128x64xf32>
    %312 = vector.extract_strided_slice %311 {offsets = [0, 0], sizes = [128, 32], strides = [1, 1]} : vector<128x64xf32> to vector<128x32xf32>
    %313 = arith.truncf %312 : vector<128x32xf32> to vector<128x32xbf16>
    %314 = vector.extract_strided_slice %311 {offsets = [0, 32], sizes = [128, 32], strides = [1, 1]} : vector<128x64xf32> to vector<128x32xf32>
    %315 = arith.truncf %314 : vector<128x32xf32> to vector<128x32xbf16>
    %316 = arith.truncf %308 : vector<32x32xf32> to vector<32x32xbf16>
    %cst_144 = arith.constant dense<0.000000e+00> : vector<32x128xf32>
    %317 = tpu.matmul %316, %313, %cst_144 {dimension_numbers = #tpu.dot_dimension_numbers<[1], [1], [0], [0], [0, 0, 1, 0], [], []>} : vector<32x32xbf16>, vector<128x32xbf16>, vector<32x128xf32> -> vector<32x128xf32>
    %cst_145 = arith.constant dense<0xFF800000> : vector<32xf32>
    %318 = vector.multi_reduction <maximumf>, %317, %cst_145 [1] : vector<32x128xf32> to vector<32xf32>
    %319 = vector.shape_cast %318 : vector<32xf32> to vector<32x1xf32>
    %320 = vector.broadcast %319 : vector<32x1xf32> to vector<32x128xf32>
    %321 = arith.subf %317, %320 : vector<32x128xf32>
    %322 = math.exp %321 : vector<32x128xf32>
    %323 = arith.mulf %322, %1 : vector<32x128xf32>
    %cst_146 = arith.constant dense<0.000000e+00> : vector<32xf32>
    %324 = vector.multi_reduction <add>, %323, %cst_146 [1] : vector<32x128xf32> to vector<32xf32>
    %325 = vector.shape_cast %324 : vector<32xf32> to vector<32x1xf32>
    %326 = tpu.reciprocal %325 {approx = true} : vector<32x1xf32> -> vector<32x1xf32>
    %327 = vector.broadcast %326 : vector<32x1xf32> to vector<32x128xf32>
    %328 = arith.mulf %323, %327 : vector<32x128xf32>
    %329 = arith.truncf %328 : vector<32x128xf32> to vector<32x128xbf16>
    %cst_147 = arith.constant dense<0.000000e+00> : vector<32x32xf32>
    %330 = tpu.matmul %329, %315, %cst_147 {dimension_numbers = #tpu.dot_dimension_numbers<[1], [0], [0], [1], [0, 0, 1, 1], [], []>} : vector<32x128xbf16>, vector<128x32xbf16>, vector<32x32xf32> -> vector<32x32xf32>
    %331 = arith.addf %304, %330 : vector<32x32xf32>
    %cst_148 = arith.constant dense<0.000000e+00> : vector<32xf32>
    %332 = vector.multi_reduction <add>, %331, %cst_148 [1] : vector<32x32xf32> to vector<32xf32>
    %333 = vector.shape_cast %332 : vector<32xf32> to vector<32x1xf32>
    %cst_149 = arith.constant 3.200000e+01 : f32
    %334 = vector.broadcast %cst_149 : f32 to vector<32x1xf32>
    %335 = arith.divf %333, %334 : vector<32x1xf32>
    %336 = vector.broadcast %335 : vector<32x1xf32> to vector<32x32xf32>
    %337 = arith.subf %331, %336 : vector<32x32xf32>
    %338 = arith.mulf %337, %337 : vector<32x32xf32>
    %cst_150 = arith.constant dense<0.000000e+00> : vector<32xf32>
    %339 = vector.multi_reduction <add>, %338, %cst_150 [1] : vector<32x32xf32> to vector<32xf32>
    %340 = vector.shape_cast %339 : vector<32xf32> to vector<32x1xf32>
    %cst_151 = arith.constant 3.200000e+01 : f32
    %341 = vector.broadcast %cst_151 : f32 to vector<32x1xf32>
    %342 = arith.divf %340, %341 : vector<32x1xf32>
    %343 = vector.broadcast %335 : vector<32x1xf32> to vector<32x32xf32>
    %344 = arith.subf %331, %343 : vector<32x32xf32>
    %cst_152 = arith.constant 9.99999997E-7 : f32
    %345 = vector.broadcast %cst_152 : f32 to vector<32x1xf32>
    %346 = arith.addf %342, %345 : vector<32x1xf32>
    %347 = math.rsqrt %346 : vector<32x1xf32>
    %348 = vector.broadcast %347 : vector<32x1xf32> to vector<32x32xf32>
    %349 = arith.mulf %344, %348 : vector<32x32xf32>
    %350 = arith.truncf %349 : vector<32x32xf32> to vector<32x32xbf16>
    %c1_153 = arith.constant 1 : index
    %c0_154 = arith.constant 0 : index
    %c0_155 = arith.constant 0 : index
    %351 = vector.load %arg17[%c1_153, %c0_154, %c0_155] : memref<2x32x64xbf16, #tpu.memory_space<vmem>>, vector<1x32x64xbf16>
    %352 = vector.shape_cast %351 : vector<1x32x64xbf16> to vector<32x64xbf16>
    %cst_156 = arith.constant dense<0.000000e+00> : vector<32x64xf32>
    %353 = tpu.matmul %350, %352, %cst_156 {dimension_numbers = #tpu.dot_dimension_numbers<[1], [0], [0], [1], [0, 0, 1, 1], [], []>} : vector<32x32xbf16>, vector<32x64xbf16>, vector<32x64xf32> -> vector<32x64xf32>
    %c1_157 = arith.constant 1 : index
    %c0_158 = arith.constant 0 : index
    %c0_159 = arith.constant 0 : index
    %354 = vector.load %arg18[%c1_157, %c0_158, %c0_159] : memref<2x1x64xf32, #tpu.memory_space<vmem>>, vector<1x1x64xf32>
    %355 = vector.shape_cast %354 : vector<1x1x64xf32> to vector<1x64xf32>
    %356 = vector.broadcast %355 : vector<1x64xf32> to vector<32x64xf32>
    %357 = arith.addf %353, %356 : vector<32x64xf32>
    %cst_160 = arith.constant 0.000000e+00 : f32
    %358 = vector.broadcast %cst_160 : f32 to vector<32x64xf32>
    %359 = arith.maximumf %357, %358 : vector<32x64xf32>
    %360 = arith.truncf %359 : vector<32x64xf32> to vector<32x64xbf16>
    %c1_161 = arith.constant 1 : index
    %c0_162 = arith.constant 0 : index
    %c0_163 = arith.constant 0 : index
    %361 = vector.load %arg19[%c1_161, %c0_162, %c0_163] : memref<2x64x32xbf16, #tpu.memory_space<vmem>>, vector<1x64x32xbf16>
    %362 = vector.shape_cast %361 : vector<1x64x32xbf16> to vector<64x32xbf16>
    %cst_164 = arith.constant dense<0.000000e+00> : vector<32x32xf32>
    %363 = tpu.matmul %360, %362, %cst_164 {dimension_numbers = #tpu.dot_dimension_numbers<[1], [0], [0], [1], [0, 0, 1, 1], [], []>} : vector<32x64xbf16>, vector<64x32xbf16>, vector<32x32xf32> -> vector<32x32xf32>
    %364 = arith.addf %349, %363 : vector<32x32xf32>
    %c1_165 = arith.constant 1 : index
    %c0_166 = arith.constant 0 : index
    %c0_167 = arith.constant 0 : index
    %365 = vector.load %arg20[%c1_165, %c0_166, %c0_167] : memref<2x1x32xf32, #tpu.memory_space<vmem>>, vector<1x1x32xf32>
    %366 = vector.shape_cast %365 : vector<1x1x32xf32> to vector<1x32xf32>
    %367 = vector.broadcast %366 : vector<1x32xf32> to vector<32x32xf32>
    %368 = arith.addf %364, %367 : vector<32x32xf32>
    %cst_168 = arith.constant dense<0.000000e+00> : vector<32xf32>
    %369 = vector.multi_reduction <add>, %368, %cst_168 [1] : vector<32x32xf32> to vector<32xf32>
    %370 = vector.shape_cast %369 : vector<32xf32> to vector<32x1xf32>
    %cst_169 = arith.constant 3.200000e+01 : f32
    %371 = vector.broadcast %cst_169 : f32 to vector<32x1xf32>
    %372 = arith.divf %370, %371 : vector<32x1xf32>
    %373 = vector.broadcast %372 : vector<32x1xf32> to vector<32x32xf32>
    %374 = arith.subf %368, %373 : vector<32x32xf32>
    %375 = arith.mulf %374, %374 : vector<32x32xf32>
    %cst_170 = arith.constant dense<0.000000e+00> : vector<32xf32>
    %376 = vector.multi_reduction <add>, %375, %cst_170 [1] : vector<32x32xf32> to vector<32xf32>
    %377 = vector.shape_cast %376 : vector<32xf32> to vector<32x1xf32>
    %cst_171 = arith.constant 3.200000e+01 : f32
    %378 = vector.broadcast %cst_171 : f32 to vector<32x1xf32>
    %379 = arith.divf %377, %378 : vector<32x1xf32>
    %380 = vector.broadcast %372 : vector<32x1xf32> to vector<32x32xf32>
    %381 = arith.subf %368, %380 : vector<32x32xf32>
    %cst_172 = arith.constant 9.99999997E-7 : f32
    %382 = vector.broadcast %cst_172 : f32 to vector<32x1xf32>
    %383 = arith.addf %379, %382 : vector<32x1xf32>
    %384 = math.rsqrt %383 : vector<32x1xf32>
    %385 = vector.broadcast %384 : vector<32x1xf32> to vector<32x32xf32>
    %386 = arith.mulf %381, %385 : vector<32x32xf32>
    %387 = arith.truncf %386 : vector<32x32xf32> to vector<32x32xbf16>
    %c0_173 = arith.constant 0 : index
    %c0_174 = arith.constant 0 : index
    %388 = vector.load %arg21[%c0_173, %c0_174] : memref<32x8xbf16, #tpu.memory_space<vmem>>, vector<32x8xbf16>
    %cst_175 = arith.constant dense<0.000000e+00> : vector<32x8xf32>
    %389 = tpu.matmul %387, %388, %cst_175 {dimension_numbers = #tpu.dot_dimension_numbers<[1], [0], [0], [1], [0, 0, 1, 1], [], []>} : vector<32x32xbf16>, vector<32x8xbf16>, vector<32x8xf32> -> vector<32x8xf32>
    %c0_176 = arith.constant 0 : index
    %c0_177 = arith.constant 0 : index
    %390 = vector.load %arg22[%c0_176, %c0_177] : memref<1x8xf32, #tpu.memory_space<vmem>>, vector<1x8xf32>
    %391 = vector.broadcast %390 : vector<1x8xf32> to vector<32x8xf32>
    %392 = arith.addf %389, %391 : vector<32x8xf32>
    %c0_178 = arith.constant 0 : index
    %c0_179 = arith.constant 0 : index
    %393 = vector.load %arg23[%c0_178, %c0_179] : memref<32x8xf32, #tpu.memory_space<vmem>>, vector<32x8xf32>
    tpu.vector_store %arg23[%c0_178, %c0_179], %392 {strides = array<i32>} : memref<32x8xf32, #tpu.memory_space<vmem>>, vector<32x8xf32>,
    return
  }
  func.func @transform_0(%arg0: i32) -> (i32, i32) {
    %c0_i32 = arith.constant 0 : i32
    %c0_i32_0 = arith.constant 0 : i32
    return %arg0, %c0_i32 : i32, i32
  }
  func.func @transform_1(%arg0: i32) -> (i32, i32) {
    %c0_i32 = arith.constant 0 : i32
    %c0_i32_0 = arith.constant 0 : i32
    return %arg0, %c0_i32 : i32, i32
  }
  func.func @transform_2(%arg0: i32) -> (i32, i32) {
    %c0_i32 = arith.constant 0 : i32
    %c0_i32_0 = arith.constant 0 : i32
    %c0_i32_1 = arith.constant 0 : i32
    return %c0_i32, %c0_i32_0 : i32, i32
  }
  func.func @transform_3(%arg0: i32) -> (i32, i32) {
    %c0_i32 = arith.constant 0 : i32
    %c0_i32_0 = arith.constant 0 : i32
    %c0_i32_1 = arith.constant 0 : i32
    return %c0_i32, %c0_i32_0 : i32, i32
  }
  func.func @transform_4(%arg0: i32) -> (i32, i32) {
    %c0_i32 = arith.constant 0 : i32
    %c0_i32_0 = arith.constant 0 : i32
    %c0_i32_1 = arith.constant 0 : i32
    return %c0_i32, %c0_i32_0 : i32, i32
  }
  func.func @transform_5(%arg0: i32) -> (i32, i32) {
    %c0_i32 = arith.constant 0 : i32
    %c0_i32_0 = arith.constant 0 : i32
    %c0_i32_1 = arith.constant 0 : i32
    return %c0_i32, %c0_i32_0 : i32, i32
  }
  func.func @transform_6(%arg0: i32) -> (i32, i32) {
    %c0_i32 = arith.constant 0 : i32
    %c0_i32_0 = arith.constant 0 : i32
    %c0_i32_1 = arith.constant 0 : i32
    return %c0_i32, %c0_i32_0 : i32, i32
  }
  func.func @transform_7(%arg0: i32) -> (i32, i32) {
    %c0_i32 = arith.constant 0 : i32
    %c0_i32_0 = arith.constant 0 : i32
    %c0_i32_1 = arith.constant 0 : i32
    return %c0_i32, %c0_i32_0 : i32, i32
  }
  func.func @transform_8(%arg0: i32) -> (i32, i32, i32) {
    %c0_i32 = arith.constant 0 : i32
    %c0_i32_0 = arith.constant 0 : i32
    %c0_i32_1 = arith.constant 0 : i32
    %c0_i32_2 = arith.constant 0 : i32
    return %c0_i32, %c0_i32_0, %c0_i32_1 : i32, i32, i32
  }
  func.func @transform_9(%arg0: i32) -> (i32, i32, i32) {
    %c0_i32 = arith.constant 0 : i32
    %c0_i32_0 = arith.constant 0 : i32
    %c0_i32_1 = arith.constant 0 : i32
    %c0_i32_2 = arith.constant 0 : i32
    return %c0_i32, %c0_i32_0, %c0_i32_1 : i32, i32, i32
  }
  func.func @transform_10(%arg0: i32) -> (i32, i32, i32) {
    %c0_i32 = arith.constant 0 : i32
    %c0_i32_0 = arith.constant 0 : i32
    %c0_i32_1 = arith.constant 0 : i32
    %c0_i32_2 = arith.constant 0 : i32
    return %c0_i32, %c0_i32_0, %c0_i32_1 : i32, i32, i32
  }
  func.func @transform_11(%arg0: i32) -> (i32, i32, i32) {
    %c0_i32 = arith.constant 0 : i32
    %c0_i32_0 = arith.constant 0 : i32
    %c0_i32_1 = arith.constant 0 : i32
    %c0_i32_2 = arith.constant 0 : i32
    return %c0_i32, %c0_i32_0, %c0_i32_1 : i32, i32, i32
  }
  func.func @transform_12(%arg0: i32) -> (i32, i32, i32) {
    %c0_i32 = arith.constant 0 : i32
    %c0_i32_0 = arith.constant 0 : i32
    %c0_i32_1 = arith.constant 0 : i32
    %c0_i32_2 = arith.constant 0 : i32
    return %c0_i32, %c0_i32_0, %c0_i32_1 : i32, i32, i32
  }
  func.func @transform_13(%arg0: i32) -> (i32, i32, i32) {
    %c0_i32 = arith.constant 0 : i32
    %c0_i32_0 = arith.constant 0 : i32
    %c0_i32_1 = arith.constant 0 : i32
    %c0_i32_2 = arith.constant 0 : i32
    return %c0_i32, %c0_i32_0, %c0_i32_1 : i32, i32, i32
  }
  func.func @transform_14(%arg0: i32) -> (i32, i32, i32) {
    %c0_i32 = arith.constant 0 : i32
    %c0_i32_0 = arith.constant 0 : i32
    %c0_i32_1 = arith.constant 0 : i32
    %c0_i32_2 = arith.constant 0 : i32
    return %c0_i32, %c0_i32_0, %c0_i32_1 : i32, i32, i32
  }
  func.func @transform_15(%arg0: i32) -> (i32, i32, i32) {
    %c0_i32 = arith.constant 0 : i32
    %c0_i32_0 = arith.constant 0 : i32
    %c0_i32_1 = arith.constant 0 : i32
    %c0_i32_2 = arith.constant 0 : i32
    return %c0_i32, %c0_i32_0, %c0_i32_1 : i32, i32, i32
  }
  func.func @transform_16(%arg0: i32) -> (i32, i32, i32) {
    %c0_i32 = arith.constant 0 : i32
    %c0_i32_0 = arith.constant 0 : i32
    %c0_i32_1 = arith.constant 0 : i32
    %c0_i32_2 = arith.constant 0 : i32
    return %c0_i32, %c0_i32_0, %c0_i32_1 : i32, i32, i32
  }
  func.func @transform_17(%arg0: i32) -> (i32, i32, i32) {
    %c0_i32 = arith.constant 0 : i32
    %c0_i32_0 = arith.constant 0 : i32
    %c0_i32_1 = arith.constant 0 : i32
    %c0_i32_2 = arith.constant 0 : i32
    return %c0_i32, %c0_i32_0, %c0_i32_1 : i32, i32, i32
  }
  func.func @transform_18(%arg0: i32) -> (i32, i32, i32) {
    %c0_i32 = arith.constant 0 : i32
    %c0_i32_0 = arith.constant 0 : i32
    %c0_i32_1 = arith.constant 0 : i32
    %c0_i32_2 = arith.constant 0 : i32
    return %c0_i32, %c0_i32_0, %c0_i32_1 : i32, i32, i32
  }
  func.func @transform_19(%arg0: i32) -> (i32, i32, i32) {
    %c0_i32 = arith.constant 0 : i32
    %c0_i32_0 = arith.constant 0 : i32
    %c0_i32_1 = arith.constant 0 : i32
    %c0_i32_2 = arith.constant 0 : i32
    return %c0_i32, %c0_i32_0, %c0_i32_1 : i32, i32, i32
  }
  func.func @transform_20(%arg0: i32) -> (i32, i32) {
    %c0_i32 = arith.constant 0 : i32
    %c0_i32_0 = arith.constant 0 : i32
    %c0_i32_1 = arith.constant 0 : i32
    return %c0_i32, %c0_i32_0 : i32, i32
  }
  func.func @transform_21(%arg0: i32) -> (i32, i32) {
    %c0_i32 = arith.constant 0 : i32
    %c0_i32_0 = arith.constant 0 : i32
    %c0_i32_1 = arith.constant 0 : i32
    return %c0_i32, %c0_i32_0 : i32, i32
  }
  func.func @transform_22(%arg0: i32) -> (i32, i32) {
    %c0_i32 = arith.constant 0 : i32
    %c0_i32_0 = arith.constant 0 : i32
    return %arg0, %c0_i32 : i32, i32
  }
}

</mosaic_0001>

<bundles_post_ra>
// kernel: period_forward.1
= control target key start
LH: loop header
LB: loop body
LE: loop exit
PB: predicated region body
PF: predicated region fallthrough
CT: control target
= control target key end

     0   :  { %vm155_vm0 = vcmask 1043456   ;;  %vm130_vm1 = vcmask 64512   ;;  %vm346_vm2 = vcmask 261120   ;;  %s6285_s27 = smov 64   ;;  %vm1367_vm3 = vcmask 523264   ;;  %s8477_s4 = inlined_call_operand.vmem [shape: bf16[8,32], index: 4, kind: input, shape index: {}]   ;;  %s8478_s0 = inlined_call_operand.vmem [shape: f32[128,8], index: 0, kind: input, shape index: {}]   ;;  %s8479_s6 = inlined_call_operand.vmem [shape: bf16[8,32], index: 6, kind: input, shape index: {}]   ;;  %s8480_s1 = inlined_call_operand.vmem [shape: f32[32,8], index: 1, kind: input, shape index: {}]   ;;  %s8481_s8 = inlined_call_operand.vmem [shape: bf16[2,32,96], index: 8, kind: input, shape index: {}]   ;;  %s8482_s5 = inlined_call_operand.vmem [shape: f32[1,32], index: 5, kind: input, shape index: {}]   ;;  %s8483_s2 = inlined_call_operand.vmem [shape: f32[128,128], index: 2, kind: input, shape index: {}]   ;;  %s8484_s9 = inlined_call_operand.vmem [shape: bf16[2,32,64], index: 9, kind: input, shape index: {}]   ;;  %s8485_s11 = inlined_call_operand.vmem [shape: bf16[2,64,32], index: 11, kind: input, shape index: {}]   ;;  %s8486_s10 = inlined_call_operand.vmem [shape: f32[2,1,64], index: 10, kind: input, shape index: {}]   ;;  %s8487_s12 = inlined_call_operand.vmem [shape: f32[2,1,32], index: 12, kind: input, shape index: {}]   ;;  %s8488_s13 = inlined_call_operand.vmem [shape: bf16[2,32,32], index: 13, kind: input, shape index: {}]   ;;  %s8489_s7 = inlined_call_operand.vmem [shape: f32[1,32], index: 7, kind: input, shape index: {}]   ;;  %s8490_s14 = inlined_call_operand.vmem [shape: bf16[2,32,32], index: 14, kind: input, shape index: {}]   ;;  %s8491_s15 = inlined_call_operand.vmem [shape: bf16[2,32,64], index: 15, kind: input, shape index: {}]   ;;  %s8492_s3 = inlined_call_operand.vmem [shape: f32[32,128], index: 3, kind: input, shape index: {}]   ;;  %s8493_s16 = inlined_call_operand.vmem [shape: bf16[2,32,64], index: 16, kind: input, shape index: {}]   ;;  %s8494_s18 = inlined_call_operand.vmem [shape: bf16[2,64,32], index: 18, kind: input, shape index: {}]   ;;  %s8495_s17 = inlined_call_operand.vmem [shape: f32[2,1,64], index: 17, kind: input, shape index: {}]   ;;  %s8496_s19 = inlined_call_operand.vmem [shape: f32[2,1,32], index: 19, kind: input, shape index: {}]   ;;  %s8497_s20 = inlined_call_operand.vmem [shape: bf16[32,8], index: 20, kind: input, shape index: {}]   ;;  %s8498_s21 = inlined_call_operand.vmem [shape: f32[1,8], index: 21, kind: input, shape index: {}]   ;;  %s8499_s22 = inlined_call_operand.vmem [shape: f32[32,8], index: 22, kind: output, shape index: {}]  }
   0x1   :  { %8504 = sst [smem:[#allocation2_spill]] %s8477_s4 }
   0x2   :  { %8505 = sst [smem:[#allocation3_spill]] %s8478_s0  ;;  %s8511_s29 = sld [smem:[#allocation2_spill]] }
   0x3   :  { %8506 = sst [smem:[#allocation4_spill]] %s8479_s6  ;;  %s8512_s4 = sld [smem:[#allocation3_spill]] }
   0x4   :  { %8507 = sst [smem:[#allocation5_spill]] %s8480_s1 }
   0x5   :  { %8508 = sst [smem:[#allocation6_spill]] %s8481_s8  ;;  %s8514_s25 = sld [smem:[#allocation5_spill]] }
   0x6   :  { %8509 = sst [smem:[#allocation7_spill]] %s8482_s5  ;;  %s8513_s5 = sld [smem:[#allocation4_spill]] }
   0x7   :  { %8510 = sst [smem:[#allocation8_spill]] %s8483_s2  ;;  %s8516_s6 = sld [smem:[#allocation7_spill]] }
   0x8   :  { %v122_v0 = vld [vmem:[%s8511_s29] sm:$0xf]  ;;  %s8517_s29 = sld [smem:[#allocation8_spill]] }
   0x9   :  { %v92_v1 = vld [vmem:[%s8512_s4] sm:$0xff]  ;;  %v93_v2 = vld [vmem:[%s8512_s4 + $0x8] sm:$0xff]  ;;  %5854 = vmatprep.subr.msk.bf16.mxu0 %vm155_vm0, %v122_v0  ;;  %v157_v3 = vsel %vm155_vm0, %v122_v0, 0  ;;  %v94_v5 = vld [vmem:[%s8512_s4 + $0x10] sm:$0xff] }
   0xa   :  { %v108_v4 = vpack.c.bf16 %v93_v2, %v92_v1  ;;  %v95_v6 = vld [vmem:[%s8512_s4 + $0x18] sm:$0xff]  ;;  %v96_v7 = vld [vmem:[%s8512_s4 + $0x20] sm:$0xff]  ;;  %5375 = vmatpush3.bf16.msra.mxu0 %v157_v3  ;;  %v97_v9 = vld [vmem:[%s8512_s4 + $0x28] sm:$0xff] }
   0xb   :  { %v109_v8 = vpack.c.bf16 %v95_v6, %v94_v5  ;;  %v110_v10 = vpack.c.bf16 %v97_v9, %v96_v7  ;;  %v98_v11 = vld [vmem:[%s8512_s4 + $0x30] sm:$0xff]  ;;  %v99_v12 = vld [vmem:[%s8512_s4 + $0x38] sm:$0xff]  ;;  %v116_v15 = vld [vmem:[%s8514_s25] sm:$0xff] }
   0xc   :  { %5376 = vmatprep.mubr.msk.bf16.mxu0 %vm130_vm1, %v108_v4  ;;  %v256_v13 = vld [vmem:[%s8513_s5] sm:$0xf]  ;;  %v117_v16 = vld [vmem:[%s8514_s25 + $0x8] sm:$0xff]  ;;  %v118_v17 = vld [vmem:[%s8514_s25 + $0x10] sm:$0xff]  ;;  %v111_v23 = vpack.c.bf16 %v99_v12, %v98_v11  ;;  %s8515_s5 = sld [smem:[#allocation6_spill]] }
   0xd   :  { %5377 = vmatmul.mubr.msk.bf16.vlgmr.msra.gmra.mrb[0].mxu0 %vm130_vm1, %v109_v8  ;;  %5855 = vmatprep.subr.msk.bf16.mxu1 %vm155_vm0, %v256_v13  ;;  %v271_v14 = vsel %vm155_vm0, %v256_v13, 0  ;;  %v100_v18 = vld [vmem:[%s8512_s4 + $0x40] sm:$0xff]  ;;  %v101_v19 = vld [vmem:[%s8512_s4 + $0x48] sm:$0xff]  ;;  %v120_v20 = vpack.c.bf16 %v117_v16, %v116_v15  ;;  %v119_v21 = vld [vmem:[%s8514_s25 + $0x18] sm:$0xff] }
   0xe   :  { %5380 = vmatprep.mubr.msk.bf16.mxu0 %vm130_vm1, %v110_v10  ;;  %5393 = vmatpush3.bf16.msra.mxu1 %v271_v14  ;;  %v121_v22 = vpack.c.bf16 %v119_v21, %v118_v17  ;;  %v112_v24 = vpack.c.bf16 %v101_v19, %v100_v18  ;;  %v102_v25 = vld [vmem:[%s8512_s4 + $0x50] sm:$0xff]  ;;  %v103_v26 = vld [vmem:[%s8512_s4 + $0x58] sm:$0xff]  ;;  %v104_v27 = vld [vmem:[%s8512_s4 + $0x60] sm:$0xff] }
   0xf   :  { %5394 = vmatprep.mubr.msk.bf16.mxu1 %vm130_vm1, %v120_v20  ;;  %v105_v28 = vld [vmem:[%s8512_s4 + $0x68] sm:$0xff]  ;;  %v113_v29 = vpack.c.bf16 %v103_v26, %v102_v25  ;;  %v106_v31 = vld [vmem:[%s8512_s4 + $0x70] sm:$0xff]  ;;  %v107_v32 = vld [vmem:[%s8512_s4 + $0x78] sm:$0xff]  ;;  %s6284_s4 = smov 96  }
  0x10   :  { %v114_v30 = vpack.c.bf16 %v105_v28, %v104_v27  ;;  %v115_v33 = vpack.c.bf16 %v107_v32, %v106_v31  ;;  %v4925_v37 = vld [vmem:[%s8516_s6] ss:$0 sm:$0xff] }
  0x11   :  { %5395 = vmatmul.mubr.msk.bf16.vlgmr.msra.gmra.mrb[0].mxu1 %vm130_vm1, %v121_v22 }
  0x12   :  { %v5890_v34 = vld [vmem:[%s8515_s5] sm:$0xff]   ;;  %v5891_v35 = vld [vmem:[%s8515_s5 + $0x8] sm:$0xff]  }
  0x13   :  { %5398 = vmatprep.subr.bf16.mxu1 %v5890_v34 }
  0x14   :  { %5399 = vmatpush3.bf16.msra.mxu1 %v5890_v34 }
  0x15   :  { %5381 = vmatmul.mubr.msk.bf16.gmra.mrb[4].mxu0 %vm130_vm1, %v111_v23  ;;  %5400 = vmatprep.subr.bf16.mxu1 %v5891_v35 }
  0x16   :  { %5384 = vmatprep.mubr.msk.bf16.mxu0 %vm130_vm1, %v112_v24 }
  0x18   :  { %5401 = vmatpush3.bf16.msra.mxu1 %v5891_v35 }
  0x1d   :  { %5385 = vmatmul.mubr.msk.bf16.gmra.mrb[8].mxu0 %vm130_vm1, %v113_v29 }
  0x1e   :  { %5388 = vmatprep.mubr.msk.bf16.mxu0 %vm130_vm1, %v114_v30 }
  0x25   :  { %5389 = vmatmul.mubr.msk.bf16.gmra.mrb[12].mxu0 %vm130_vm1, %v115_v33 }
  0xe0   :  { %v5378_v36 = vpop.f32.mrb[0].mxu0 }
  0xe1   :  { %v193_v38 = vpop.f32.mrb[1].mxu0  ;;  %v6496_v44 = vadd.f32 %v5378_v36, %v4925_v37 }
  0xe2   :  { %v5379_v39 = vpop.f32.mrb[2].mxu0  ;;  %v6492_v42 = vadd.f32 %v4925_v37, %v193_v38 }
  0xe3   :  { %v6490_v40 = vadd.f32 %v5379_v39, %v4925_v37  ;;  %v196_v41 = vpop.f32.mrb[3].mxu0 }
  0xe4   :  { %v6494_v43 = vadd.f32 %v4925_v37, %v196_v41  ;;  %v6498_v45 = vpop.f32.mrb[0].mxu1 }
  0xe5   :  { %v6502_v47 = vpop.f32.mrb[1].mxu1  ;;  %v323_v48 = vpack.c.bf16 %v6490_v40, %v6496_v44 }
  0xe6   :  { %v322_v46 = vpack.c.bf16 %v6494_v43, %v6492_v42  ;;  %v6506_v49 = vpop.f32.mrb[2].mxu1 }
  0xe7   :  { %v6509_v51 = vpop.f32.mrb[3].mxu1 }
  0xe8   :  { %v5382_v50 = vpop.f32.mrb[4].mxu0  ;;  %5402 = vmatprep.mubr.msk.bf16.mxu1 %vm346_vm2, %v322_v46 }
  0xe9   :  { %v6511_v52 = vadd.f32 %v5382_v50, %v4925_v37  ;;  %v209_v53 = vpop.f32.mrb[5].mxu0  ;;  %5403 = vmatmul.mubr.msk.bf16.vlgmr.msra.gmra.mrb[4].mxu1 %vm346_vm2, %v323_v48 }
  0xea   :  { %v6514_v54 = vadd.f32 %v4925_v37, %v209_v53  ;;  %v5383_v55 = vpop.f32.mrb[6].mxu0 }
  0xeb   :  { %v6516_v56 = vadd.f32 %v5383_v55, %v4925_v37  ;;  %v212_v57 = vpop.f32.mrb[7].mxu0 }
  0xec   :  { %v6518_v58 = vadd.f32 %v4925_v37, %v212_v57 }
  0xed   :  { %v325_v59 = vpack.c.bf16 %v6516_v56, %v6511_v52 }
  0xee   :  { %v324_v60 = vpack.c.bf16 %v6518_v58, %v6514_v54 }
  0xf0   :  { %v5386_v61 = vpop.f32.mrb[8].mxu0  ;;  %5406 = vmatprep.mubr.msk.bf16.mxu1 %vm346_vm2, %v324_v60 }
  0xf1   :  { %v6525_v62 = vadd.f32 %v5386_v61, %v4925_v37  ;;  %v225_v63 = vpop.f32.mrb[9].mxu0  ;;  %5407 = vmatmul.mubr.msk.bf16.gmra.mrb[8].mxu1 %vm346_vm2, %v325_v59 }
  0xf2   :  { %v6528_v0 = vadd.f32 %v4925_v37, %v225_v63  ;;  %v5387_v1 = vpop.f32.mrb[10].mxu0 }
  0xf3   :  { %v6530_v2 = vadd.f32 %v5387_v1, %v4925_v37  ;;  %v228_v3 = vpop.f32.mrb[11].mxu0 }
  0xf4   :  { %v6532_v4 = vadd.f32 %v4925_v37, %v228_v3 }
  0xf5   :  { %v327_v5 = vpack.c.bf16 %v6530_v2, %v6525_v62 }
  0xf6   :  { %v326_v6 = vpack.c.bf16 %v6532_v4, %v6528_v0 }
  0xf8   :  { %v5390_v7 = vpop.f32.mrb[12].mxu0  ;;  %5410 = vmatprep.mubr.msk.bf16.mxu1 %vm346_vm2, %v326_v6 }
  0xf9   :  { %v6539_v8 = vadd.f32 %v5390_v7, %v4925_v37  ;;  %v241_v9 = vpop.f32.mrb[13].mxu0  ;;  %5411 = vmatmul.mubr.msk.bf16.gmra.mrb[12].mxu1 %vm346_vm2, %v327_v5 }
  0xfa   :  { %v6542_v10 = vadd.f32 %v4925_v37, %v241_v9  ;;  %v5391_v11 = vpop.f32.mrb[14].mxu0 }
  0xfb   :  { %v6544_v12 = vadd.f32 %v5391_v11, %v4925_v37  ;;  %v244_v13 = vpop.f32.mrb[15].mxu0 }
  0xfc   :  { %v6546_v14 = vadd.f32 %v4925_v37, %v244_v13 }
  0xfd   :  { %v329_v15 = vpack.c.bf16 %v6544_v12, %v6539_v8 }
  0xfe   :  { %v328_v16 = vpack.c.bf16 %v6546_v14, %v6542_v10 }
 0x100   :  { %5414 = vmatprep.mubr.msk.bf16.mxu1 %vm346_vm2, %v328_v16 }
 0x101   :  { %5415 = vmatmul.mubr.msk.bf16.gmra.mrb[16].mxu1 %vm346_vm2, %v329_v15 }
 0x1bc   :  { %v5404_v17 = vpop.f32.mrb[4].mxu1 }
 0x1bd   :  { %v405_v18 = vpop.f32.mrb[5].mxu1 }
 0x1be   :  { %v5405_v19 = vpop.f32.mrb[6].mxu1 }
 0x1bf   :  { %v6554_v20 = vpack.c.bf16 %v5405_v19, %v5404_v17  ;;  %v408_v21 = vpop.f32.mrb[7].mxu1 }
 0x1c0   :  { %v468_v22 = vpack.c.bf16 %v408_v21, %v405_v18 }
 0x1c2   :  { %484 = vrot.lane.b32.xlu0 %v468_v22, %s6284_s4  ;;  %5434 = vmatprep.mubr.msk.bf16.mxu0 %vm346_vm2, %v468_v22 }
 0x1c4   :  { %v5408_v23 = vpop.f32.mrb[8].mxu1 }
 0x1c5   :  { %v421_v24 = vpop.f32.mrb[9].mxu1 }
 0x1c6   :  { %486 = vrot.lane.b32.xlu0 %v6554_v20, %s6284_s4  ;;  %v5409_v25 = vpop.f32.mrb[10].mxu1 }
 0x1c7   :  { %v6560_v26 = vpack.c.bf16 %v5409_v25, %v5408_v23  ;;  %v424_v27 = vpop.f32.mrb[11].mxu1 }
 0x1c8   :  { %v6562_v28 = vpack.c.bf16 %v424_v27, %v421_v24 }
 0x1ca   :  { %488 = vrot.lane.b32.xlu1 %v6562_v28, %s6284_s4 }
 0x1cc   :  { %v5412_v29 = vpop.f32.mrb[12].mxu1 }
 0x1cd   :  { %v437_v30 = vpop.f32.mrb[13].mxu1 }
 0x1ce   :  { %490 = vrot.lane.b32.xlu1 %v6560_v26, %s6284_s4  ;;  %v5413_v31 = vpop.f32.mrb[14].mxu1 }
 0x1cf   :  { %v6568_v32 = vpack.c.bf16 %v5413_v31, %v5412_v29  ;;  %v440_v33 = vpop.f32.mrb[15].mxu1 }
 0x1d0   :  { %v6570_v34 = vpack.c.bf16 %v440_v33, %v437_v30 }
 0x1d2   :  { %494 = vrot.lane.b32.xlu1 %v6568_v32, %s6284_s4  ;;  %492 = vrot.lane.b32.xlu0 %v6570_v34, %s6284_s4 }
 0x1d4   :  { %v5416_v35 = vpop.f32.mrb[16].mxu1 }
 0x1d5   :  { %v453_v36 = vpop.f32.mrb[17].mxu1 }
 0x1d6   :  { %v5417_v37 = vpop.f32.mrb[18].mxu1 }
 0x1d7   :  { %v6576_v38 = vpack.c.bf16 %v5417_v37, %v5416_v35  ;;  %v456_v39 = vpop.f32.mrb[19].mxu1 }
 0x1d8   :  { %v6578_v41 = vpack.c.bf16 %v456_v39, %v453_v36 }
 0x1d9   :  { %498 = vrot.lane.b32.xlu1 %v6576_v38, %s6284_s4 }
 0x1da   :  { %496 = vrot.lane.b32.xlu0 %v6578_v41, %s6284_s4 }
 0x1dd   :  { %813 = vrot.lane.b32.xlu1 %v468_v22, %s6285_s27 }
 0x1e1   :  { %815 = vrot.lane.b32.xlu1 %v6554_v20, %s6285_s27 }
 0x234   :  { %v485_v46 = vpop.permute.xlu0 %484 }
 0x235   :  { %5856 = vmatprep.subr.msk.bf16.mxu0 %vm346_vm2, %v485_v46  ;;  %v525_v48 = vsel %vm346_vm2, %v485_v46, 0 }
 0x236   :  { %5419 = vmatpush3.bf16.xpose.msra.mxu0 %v525_v48 }
 0x238   :  { %v487_v50 = vpop.permute.xlu0 %486 }
 0x239   :  { %5857 = vmatprep.subr.msk.bf16.mxu0 %vm346_vm2, %v487_v50  ;;  %v528_v55 = vsel %vm346_vm2, %v487_v50, 0 }
 0x23c   :  { %v489_v53 = vpop.permute.xlu1 %488 }
 0x23d   :  { %v531_v59 = vsel %vm346_vm2, %v489_v53, 0 }
 0x23e   :  { %5421 = vmatpush3.bf16.xpose.msra.mxu0 %v528_v55 }
 0x23f   :  { %5858 = vmatprep.subr.msk.bf16.mxu0 %vm346_vm2, %v489_v53 }
 0x240   :  { %v491_v57 = vpop.permute.xlu1 %490 }
 0x241   :  { %v534_v1 = vsel %vm346_vm2, %v491_v57, 0 }
 0x244   :  { %v495_v60 = vpop.permute.xlu1 %494  ;;  %v493_v63 = vpop.permute.xlu0 %492 }
 0x245   :  { %v537_v6 = vsel %vm346_vm2, %v493_v63, 0  ;;  %v540_v9 = vsel %vm346_vm2, %v495_v60, 0 }
 0x246   :  { %5423 = vmatpush3.bf16.xpose.msra.mxu0 %v531_v59 }
 0x247   :  { %5859 = vmatprep.subr.msk.bf16.mxu0 %vm346_vm2, %v491_v57 }
 0x24b   :  { %v499_v61 = vpop.permute.xlu1 %498 }
 0x24c   :  { %v497_v7 = vpop.permute.xlu0 %496  ;;  %v546_v13 = vsel %vm346_vm2, %v499_v61, 0 }
 0x24d   :  { %v543_v11 = vsel %vm346_vm2, %v497_v7, 0 }
 0x24e   :  { %5425 = vmatpush3.bf16.xpose.msra.mxu0 %v534_v1 }
 0x24f   :  { %5860 = vmatprep.subr.msk.bf16.mxu0 %vm346_vm2, %v493_v63  ;;  %v814_v3 = vpop.permute.xlu1 %813 }
 0x250   :  { %5450 = vmatprep.subr.bf16.mxu1 %v814_v3 }
 0x251   :  { %5451 = vmatpush3.bf16.msra.mxu1 %v814_v3 }
 0x253   :  { %v816_v5 = vpop.permute.xlu1 %815 }
 0x254   :  { %5452 = vmatprep.subr.bf16.mxu1 %v816_v5 }
 0x255   :  { %5453 = vmatpush3.bf16.msra.mxu1 %v816_v5  ;;  %v74_v5 = vld [vmem:[%s8517_s29 + $0x10] sm:$0xff] }
 0x256   :  { %5427 = vmatpush3.bf16.xpose.msra.mxu0 %v537_v6 }
 0x257   :  { %5861 = vmatprep.subr.msk.bf16.mxu0 %vm346_vm2, %v495_v60 }
 0x25e   :  { %5429 = vmatpush3.bf16.xpose.msra.mxu0 %v540_v9 }
 0x25f   :  { %5862 = vmatprep.subr.msk.bf16.mxu0 %vm346_vm2, %v497_v7 }
 0x266   :  { %5431 = vmatpush3.bf16.xpose.msra.mxu0 %v543_v11 }
 0x267   :  { %5863 = vmatprep.subr.msk.bf16.mxu0 %vm346_vm2, %v499_v61 }
 0x26e   :  { %5433 = vmatpush3.bf16.xpose.msra.mxu0 %v546_v13 }
 0x275   :  { %5435 = vmatmul.mubr.msk.bf16.vlgmr.msra.gmra.mrb[16].mxu0 %vm346_vm2, %v6554_v20 }
 0x276   :  { %5438 = vmatprep.mubr.msk.bf16.mxu0 %vm346_vm2, %v6562_v28 }
 0x27d   :  { %5439 = vmatmul.mubr.msk.bf16.gmra.mrb[20].mxu0 %vm346_vm2, %v6560_v26 }
 0x27e   :  { %5442 = vmatprep.mubr.msk.bf16.mxu0 %vm346_vm2, %v6570_v34 }
 0x285   :  { %5443 = vmatmul.mubr.msk.bf16.gmra.mrb[24].mxu0 %vm346_vm2, %v6568_v32 }
 0x286   :  { %5446 = vmatprep.mubr.msk.bf16.mxu0 %vm346_vm2, %v6578_v41 }
 0x28d   :  { %5447 = vmatmul.mubr.msk.bf16.gmra.mrb[28].mxu0 %vm346_vm2, %v6576_v38 }
 0x348   :  { %v5436_v15 = vpop.f32.mrb[16].mxu0 }
 0x349   :  { %649 = vmax.xlane.f32.xlu0 %v5436_v15  ;;  %v582_v16 = vpop.f32.mrb[17].mxu0 }
 0x34a   :  { %v5437_v17 = vpop.f32.mrb[18].mxu0 }
 0x34b   :  { %v585_v18 = vpop.f32.mrb[19].mxu0 }
 0x34c   :  { %647 = vmax.xlane.f32.xlu1 %v585_v18 }
 0x34d   :  { %645 = vmax.xlane.f32.xlu0 %v582_v16 }
 0x350   :  { %v5440_v19 = vpop.f32.mrb[20].mxu0 }
 0x351   :  { %651 = vmax.xlane.f32.xlu0 %v5437_v17  ;;  %657 = vmax.xlane.f32.xlu1 %v5440_v19  ;;  %v598_v20 = vpop.f32.mrb[21].mxu0 }
 0x352   :  { %v5441_v21 = vpop.f32.mrb[22].mxu0 }
 0x353   :  { %v601_v22 = vpop.f32.mrb[23].mxu0 }
 0x355   :  { %653 = vmax.xlane.f32.xlu1 %v598_v20  ;;  %659 = vmax.xlane.f32.xlu0 %v5441_v21 }
 0x358   :  { %v6617_v23 = vpop.f32.mrb[24].mxu0 }
 0x359   :  { %655 = vmax.xlane.f32.xlu0 %v601_v22  ;;  %665 = vmax.xlane.f32.xlu1 %v6617_v23  ;;  %v6620_v24 = vpop.f32.mrb[25].mxu0 }
 0x35a   :  { %v6622_v25 = vpop.f32.mrb[26].mxu0 }
 0x35b   :  { %v6624_v27 = vpop.f32.mrb[27].mxu0 }
 0x35d   :  { %661 = vmax.xlane.f32.xlu1 %v6620_v24  ;;  %667 = vmax.xlane.f32.xlu0 %v6622_v25 }
 0x360   :  { %v6628_v29 = vpop.f32.mrb[28].mxu0 }
 0x361   :  { %663 = vmax.xlane.f32.xlu0 %v6624_v27  ;;  %v6631_v30 = vpop.f32.mrb[29].mxu0 }
 0x362   :  { %v6633_v31 = vpop.f32.mrb[30].mxu0 }
 0x363   :  { %v6635_v33 = vpop.f32.mrb[31].mxu0 }
 0x36e   :  { %819 = vrot.lane.b32.xlu1 %v6560_v26, %s6285_s27 }
 0x377   :  { %817 = vrot.lane.b32.xlu0 %v6562_v28, %s6285_s27 }
 0x392   :  { %673 = vmax.xlane.f32.xlu1 %v6628_v29 }
 0x396   :  { %669 = vmax.xlane.f32.xlu1 %v6631_v30  ;;  %675 = vmax.xlane.f32.xlu0 %v6633_v31 }
 0x39a   :  { %671 = vmax.xlane.f32.xlu0 %v6635_v33 }
 0x3a7   :  { %821 = vrot.lane.b32.xlu1 %v6570_v34, %s6285_s27 }
 0x3d6   :  { %v650_v35 = vpop.xlane.xlu0 %649 }
 0x3d7   :  { %v679_v36 = vsub.f32 %v5436_v15, %v650_v35  ;;  %v75_v35 = vld [vmem:[%s8517_s29 + $0x18] sm:$0xff] }
 0x3d9   :  { %v697_v37 = vmul.f32 1.442695, %v679_v36  ;;  %v648_v39 = vpop.xlane.xlu1 %647 }
 0x3da   :  { %v646_v46 = vpop.xlane.xlu0 %645  ;;  %v678_v48 = vsub.f32 %v585_v18, %v648_v39 }
 0x3db   :  { %5932 = vpow2.f32 %v697_v37  ;;  %v677_v26 = vsub.f32 %v582_v16, %v646_v46  ;;  %v72_v16 = vld [vmem:[%s8517_s29] sm:$0xff] }
 0x3dc   :  { %v695_v59 = vmul.f32 1.442695, %v678_v48 }
 0x3dd   :  { %v693_v28 = vmul.f32 1.442695, %v677_v26 }
 0x3de   :  { %v652_v50 = vpop.xlane.xlu0 %651  ;;  %v658_v53 = vpop.xlane.xlu1 %657 }
 0x3df   :  { %5934 = vpow2.f32 %v693_v28  ;;  %v680_v55 = vsub.f32 %v5437_v17, %v652_v50  ;;  %v683_v57 = vsub.f32 %v5440_v19, %v658_v53  ;;  %v76_v50 = vld [vmem:[%s8517_s29 + $0x20] sm:$0xff]  ;;  %v73_v53 = vld [vmem:[%s8517_s29 + $0x8] sm:$0xff] }
 0x3e1   :  { %v699_v60 = vmul.f32 1.442695, %v680_v55  ;;  %v705_v61 = vmul.f32 1.442695, %v683_v57 }
 0x3e2   :  { %v654_v63 = vpop.xlane.xlu1 %653  ;;  %v660_v1 = vpop.xlane.xlu0 %659 }
 0x3e3   :  { %5936 = vpow2.f32 %v699_v60  ;;  %v681_v34 = vsub.f32 %v598_v20, %v654_v63  ;;  %v684_v3 = vsub.f32 %v5441_v21, %v660_v1 }
 0x3e4   :  { %5938 = vpow2.f32 %v705_v61  ;;  %v77_v61 = vld [vmem:[%s8517_s29 + $0x28] sm:$0xff] }
 0x3e5   :  { %v5933_v6 = vpop.eup %5932  ;;  %5940 = vpow2.f32 %v695_v59  ;;  %v701_v7 = vmul.f32 1.442695, %v681_v34  ;;  %v707_v9 = vmul.f32 1.442695, %v684_v3  ;;  %v79_v34 = vld [vmem:[%s8517_s29 + $0x38] sm:$0xff] }
 0x3e6   :  { %v656_v11 = vpop.xlane.xlu0 %655  ;;  %v6650_v13 = vmul.f32 %v5933_v6, %v74_v5  ;;  %v666_v17 = vpop.xlane.xlu1 %665 }
 0x3e7   :  { %5942 = vpow2.f32 %v701_v7  ;;  %v682_v15 = vsub.f32 %v601_v22, %v656_v11  ;;  %v78_v22 = vld [vmem:[%s8517_s29 + $0x30] sm:$0xff] }
 0x3e8   :  { %745 = vadd.xlane.f32.xlu0 %v6650_v13  ;;  %5944 = vpow2.f32 %v707_v9  ;;  %v687_v9 = vsub.f32 %v6617_v23, %v666_v17 }
 0x3e9   :  { %v5935_v18 = vpop.eup %5934  ;;  %v703_v19 = vmul.f32 1.442695, %v682_v15 }
 0x3ea   :  { %v668_v20 = vpop.xlane.xlu0 %667  ;;  %v6656_v21 = vmul.f32 %v5935_v18, %v72_v16  ;;  %v662_v39 = vpop.xlane.xlu1 %661  ;;  %v713_v16 = vmul.f32 1.442695, %v687_v9 }
 0x3eb   :  { %5946 = vpow2.f32 %v703_v19  ;;  %v685_v7 = vsub.f32 %v6620_v24, %v662_v39  ;;  %v688_v18 = vsub.f32 %v6622_v25, %v668_v20 }
 0x3ec   :  { %741 = vadd.xlane.f32.xlu0 %v6656_v21 }
 0x3ed   :  { %v5937_v36 = vpop.eup %5936  ;;  %v709_v11 = vmul.f32 1.442695, %v685_v7  ;;  %v85_v7 = vld [vmem:[%s8517_s29 + $0x68] sm:$0xff] }
 0x3ee   :  { %v5939_v37 = vpop.eup %5938  ;;  %v664_v46 = vpop.xlane.xlu0 %663  ;;  %v6665_v26 = vmul.f32 %v5937_v36, %v75_v35 }
 0x3ef   :  { %v5941_v48 = vpop.eup %5940  ;;  %v6667_v28 = vmul.f32 %v5939_v37, %v78_v22  ;;  %v820_v1 = vpop.permute.xlu1 %819  ;;  %v686_v15 = vsub.f32 %v6624_v27, %v664_v46  ;;  %5948 = vpow2.f32 %v709_v11  ;;  %v86_v11 = vld [vmem:[%s8517_s29 + $0x70] sm:$0xff] }
 0x3f0   :  { %747 = vadd.xlane.f32.xlu0 %v6665_v26  ;;  %v6679_v60 = vmul.f32 %v5941_v48, %v73_v53  ;;  %5950 = vpow2.f32 %v713_v16 }
 0x3f1   :  { %v5943_v55 = vpop.eup %5942  ;;  %753 = vadd.xlane.f32.xlu1 %v6667_v28  ;;  %v711_v19 = vmul.f32 1.442695, %v686_v15 }
 0x3f2   :  { %v818_v57 = vpop.permute.xlu0 %817  ;;  %v6677_v59 = vmul.f32 %v5943_v55, %v76_v50  ;;  %v5945_v63 = vpop.eup %5944 }
 0x3f3   :  { %5454 = vmatprep.subr.bf16.mxu1 %v818_v57  ;;  %v6691_v6 = vmul.f32 %v5945_v63, %v79_v34  ;;  %5952 = vpow2.f32 %v711_v19  ;;  %v83_v63 = vld [vmem:[%s8517_s29 + $0x58] sm:$0xff] }
 0x3f4   :  { %5455 = vmatpush3.bf16.msra.mxu1 %v818_v57  ;;  %743 = vadd.xlane.f32.xlu0 %v6679_v60 }
 0x3f5   :  { %v5947_v3 = vpop.eup %5946  ;;  %749 = vadd.xlane.f32.xlu1 %v6677_v59  ;;  %5456 = vmatprep.subr.bf16.mxu1 %v820_v1 }
 0x3f6   :  { %v6689_v5 = vmul.f32 %v5947_v3, %v77_v61  ;;  %v84_v61 = vld [vmem:[%s8517_s29 + $0x60] sm:$0xff] }
 0x3f8   :  { %5457 = vmatpush3.bf16.msra.mxu1 %v820_v1  ;;  %751 = vadd.xlane.f32.xlu0 %v6689_v5 }
 0x3f9   :  { %755 = vadd.xlane.f32.xlu1 %v6691_v6  ;;  %v5949_v39 = vpop.eup %5948 }
 0x3fa   :  { %v5951_v48 = vpop.eup %5950 }
 0x3fd   :  { %v5953_v50 = vpop.eup %5952 }
 0x40a   :  { %825 = vrot.lane.b32.xlu1 %v6578_v41, %s6285_s27  ;;  %v715_v41 = vmul.f32 1.442695, %v688_v18 }
 0x40c   :  { %5954 = vpow2.f32 %v715_v41 }
 0x40e   :  { %827 = vrot.lane.b32.xlu1 %v6576_v38, %s6285_s27  ;;  %823 = vrot.lane.b32.xlu0 %v6568_v32, %s6285_s27 }
 0x416   :  { %v5955_v55 = vpop.eup %5954 }
 0x417   :  { %v6735_v3 = vmul.f32 %v5955_v55, %v83_v63 }
 0x41f   :  { %v674_v35 = vpop.xlane.xlu1 %673 }
 0x420   :  { %v691_v38 = vsub.f32 %v6628_v29, %v674_v35  ;;  %v80_v29 = vld [vmem:[%s8517_s29 + $0x40] sm:$0xff]  ;;  %v87_v35 = vld [vmem:[%s8517_s29 + $0x78] sm:$0xff] }
 0x422   :  { %v721_v27 = vmul.f32 1.442695, %v691_v38 }
 0x423   :  { %v670_v22 = vpop.xlane.xlu1 %669  ;;  %v676_v32 = vpop.xlane.xlu0 %675 }
 0x424   :  { %v689_v24 = vsub.f32 %v6631_v30, %v670_v22  ;;  %v692_v17 = vsub.f32 %v6633_v31, %v676_v32  ;;  %v6712_v30 = vmul.f32 %v5949_v39, %v80_v29  ;;  %v82_v31 = vld [vmem:[%s8517_s29 + $0x50] sm:$0xff] }
 0x425   :  { %v6721_v53 = vmul.f32 %v5951_v48, %v82_v31 }
 0x426   :  { %v717_v23 = vmul.f32 1.442695, %v689_v24  ;;  %v723_v20 = vmul.f32 1.442695, %v692_v17 }
 0x427   :  { %v822_v36 = vpop.permute.xlu1 %821  ;;  %v672_v37 = vpop.xlane.xlu0 %671 }
 0x428   :  { %5956 = vpow2.f32 %v717_v23  ;;  %v690_v25 = vsub.f32 %v6635_v33, %v672_v37  ;;  %5458 = vmatprep.subr.bf16.mxu1 %v822_v36  ;;  %v81_v33 = vld [vmem:[%s8517_s29 + $0x48] sm:$0xff] }
 0x429   :  { %5459 = vmatpush3.bf16.msra.mxu1 %v822_v36  ;;  %5958 = vpow2.f32 %v721_v27  ;;  %v6723_v57 = vmul.f32 %v5953_v50, %v81_v33 }
 0x42a   :  { %v719_v46 = vmul.f32 1.442695, %v690_v25 }
 0x42c   :  { %5960 = vpow2.f32 %v719_v46 }
 0x42d   :  { %757 = vadd.xlane.f32.xlu0 %v6712_v30  ;;  %5962 = vpow2.f32 %v723_v20 }
 0x431   :  { %761 = vadd.xlane.f32.xlu0 %v6721_v53 }
 0x432   :  { %v5957_v1 = vpop.eup %5956  ;;  %759 = vadd.xlane.f32.xlu1 %v6723_v57 }
 0x433   :  { %v6733_v34 = vmul.f32 %v5957_v1, %v84_v61  ;;  %v5959_v9 = vpop.eup %5958 }
 0x434   :  { %v6747_v19 = vmul.f32 %v5959_v9, %v86_v11 }
 0x435   :  { %763 = vadd.xlane.f32.xlu0 %v6735_v3 }
 0x436   :  { %v5961_v15 = vpop.eup %5960  ;;  %765 = vadd.xlane.f32.xlu1 %v6733_v34 }
 0x437   :  { %v6745_v16 = vmul.f32 %v5961_v15, %v85_v7  ;;  %v5963_v18 = vpop.eup %5962 }
 0x438   :  { %v6754_v41 = vmul.f32 %v5963_v18, %v87_v35 }
 0x439   :  { %767 = vadd.xlane.f32.xlu0 %v6745_v16 }
 0x43a   :  { %769 = vadd.xlane.f32.xlu1 %v6747_v19 }
 0x43d   :  { %771 = vadd.xlane.f32.xlu0 %v6754_v41 }
 0x475   :  { %v746_v38 = vpop.xlane.xlu0 %745 }
 0x479   :  { %v742_v22 = vpop.xlane.xlu0 %741 }
 0x47a   :  { %5964 = vrcp.f32 %v742_v22 }
 0x47d   :  { %v748_v32 = vpop.xlane.xlu0 %747 }
 0x47e   :  { %v754_v24 = vpop.xlane.xlu1 %753 }
 0x481   :  { %v744_v23 = vpop.xlane.xlu0 %743 }
 0x482   :  { %v750_v17 = vpop.xlane.xlu1 %749  ;;  %5966 = vrcp.f32 %v744_v23 }
 0x483   :  { %5968 = vrcp.f32 %v748_v32 }
 0x484   :  { %5970 = vrcp.f32 %v746_v38  ;;  %v5965_v39 = vpop.eup %5964 }
 0x485   :  { %5972 = vrcp.f32 %v750_v17  ;;  %v752_v27 = vpop.xlane.xlu0 %751  ;;  %v789_v46 = vmul.f32 %v5965_v39, %v6656_v21 }
 0x486   :  { %v756_v36 = vpop.xlane.xlu1 %755  ;;  %5974 = vrcp.f32 %v752_v27 }
 0x487   :  { %5976 = vrcp.f32 %v756_v36 }
 0x488   :  { %5978 = vrcp.f32 %v754_v24 }
 0x489   :  { %v824_v37 = vpop.permute.xlu0 %823 }
 0x48a   :  { %v826_v25 = vpop.permute.xlu1 %825  ;;  %5460 = vmatprep.subr.bf16.mxu1 %v824_v37 }
 0x48b   :  { %5461 = vmatpush3.bf16.msra.mxu1 %v824_v37 }
 0x48c   :  { %v5967_v29 = vpop.eup %5966  ;;  %5462 = vmatprep.subr.bf16.mxu1 %v826_v25 }
 0x48d   :  { %v5969_v20 = vpop.eup %5968  ;;  %v790_v48 = vmul.f32 %v5967_v29, %v6679_v60 }
 0x48e   :  { %v5971_v31 = vpop.eup %5970  ;;  %v828_v33 = vpop.permute.xlu1 %827  ;;  %v792_v63 = vmul.f32 %v5969_v20, %v6665_v26 }
 0x48f   :  { %v5973_v50 = vpop.eup %5972  ;;  %5463 = vmatpush3.bf16.msra.mxu1 %v826_v25  ;;  %v805_v55 = vpack.c.bf16 %v790_v48, %v789_v46  ;;  %v791_v7 = vmul.f32 %v5971_v31, %v6650_v13 }
 0x490   :  { %v5975_v61 = vpop.eup %5974  ;;  %5464 = vmatprep.subr.bf16.mxu1 %v828_v33  ;;  %v793_v9 = vmul.f32 %v5973_v50, %v6677_v59 }
 0x491   :  { %5466 = vmatprep.mubr.bf16.mxu1 %v805_v55  ;;  %v794_v1 = vmul.f32 %v5975_v61, %v6689_v5  ;;  %v806_v21 = vpack.c.bf16 %v792_v63, %v791_v7  ;;  %v5977_v11 = vpop.eup %5976 }
 0x492   :  { %v5979_v15 = vpop.eup %5978  ;;  %v796_v18 = vmul.f32 %v5977_v11, %v6691_v6 }
 0x493   :  { %5465 = vmatpush3.bf16.msra.mxu1 %v828_v33  ;;  %v807_v60 = vpack.c.bf16 %v794_v1, %v793_v9  ;;  %v795_v35 = vmul.f32 %v5979_v15, %v6667_v28 }
 0x495   :  { %v808_v26 = vpack.c.bf16 %v796_v18, %v795_v35 }
 0x496   :  { %5467 = vmatmul.mubr.bf16.vlgmr.msra.gmra.mrb[20].mxu1 %v806_v21 }
 0x497   :  { %5470 = vmatprep.mubr.bf16.mxu1 %v807_v60 }
 0x49e   :  { %5471 = vmatmul.mubr.bf16.gmra.mrb[24].mxu1 %v808_v26 }
 0x4ba   :  { %v758_v38 = vpop.xlane.xlu0 %757 }
 0x4bb   :  { %5980 = vrcp.f32 %v758_v38 }
 0x4be   :  { %v762_v5 = vpop.xlane.xlu0 %761 }
 0x4bf   :  { %v760_v22 = vpop.xlane.xlu1 %759 }
 0x4c0   :  { %5982 = vrcp.f32 %v760_v22 }
 0x4c1   :  { %5984 = vrcp.f32 %v762_v5 }
 0x4c2   :  { %v764_v13 = vpop.xlane.xlu0 %763 }
 0x4c3   :  { %v766_v59 = vpop.xlane.xlu1 %765  ;;  %5986 = vrcp.f32 %v764_v13 }
 0x4c4   :  { %5988 = vrcp.f32 %v766_v59 }
 0x4c5   :  { %v5981_v23 = vpop.eup %5980 }
 0x4c6   :  { %v768_v32 = vpop.xlane.xlu0 %767  ;;  %v797_v27 = vmul.f32 %v5981_v23, %v6712_v30 }
 0x4c7   :  { %v770_v24 = vpop.xlane.xlu1 %769  ;;  %5990 = vrcp.f32 %v768_v32 }
 0x4c8   :  { %5992 = vrcp.f32 %v770_v24 }
 0x4ca   :  { %v5983_v6 = vpop.eup %5982  ;;  %v772_v17 = vpop.xlane.xlu0 %771 }
 0x4cb   :  { %v5985_v28 = vpop.eup %5984  ;;  %5994 = vrcp.f32 %v772_v17  ;;  %v798_v36 = vmul.f32 %v5983_v6, %v6723_v57 }
 0x4cc   :  { %v799_v25 = vmul.f32 %v5985_v28, %v6721_v53 }
 0x4cd   :  { %v5987_v37 = vpop.eup %5986  ;;  %v809_v39 = vpack.c.bf16 %v798_v36, %v797_v27 }
 0x4ce   :  { %v800_v29 = vmul.f32 %v5987_v37, %v6735_v3  ;;  %v5989_v20 = vpop.eup %5988 }
 0x4cf   :  { %5474 = vmatprep.mubr.bf16.mxu1 %v809_v39  ;;  %v801_v31 = vmul.f32 %v5989_v20, %v6733_v34 }
 0x4d0   :  { %v810_v46 = vpack.c.bf16 %v800_v29, %v799_v25 }
 0x4d1   :  { %v5991_v48 = vpop.eup %5990 }
 0x4d2   :  { %5475 = vmatmul.mubr.bf16.gmra.mrb[28].mxu1 %v810_v46  ;;  %v802_v50 = vmul.f32 %v5991_v48, %v6745_v16  ;;  %v5993_v33 = vpop.eup %5992 }
 0x4d3   :  { %v803_v57 = vmul.f32 %v5993_v33, %v6747_v19 }
 0x4d4   :  { %v811_v55 = vpack.c.bf16 %v802_v50, %v801_v31 }
 0x4d5   :  { %v5995_v30 = vpop.eup %5994 }
 0x4d6   :  { %5478 = vmatprep.mubr.bf16.mxu1 %v811_v55  ;;  %v804_v61 = vmul.f32 %v5995_v30, %v6754_v41 }
 0x4d8   :  { %v812_v53 = vpack.c.bf16 %v804_v61, %v803_v57 }
 0x4da   :  { %5479 = vmatmul.mubr.bf16.gmra.mrb[32].mxu1 %v812_v53 }
 0x569   :  { %v5468_v3 = vpop.f32.mrb[20].mxu1 }
 0x56a   :  { %v871_v63 = vpop.f32.mrb[21].mxu1  ;;  %v6777_v34 = vadd.f32 %v5468_v3, %v6496_v44 }
 0x56b   :  { %v6774_v1 = vadd.f32 %v871_v63, %v6492_v42  ;;  %v5469_v7 = vpop.f32.mrb[22].mxu1 }
 0x56c   :  { %v874_v9 = vpop.f32.mrb[23].mxu1  ;;  %v6785_v41 = vadd.f32 %v5469_v7, %v6490_v40  ;;  %v956_v11 = vsel %vm346_vm2, %v6777_v34, 0.0 }
 0x56d   :  { %v6780_v16 = vadd.f32 %v874_v9, %v6494_v43  ;;  %v950_v19 = vsel %vm346_vm2, %v6774_v1, 0.0 }
 0x56e   :  { %951 = vadd.xlane.f32.xlu1 %v950_v19  ;;  %v959_v15 = vsel %vm346_vm2, %v6785_v41, 0.0 }
 0x56f   :  { %v953_v21 = vsel %vm346_vm2, %v6780_v16, 0.0 }
 0x570   :  { %954 = vadd.xlane.f32.xlu0 %v953_v21 }
 0x571   :  { %v5472_v42 = vpop.f32.mrb[24].mxu1 }
 0x572   :  { %957 = vadd.xlane.f32.xlu1 %v956_v11  ;;  %v887_v44 = vpop.f32.mrb[25].mxu1  ;;  %v6797_v18 = vadd.f32 %v5472_v42, %v6511_v52 }
 0x573   :  { %v6792_v43 = vadd.f32 %v887_v44, %v6514_v54  ;;  %v5473_v60 = vpop.f32.mrb[26].mxu1 }
 0x574   :  { %960 = vadd.xlane.f32.xlu0 %v959_v15  ;;  %v890_v40 = vpop.f32.mrb[27].mxu1  ;;  %v6805_v38 = vadd.f32 %v5473_v60, %v6516_v56  ;;  %v968_v5 = vsel %vm346_vm2, %v6797_v18, 0.0 }
 0x575   :  { %v6800_v35 = vadd.f32 %v890_v40, %v6518_v58  ;;  %v962_v26 = vsel %vm346_vm2, %v6792_v43, 0.0 }
 0x576   :  { %963 = vadd.xlane.f32.xlu1 %v962_v26  ;;  %v971_v52 = vsel %vm346_vm2, %v6805_v38, 0.0 }
 0x577   :  { %v965_v54 = vsel %vm346_vm2, %v6800_v35, 0.0 }
 0x578   :  { %966 = vadd.xlane.f32.xlu0 %v965_v54 }
 0x57a   :  { %969 = vadd.xlane.f32.xlu1 %v968_v5 }
 0x57c   :  { %972 = vadd.xlane.f32.xlu0 %v971_v52 }
 0x5a5   :  { %v5476_v58 = vpop.f32.mrb[28].mxu1 }
 0x5a6   :  { %v903_v22 = vpop.f32.mrb[29].mxu1  ;;  %v6817_v32 = vadd.f32 %v5476_v58, %v6525_v62 }
 0x5a7   :  { %v6814_v13 = vadd.f32 %v903_v22, %v6528_v0  ;;  %v5477_v59 = vpop.f32.mrb[30].mxu1 }
 0x5a8   :  { %v906_v56 = vpop.f32.mrb[31].mxu1  ;;  %v6825_v6 = vadd.f32 %v5477_v59, %v6530_v2  ;;  %v980_v28 = vsel %vm346_vm2, %v6817_v32, 0.0 }
 0x5a9   :  { %v6820_v24 = vadd.f32 %v906_v56, %v6532_v4  ;;  %v974_v23 = vsel %vm346_vm2, %v6814_v13, 0.0 }
 0x5aa   :  { %975 = vadd.xlane.f32.xlu1 %v974_v23  ;;  %v983_v36 = vsel %vm346_vm2, %v6825_v6, 0.0 }
 0x5ab   :  { %v977_v17 = vsel %vm346_vm2, %v6820_v24, 0.0 }
 0x5ac   :  { %978 = vadd.xlane.f32.xlu0 %v977_v17  ;;  %v5893_v17 = vld [vmem:[%s8484_s9 + $0x8] sm:$0xff]  }
 0x5ad   :  { %v5480_v0 = vpop.f32.mrb[32].mxu1 }
 0x5ae   :  { %981 = vadd.xlane.f32.xlu1 %v980_v28  ;;  %v919_v62 = vpop.f32.mrb[33].mxu1  ;;  %v6837_v37 = vadd.f32 %v5480_v0, %v6539_v8 }
 0x5af   :  { %v6832_v4 = vadd.f32 %v919_v62, %v6542_v10  ;;  %v5481_v27 = vpop.f32.mrb[34].mxu1 }
 0x5b0   :  { %984 = vadd.xlane.f32.xlu0 %v983_v36  ;;  %v922_v2 = vpop.f32.mrb[35].mxu1  ;;  %v6845_v29 = vadd.f32 %v5481_v27, %v6544_v12  ;;  %v992_v20 = vsel %vm346_vm2, %v6837_v37, 0.0 }
 0x5b1   :  { %v6840_v39 = vadd.f32 %v922_v2, %v6546_v14  ;;  %v986_v25 = vsel %vm346_vm2, %v6832_v4, 0.0 }
 0x5b2   :  { %987 = vadd.xlane.f32.xlu1 %v986_v25  ;;  %v995_v8 = vsel %vm346_vm2, %v6845_v29, 0.0 }
 0x5b3   :  { %v989_v10 = vsel %vm346_vm2, %v6840_v39, 0.0 }
 0x5b4   :  { %990 = vadd.xlane.f32.xlu0 %v989_v10 }
 0x5b6   :  { %993 = vadd.xlane.f32.xlu1 %v992_v20 }
 0x5b8   :  { %996 = vadd.xlane.f32.xlu0 %v995_v8 }
 0x5fb   :  { %v952_v14 = vpop.xlane.xlu1 %951 }
 0x5fc   :  { %v999_v46 = vmul.f32 0.03125, %v952_v14 }
 0x5fd   :  { %v955_v48 = vpop.xlane.xlu0 %954 }
 0x5fe   :  { %v6854_v31 = vsub.f32 %v6774_v1, %v999_v46  ;;  %v1000_v12 = vmul.f32 0.03125, %v955_v48 }
 0x5ff   :  { %v958_v50 = vpop.xlane.xlu1 %957 }
 0x600   :  { %v6857_v33 = vsub.f32 %v6780_v16, %v1000_v12  ;;  %v1001_v55 = vmul.f32 0.03125, %v958_v50  ;;  %v1031_v30 = vmul.f32 %v6854_v31, %v6854_v31 }
 0x601   :  { %v961_v57 = vpop.xlane.xlu0 %960 }
 0x602   :  { %v6862_v61 = vsub.f32 %v6777_v34, %v1001_v55  ;;  %v1002_v53 = vmul.f32 0.03125, %v961_v57  ;;  %v1047_v3 = vsel %vm346_vm2, %v1031_v30, 0.0  ;;  %v1032_v63 = vmul.f32 %v6857_v33, %v6857_v33 }
 0x603   :  { %v964_v1 = vpop.xlane.xlu1 %963  ;;  %1048 = vadd.xlane.f32.xlu1 %v1047_v3 }
 0x604   :  { %v6868_v7 = vsub.f32 %v6785_v41, %v1002_v53  ;;  %v1003_v9 = vmul.f32 0.03125, %v964_v1  ;;  %v1050_v16 = vsel %vm346_vm2, %v1032_v63, 0.0  ;;  %v1033_v19 = vmul.f32 %v6862_v61, %v6862_v61 }
 0x605   :  { %1051 = vadd.xlane.f32.xlu0 %v1050_v16  ;;  %v967_v34 = vpop.xlane.xlu0 %966 }
 0x606   :  { %v6874_v21 = vsub.f32 %v6792_v43, %v1003_v9  ;;  %v1004_v42 = vmul.f32 0.03125, %v967_v34  ;;  %v1053_v11 = vsel %vm346_vm2, %v1033_v19, 0.0  ;;  %v1034_v44 = vmul.f32 %v6868_v7, %v6868_v7 }
 0x607   :  { %v970_v60 = vpop.xlane.xlu1 %969  ;;  %1054 = vadd.xlane.f32.xlu1 %v1053_v11 }
 0x608   :  { %v6880_v41 = vsub.f32 %v6800_v35, %v1004_v42  ;;  %v1005_v15 = vmul.f32 0.03125, %v970_v60  ;;  %v1056_v40 = vsel %vm346_vm2, %v1034_v44, 0.0  ;;  %v1035_v26 = vmul.f32 %v6874_v21, %v6874_v21 }
 0x609   :  { %1057 = vadd.xlane.f32.xlu0 %v1056_v40  ;;  %v973_v43 = vpop.xlane.xlu0 %972 }
 0x60a   :  { %v6886_v54 = vsub.f32 %v6797_v18, %v1005_v15  ;;  %v1006_v5 = vmul.f32 0.03125, %v973_v43  ;;  %v1059_v52 = vsel %vm346_vm2, %v1035_v26, 0.0  ;;  %v1036_v58 = vmul.f32 %v6880_v41, %v6880_v41  ;;  %v5895_v43 = vld [vmem:[%s8485_s11 + $0x8] sm:$0xff]  }
 0x60b   :  { %1060 = vadd.xlane.f32.xlu1 %v1059_v52 }
 0x60c   :  { %v6892_v35 = vsub.f32 %v6805_v38, %v1006_v5  ;;  %v1062_v22 = vsel %vm346_vm2, %v1036_v58, 0.0  ;;  %v1037_v59 = vmul.f32 %v6886_v54, %v6886_v54  ;;  %v5892_v38 = vld [vmem:[%s8484_s9] sm:$0xff]  }
 0x60d   :  { %1063 = vadd.xlane.f32.xlu0 %v1062_v22  ;;  %5482 = vmatprep.subr.bf16.mxu1 %v5892_v38 }
 0x60e   :  { %v1065_v56 = vsel %vm346_vm2, %v1037_v59, 0.0  ;;  %v1038_v18 = vmul.f32 %v6892_v35, %v6892_v35  ;;  %5483 = vmatpush3.bf16.msra.mxu1 %v5892_v38 }
 0x60f   :  { %1066 = vadd.xlane.f32.xlu1 %v1065_v56  ;;  %5484 = vmatprep.subr.bf16.mxu1 %v5893_v17 }
 0x610   :  { %v1068_v23 = vsel %vm346_vm2, %v1038_v18, 0.0 }
 0x611   :  { %1069 = vadd.xlane.f32.xlu0 %v1068_v23 }
 0x612   :  { %5485 = vmatpush3.bf16.msra.mxu1 %v5893_v17 }
 0x637   :  { %v976_v0 = vpop.xlane.xlu1 %975 }
 0x638   :  { %v1007_v28 = vmul.f32 0.03125, %v976_v0 }
 0x639   :  { %v979_v62 = vpop.xlane.xlu0 %978 }
 0x63a   :  { %v6908_v27 = vsub.f32 %v6814_v13, %v1007_v28  ;;  %v1008_v36 = vmul.f32 0.03125, %v979_v62 }
 0x63b   :  { %v982_v2 = vpop.xlane.xlu1 %981 }
 0x63c   :  { %v6911_v25 = vsub.f32 %v6820_v24, %v1008_v36  ;;  %v1009_v10 = vmul.f32 0.03125, %v982_v2  ;;  %v1039_v20 = vmul.f32 %v6908_v27, %v6908_v27 }
 0x63d   :  { %v985_v8 = vpop.xlane.xlu0 %984 }
 0x63e   :  { %v6916_v14 = vsub.f32 %v6817_v32, %v1009_v10  ;;  %v1010_v46 = vmul.f32 0.03125, %v985_v8  ;;  %v1071_v48 = vsel %vm346_vm2, %v1039_v20, 0.0  ;;  %v1040_v13 = vmul.f32 %v6911_v25, %v6911_v25 }
 0x63f   :  { %1072 = vadd.xlane.f32.xlu1 %v1071_v48  ;;  %v988_v12 = vpop.xlane.xlu1 %987 }
 0x640   :  { %v6922_v50 = vsub.f32 %v6825_v6, %v1010_v46  ;;  %v1011_v24 = vmul.f32 0.03125, %v988_v12  ;;  %v1074_v55 = vsel %vm346_vm2, %v1040_v13, 0.0  ;;  %v1041_v30 = vmul.f32 %v6916_v14, %v6916_v14 }
 0x641   :  { %1075 = vadd.xlane.f32.xlu0 %v1074_v55  ;;  %v991_v32 = vpop.xlane.xlu0 %990 }
 0x642   :  { %v6928_v57 = vsub.f32 %v6832_v4, %v1011_v24  ;;  %v1012_v53 = vmul.f32 0.03125, %v991_v32  ;;  %v1077_v3 = vsel %vm346_vm2, %v1041_v30, 0.0  ;;  %v1042_v63 = vmul.f32 %v6922_v50, %v6922_v50 }
 0x643   :  { %1078 = vadd.xlane.f32.xlu1 %v1077_v3  ;;  %v994_v6 = vpop.xlane.xlu1 %993 }
 0x644   :  { %v6934_v1 = vsub.f32 %v6840_v39, %v1012_v53  ;;  %v1013_v9 = vmul.f32 0.03125, %v994_v6  ;;  %v1080_v16 = vsel %vm346_vm2, %v1042_v63, 0.0  ;;  %v1043_v19 = vmul.f32 %v6928_v57, %v6928_v57 }
 0x645   :  { %1081 = vadd.xlane.f32.xlu0 %v1080_v16  ;;  %v997_v4 = vpop.xlane.xlu0 %996 }
 0x646   :  { %v6940_v34 = vsub.f32 %v6837_v37, %v1013_v9  ;;  %v1014_v42 = vmul.f32 0.03125, %v997_v4  ;;  %v1083_v11 = vsel %vm346_vm2, %v1043_v19, 0.0  ;;  %v1044_v44 = vmul.f32 %v6934_v1, %v6934_v1 }
 0x647   :  { %1084 = vadd.xlane.f32.xlu1 %v1083_v11 }
 0x648   :  { %v6946_v39 = vsub.f32 %v6845_v29, %v1014_v42  ;;  %v1086_v60 = vsel %vm346_vm2, %v1044_v44, 0.0  ;;  %v1045_v15 = vmul.f32 %v6940_v34, %v6940_v34  ;;  %v5894_v29 = vld [vmem:[%s8485_s11] sm:$0xff]  }
 0x649   :  { %1087 = vadd.xlane.f32.xlu0 %v1086_v60  ;;  %5502 = vmatprep.subr.bf16.mxu0 %v5894_v29 }
 0x64a   :  { %v1089_v40 = vsel %vm346_vm2, %v1045_v15, 0.0  ;;  %v1046_v37 = vmul.f32 %v6946_v39, %v6946_v39  ;;  %5503 = vmatpush3.bf16.msra.mxu0 %v5894_v29 }
 0x64b   :  { %1090 = vadd.xlane.f32.xlu1 %v1089_v40  ;;  %5504 = vmatprep.subr.bf16.mxu0 %v5895_v43 }
 0x64c   :  { %v1092_v26 = vsel %vm346_vm2, %v1046_v37, 0.0 }
 0x64d   :  { %1093 = vadd.xlane.f32.xlu0 %v1092_v26 }
 0x64e   :  { %5505 = vmatpush3.bf16.msra.mxu0 %v5895_v43 }
 0x690   :  { %v1049_v5 = vpop.xlane.xlu1 %1048 }
 0x691   :  { %v1095_v52 = vmul.f32 0.03125, %v1049_v5 }
 0x692   :  { %v1052_v58 = vpop.xlane.xlu0 %1051 }
 0x693   :  { %v1111_v22 = vadd.f32 1e-06, %v1095_v52  ;;  %v1096_v59 = vmul.f32 0.03125, %v1052_v58 }
 0x694   :  { %v1055_v56 = vpop.xlane.xlu1 %1054 }
 0x695   :  { %5996 = vrsqrt.f32 %v1111_v22  ;;  %v1112_v18 = vadd.f32 1e-06, %v1096_v59  ;;  %v1097_v23 = vmul.f32 0.03125, %v1055_v56 }
 0x696   :  { %v1058_v38 = vpop.xlane.xlu0 %1057 }
 0x697   :  { %5998 = vrsqrt.f32 %v1112_v18  ;;  %v1113_v17 = vadd.f32 1e-06, %v1097_v23  ;;  %v1098_v0 = vmul.f32 0.03125, %v1058_v38 }
 0x698   :  { %v1061_v28 = vpop.xlane.xlu1 %1060 }
 0x699   :  { %6000 = vrsqrt.f32 %v1113_v17  ;;  %v1114_v62 = vadd.f32 1e-06, %v1098_v0  ;;  %v1099_v36 = vmul.f32 0.03125, %v1061_v28 }
 0x69a   :  { %v1064_v2 = vpop.xlane.xlu0 %1063 }
 0x69b   :  { %6002 = vrsqrt.f32 %v1114_v62  ;;  %v1115_v10 = vadd.f32 1e-06, %v1099_v36  ;;  %v1100_v20 = vmul.f32 0.03125, %v1064_v2 }
 0x69c   :  { %v1067_v8 = vpop.xlane.xlu1 %1066 }
 0x69d   :  { %6004 = vrsqrt.f32 %v1115_v10  ;;  %v1116_v46 = vadd.f32 1e-06, %v1100_v20  ;;  %v1101_v48 = vmul.f32 0.03125, %v1067_v8 }
 0x69e   :  { %v1070_v13 = vpop.xlane.xlu0 %1069 }
 0x69f   :  { %v5997_v12 = vpop.eup %5996  ;;  %6006 = vrsqrt.f32 %v1116_v46  ;;  %v1117_v24 = vadd.f32 1e-06, %v1101_v48  ;;  %v1102_v55 = vmul.f32 0.03125, %v1070_v13 }
 0x6a0   :  { %v6962_v53 = vmul.f32 %v5997_v12, %v6854_v31 }
 0x6a1   :  { %v5999_v30 = vpop.eup %5998  ;;  %6008 = vrsqrt.f32 %v1117_v24  ;;  %v1118_v32 = vadd.f32 1e-06, %v1102_v55 }
 0x6a2   :  { %v6965_v3 = vmul.f32 %v5999_v30, %v6857_v33 }
 0x6a3   :  { %v6001_v63 = vpop.eup %6000  ;;  %6010 = vrsqrt.f32 %v1118_v32 }
 0x6a4   :  { %v1159_v6 = vpack.c.bf16 %v6965_v3, %v6962_v53  ;;  %v6970_v16 = vmul.f32 %v6001_v63, %v6862_v61 }
 0x6a5   :  { %v6003_v9 = vpop.eup %6002 }
 0x6a6   :  { %v6973_v19 = vmul.f32 %v6003_v9, %v6868_v7  ;;  %5486 = vmatprep.mubr.msk.bf16.mxu1 %vm346_vm2, %v1159_v6 }
 0x6a7   :  { %v6005_v4 = vpop.eup %6004 }
 0x6a8   :  { %v1160_v31 = vpack.c.bf16 %v6973_v19, %v6970_v16  ;;  %v6980_v42 = vmul.f32 %v6005_v4, %v6874_v21 }
 0x6a9   :  { %v6007_v33 = vpop.eup %6006 }
 0x6aa   :  { %5487 = vmatmul.mubr.msk.bf16.vlgmr.msra.gmra.mrb[36].mxu1 %vm346_vm2, %v1160_v31  ;;  %v6983_v11 = vmul.f32 %v6007_v33, %v6880_v41  ;;  %v5897_v33 = vld [vmem:[%s8485_s11 + $0x18] sm:$0xff]  }
 0x6ab   :  { %v6009_v61 = vpop.eup %6008 }
 0x6ac   :  { %v1161_v7 = vpack.c.bf16 %v6983_v11, %v6980_v42  ;;  %v6989_v60 = vmul.f32 %v6009_v61, %v6886_v54 }
 0x6ad   :  { %v6011_v44 = vpop.eup %6010 }
 0x6ae   :  { %5490 = vmatprep.mubr.msk.bf16.mxu1 %vm346_vm2, %v1161_v7  ;;  %v6992_v15 = vmul.f32 %v6011_v44, %v6892_v35 }
 0x6b0   :  { %v1162_v21 = vpack.c.bf16 %v6992_v15, %v6989_v60 }
 0x6b2   :  { %5491 = vmatmul.mubr.msk.bf16.gmra.mrb[40].mxu1 %vm346_vm2, %v1162_v21 }
 0x6cc   :  { %v1073_v41 = vpop.xlane.xlu1 %1072 }
 0x6cd   :  { %v1103_v40 = vmul.f32 0.03125, %v1073_v41 }
 0x6ce   :  { %v1076_v37 = vpop.xlane.xlu0 %1075 }
 0x6cf   :  { %v1119_v26 = vadd.f32 1e-06, %v1103_v40  ;;  %v1104_v29 = vmul.f32 0.03125, %v1076_v37 }
 0x6d0   :  { %v1079_v43 = vpop.xlane.xlu1 %1078 }
 0x6d1   :  { %6012 = vrsqrt.f32 %v1119_v26  ;;  %v1120_v5 = vadd.f32 1e-06, %v1104_v29  ;;  %v1105_v52 = vmul.f32 0.03125, %v1079_v43 }
 0x6d2   :  { %v1082_v58 = vpop.xlane.xlu0 %1081 }
 0x6d3   :  { %6014 = vrsqrt.f32 %v1120_v5  ;;  %v1121_v54 = vadd.f32 1e-06, %v1105_v52  ;;  %v1106_v22 = vmul.f32 0.03125, %v1082_v58 }
 0x6d4   :  { %v1085_v35 = vpop.xlane.xlu1 %1084 }
 0x6d5   :  { %6016 = vrsqrt.f32 %v1121_v54  ;;  %v1122_v59 = vadd.f32 1e-06, %v1106_v22  ;;  %v1107_v56 = vmul.f32 0.03125, %v1085_v35 }
 0x6d6   :  { %v1088_v18 = vpop.xlane.xlu0 %1087 }
 0x6d7   :  { %6018 = vrsqrt.f32 %v1122_v59  ;;  %v1123_v23 = vadd.f32 1e-06, %v1107_v56  ;;  %v1108_v38 = vmul.f32 0.03125, %v1088_v18 }
 0x6d8   :  { %v1091_v17 = vpop.xlane.xlu1 %1090 }
 0x6d9   :  { %6020 = vrsqrt.f32 %v1123_v23  ;;  %v1124_v0 = vadd.f32 1e-06, %v1108_v38  ;;  %v1109_v28 = vmul.f32 0.03125, %v1091_v17 }
 0x6da   :  { %v1094_v62 = vpop.xlane.xlu0 %1093 }
 0x6db   :  { %v6013_v36 = vpop.eup %6012  ;;  %6022 = vrsqrt.f32 %v1124_v0  ;;  %v1125_v2 = vadd.f32 1e-06, %v1109_v28  ;;  %v1110_v10 = vmul.f32 0.03125, %v1094_v62 }
 0x6dc   :  { %v6998_v46 = vmul.f32 %v6013_v36, %v6908_v27 }
 0x6dd   :  { %v6015_v20 = vpop.eup %6014  ;;  %6024 = vrsqrt.f32 %v1125_v2  ;;  %v1126_v8 = vadd.f32 1e-06, %v1110_v10 }
 0x6de   :  { %v7001_v48 = vmul.f32 %v6015_v20, %v6911_v25 }
 0x6df   :  { %v6017_v13 = vpop.eup %6016  ;;  %6026 = vrsqrt.f32 %v1126_v8 }
 0x6e0   :  { %v1163_v12 = vpack.c.bf16 %v7001_v48, %v6998_v46  ;;  %v7007_v55 = vmul.f32 %v6017_v13, %v6916_v14 }
 0x6e1   :  { %v6019_v24 = vpop.eup %6018 }
 0x6e2   :  { %5494 = vmatprep.mubr.msk.bf16.mxu1 %vm346_vm2, %v1163_v12  ;;  %v7010_v30 = vmul.f32 %v6019_v24, %v6922_v50 }
 0x6e3   :  { %v6021_v32 = vpop.eup %6020 }
 0x6e4   :  { %v1164_v27 = vpack.c.bf16 %v7010_v30, %v7007_v55  ;;  %v7016_v63 = vmul.f32 %v6021_v32, %v6928_v57 }
 0x6e5   :  { %v6023_v25 = vpop.eup %6022 }
 0x6e6   :  { %5495 = vmatmul.mubr.msk.bf16.gmra.mrb[44].mxu1 %vm346_vm2, %v1164_v27  ;;  %v7019_v6 = vmul.f32 %v6023_v25, %v6934_v1  ;;  %v5896_v1 = vld [vmem:[%s8485_s11 + $0x10] sm:$0xff]  }
 0x6e7   :  { %v6025_v9 = vpop.eup %6024  ;;  %5506 = vmatprep.subr.bf16.mxu0 %v5896_v1 }
 0x6e8   :  { %v1165_v14 = vpack.c.bf16 %v7019_v6, %v7016_v63  ;;  %v7025_v50 = vmul.f32 %v6025_v9, %v6940_v34  ;;  %5507 = vmatpush3.bf16.msra.mxu0 %v5896_v1  ;;  %v4955_v34 = vld [vmem:[%s8486_s10] ss:$0 sm:$0xff] }
 0x6e9   :  { %v6027_v4 = vpop.eup %6026  ;;  %5508 = vmatprep.subr.bf16.mxu0 %v5897_v33 }
 0x6ea   :  { %5498 = vmatprep.mubr.msk.bf16.mxu1 %vm346_vm2, %v1165_v14  ;;  %v7028_v31 = vmul.f32 %v6027_v4, %v6946_v39 }
 0x6ec   :  { %v1166_v57 = vpack.c.bf16 %v7028_v31, %v7025_v50  ;;  %5509 = vmatpush3.bf16.msra.mxu0 %v5897_v33 }
 0x6ee   :  { %5499 = vmatmul.mubr.msk.bf16.gmra.mrb[48].mxu1 %vm346_vm2, %v1166_v57 }
 0x77d   :  { %v5488_v39 = vpop.f32.mrb[36].mxu1 }
 0x77e   :  { %v1257_v61 = vadd.f32 %v5488_v39, %v4955_v34  ;;  %v1248_v7 = vpop.f32.mrb[37].mxu1 }
 0x77f   :  { %v1249_v44 = vadd.f32 %v4955_v34, %v1248_v7  ;;  %v5489_v21 = vpop.f32.mrb[38].mxu1 }
 0x780   :  { %v1260_v41 = vadd.f32 %v5489_v21, %v4955_v34  ;;  %v1251_v40 = vpop.f32.mrb[39].mxu1  ;;  %v1313_v26 = vmax.f32 %v1257_v61, 0.0 }
 0x781   :  { %v1252_v37 = vadd.f32 %v4955_v34, %v1251_v40  ;;  %v1311_v43 = vmax.f32 %v1249_v44, 0.0 }
 0x782   :  { %v1314_v29 = vmax.f32 %v1260_v41, 0.0 }
 0x783   :  { %v1312_v5 = vmax.f32 %v1252_v37, 0.0 }
 0x784   :  { %v1328_v52 = vpack.c.bf16 %v1314_v29, %v1313_v26 }
 0x785   :  { %v1327_v58 = vpack.c.bf16 %v1312_v5, %v1311_v43  ;;  %v5492_v54 = vpop.f32.mrb[40].mxu1 }
 0x786   :  { %v1273_v22 = vadd.f32 %v5492_v54, %v4955_v34  ;;  %v1264_v35 = vpop.f32.mrb[41].mxu1 }
 0x787   :  { %v1265_v59 = vadd.f32 %v4955_v34, %v1264_v35  ;;  %v5493_v56 = vpop.f32.mrb[42].mxu1  ;;  %5510 = vmatprep.mubr.msk.bf16.mxu0 %vm1367_vm3, %v1327_v58 }
 0x788   :  { %v1276_v18 = vadd.f32 %v5493_v56, %v4955_v34  ;;  %v1267_v23 = vpop.f32.mrb[43].mxu1  ;;  %5511 = vmatmul.mubr.msk.bf16.vlgmr.msra.gmra.mrb[32].mxu0 %vm1367_vm3, %v1328_v52  ;;  %v1317_v17 = vmax.f32 %v1273_v22, 0.0  ;;  %v7053_v22 = vld [vmem:[%s8487_s12] ss:$0 sm:$0xff] }
 0x789   :  { %v1268_v38 = vadd.f32 %v4955_v34, %v1267_v23  ;;  %v1315_v28 = vmax.f32 %v1265_v59, 0.0 }
 0x78a   :  { %v1318_v0 = vmax.f32 %v1276_v18, 0.0 }
 0x78b   :  { %v1316_v62 = vmax.f32 %v1268_v38, 0.0 }
 0x78c   :  { %v1330_v36 = vpack.c.bf16 %v1318_v0, %v1317_v17 }
 0x78d   :  { %v1329_v2 = vpack.c.bf16 %v1316_v62, %v1315_v28 }
 0x78f   :  { %5514 = vmatprep.mubr.msk.bf16.mxu0 %vm1367_vm3, %v1329_v2 }
 0x790   :  { %5515 = vmatmul.mubr.msk.bf16.gmra.mrb[36].mxu0 %vm1367_vm3, %v1330_v36 }
 0x7b9   :  { %v5496_v10 = vpop.f32.mrb[44].mxu1 }
 0x7ba   :  { %v1289_v20 = vadd.f32 %v5496_v10, %v4955_v34  ;;  %v1280_v8 = vpop.f32.mrb[45].mxu1 }
 0x7bb   :  { %v1281_v13 = vadd.f32 %v4955_v34, %v1280_v8  ;;  %v5497_v12 = vpop.f32.mrb[46].mxu1 }
 0x7bc   :  { %v1292_v24 = vadd.f32 %v5497_v12, %v4955_v34  ;;  %v1283_v32 = vpop.f32.mrb[47].mxu1  ;;  %v1321_v25 = vmax.f32 %v1289_v20, 0.0 }
 0x7bd   :  { %v1284_v27 = vadd.f32 %v4955_v34, %v1283_v32  ;;  %v1319_v14 = vmax.f32 %v1281_v13, 0.0 }
 0x7be   :  { %v1322_v9 = vmax.f32 %v1292_v24, 0.0 }
 0x7bf   :  { %v1320_v4 = vmax.f32 %v1284_v27, 0.0 }
 0x7c0   :  { %v1332_v57 = vpack.c.bf16 %v1322_v9, %v1321_v25 }
 0x7c1   :  { %v1331_v1 = vpack.c.bf16 %v1320_v4, %v1319_v14  ;;  %v5500_v33 = vpop.f32.mrb[48].mxu1 }
 0x7c2   :  { %v1305_v39 = vadd.f32 %v5500_v33, %v4955_v34  ;;  %v1296_v61 = vpop.f32.mrb[49].mxu1 }
 0x7c3   :  { %v1297_v7 = vadd.f32 %v4955_v34, %v1296_v61  ;;  %v5501_v44 = vpop.f32.mrb[50].mxu1  ;;  %5518 = vmatprep.mubr.msk.bf16.mxu0 %vm1367_vm3, %v1331_v1 }
 0x7c4   :  { %v1308_v21 = vadd.f32 %v5501_v44, %v4955_v34  ;;  %v1299_v41 = vpop.f32.mrb[51].mxu1  ;;  %5519 = vmatmul.mubr.msk.bf16.gmra.mrb[40].mxu0 %vm1367_vm3, %v1332_v57  ;;  %v1325_v37 = vmax.f32 %v1305_v39, 0.0 }
 0x7c5   :  { %v1300_v40 = vadd.f32 %v4955_v34, %v1299_v41  ;;  %v1323_v29 = vmax.f32 %v1297_v7, 0.0 }
 0x7c6   :  { %v1326_v26 = vmax.f32 %v1308_v21, 0.0 }
 0x7c7   :  { %v1324_v43 = vmax.f32 %v1300_v40, 0.0 }
 0x7c8   :  { %v1334_v5 = vpack.c.bf16 %v1326_v26, %v1325_v37 }
 0x7c9   :  { %v1333_v52 = vpack.c.bf16 %v1324_v43, %v1323_v29 }
 0x7cb   :  { %5522 = vmatprep.mubr.msk.bf16.mxu0 %vm1367_vm3, %v1333_v52 }
 0x7cc   :  { %5523 = vmatmul.mubr.msk.bf16.gmra.mrb[44].mxu0 %vm1367_vm3, %v1334_v5 }
 0x85b   :  { %v5512_v58 = vpop.f32.mrb[32].mxu0 }
 0x85c   :  { %v1426_v54 = vpop.f32.mrb[33].mxu0  ;;  %v1491_v35 = vadd.f32 %v5512_v58, %v6970_v16 }
 0x85d   :  { %v1489_v34 = vadd.f32 %v1426_v54, %v6962_v53  ;;  %v5513_v59 = vpop.f32.mrb[34].mxu0 }
 0x85e   :  { %v1429_v56 = vpop.f32.mrb[35].mxu0  ;;  %v1492_v18 = vadd.f32 %v5513_v59, %v6973_v19  ;;  %v7068_v28 = vadd.f32 %v7053_v22, %v1491_v35 }
 0x85f   :  { %v1490_v23 = vadd.f32 %v1429_v56, %v6965_v3  ;;  %v7060_v38 = vadd.f32 %v7053_v22, %v1489_v34 }
 0x860   :  { %v7073_v19 = vadd.f32 %v7053_v22, %v1492_v18  ;;  %v1534_v10 = vsel %vm346_vm2, %v7068_v28, 0.0 }
 0x861   :  { %v1528_v17 = vsel %vm346_vm2, %v7060_v38, 0.0  ;;  %v7065_v0 = vadd.f32 %v7053_v22, %v1490_v23 }
 0x862   :  { %1529 = vadd.xlane.f32.xlu1 %v1528_v17  ;;  %v1537_v12 = vsel %vm346_vm2, %v7073_v19, 0.0 }
 0x863   :  { %v5516_v53 = vpop.f32.mrb[36].mxu0  ;;  %v1531_v16 = vsel %vm346_vm2, %v7065_v0, 0.0 }
 0x864   :  { %1532 = vadd.xlane.f32.xlu0 %v1531_v16  ;;  %v1442_v3 = vpop.f32.mrb[37].mxu0  ;;  %v1495_v62 = vadd.f32 %v5516_v53, %v6989_v60 }
 0x865   :  { %v1493_v36 = vadd.f32 %v1442_v3, %v6980_v42  ;;  %v5517_v2 = vpop.f32.mrb[38].mxu0 }
 0x866   :  { %1535 = vadd.xlane.f32.xlu1 %v1534_v10  ;;  %v1445_v20 = vpop.f32.mrb[39].mxu0  ;;  %v1496_v8 = vadd.f32 %v5517_v2, %v6992_v15  ;;  %v7092_v32 = vadd.f32 %v7053_v22, %v1495_v62 }
 0x867   :  { %v1494_v13 = vadd.f32 %v1445_v20, %v6983_v11  ;;  %v7084_v24 = vadd.f32 %v7053_v22, %v1493_v36 }
 0x868   :  { %1538 = vadd.xlane.f32.xlu0 %v1537_v12  ;;  %v7097_v15 = vadd.f32 %v7053_v22, %v1496_v8  ;;  %v1546_v27 = vsel %vm346_vm2, %v7092_v32, 0.0 }
 0x869   :  { %v1540_v42 = vsel %vm346_vm2, %v7084_v24, 0.0  ;;  %v7089_v60 = vadd.f32 %v7053_v22, %v1494_v13 }
 0x86a   :  { %1541 = vadd.xlane.f32.xlu1 %v1540_v42  ;;  %v1549_v25 = vsel %vm346_vm2, %v7097_v15, 0.0 }
 0x86b   :  { %v1543_v11 = vsel %vm346_vm2, %v7089_v60, 0.0 }
 0x86c   :  { %1544 = vadd.xlane.f32.xlu0 %v1543_v11 }
 0x86e   :  { %1547 = vadd.xlane.f32.xlu1 %v1546_v27 }
 0x870   :  { %1550 = vadd.xlane.f32.xlu0 %v1549_v25 }
 0x897   :  { %v5520_v9 = vpop.f32.mrb[40].mxu0 }
 0x898   :  { %v1458_v14 = vpop.f32.mrb[41].mxu0  ;;  %v1499_v4 = vadd.f32 %v5520_v9, %v7007_v55 }
 0x899   :  { %v1497_v57 = vadd.f32 %v1458_v14, %v6998_v46  ;;  %v5521_v1 = vpop.f32.mrb[42].mxu0 }
 0x89a   :  { %v1461_v33 = vpop.f32.mrb[43].mxu0  ;;  %v1500_v39 = vadd.f32 %v5521_v1, %v7010_v30  ;;  %v7116_v41 = vadd.f32 %v7053_v22, %v1499_v4 }
 0x89b   :  { %v1498_v61 = vadd.f32 %v1461_v33, %v7001_v48  ;;  %v7108_v7 = vadd.f32 %v7053_v22, %v1497_v57 }
 0x89c   :  { %v7121_v30 = vadd.f32 %v7053_v22, %v1500_v39  ;;  %v1558_v29 = vsel %vm346_vm2, %v7116_v41, 0.0 }
 0x89d   :  { %v1552_v44 = vsel %vm346_vm2, %v7108_v7, 0.0  ;;  %v7113_v21 = vadd.f32 %v7053_v22, %v1498_v61 }
 0x89e   :  { %1553 = vadd.xlane.f32.xlu1 %v1552_v44  ;;  %v1561_v58 = vsel %vm346_vm2, %v7121_v30, 0.0 }
 0x89f   :  { %v5524_v46 = vpop.f32.mrb[44].mxu0  ;;  %v1555_v55 = vsel %vm346_vm2, %v7113_v21, 0.0 }
 0x8a0   :  { %1556 = vadd.xlane.f32.xlu0 %v1555_v55  ;;  %v1474_v48 = vpop.f32.mrb[45].mxu0  ;;  %v1503_v40 = vadd.f32 %v5524_v46, %v7025_v50 }
 0x8a1   :  { %v1501_v37 = vadd.f32 %v1474_v48, %v7016_v63  ;;  %v5525_v26 = vpop.f32.mrb[46].mxu0 }
 0x8a2   :  { %1559 = vadd.xlane.f32.xlu1 %v1558_v29  ;;  %v1477_v43 = vpop.f32.mrb[47].mxu0  ;;  %v1504_v5 = vadd.f32 %v5525_v26, %v7028_v31  ;;  %v7140_v35 = vadd.f32 %v7053_v22, %v1503_v40 }
 0x8a3   :  { %v1502_v52 = vadd.f32 %v1477_v43, %v7019_v6  ;;  %v7132_v54 = vadd.f32 %v7053_v22, %v1501_v37  ;;  %v5899_v37 = vld [vmem:[%s8515_s5 + $0x18] sm:$0xff]  }
 0x8a4   :  { %1562 = vadd.xlane.f32.xlu0 %v1561_v58  ;;  %v7145_v31 = vadd.f32 %v7053_v22, %v1504_v5  ;;  %v1570_v34 = vsel %vm346_vm2, %v7140_v35, 0.0 }
 0x8a5   :  { %v1564_v63 = vsel %vm346_vm2, %v7132_v54, 0.0  ;;  %v7137_v50 = vadd.f32 %v7053_v22, %v1502_v52 }
 0x8a6   :  { %1565 = vadd.xlane.f32.xlu1 %v1564_v63  ;;  %v1573_v59 = vsel %vm346_vm2, %v7145_v31, 0.0 }
 0x8a7   :  { %v1567_v6 = vsel %vm346_vm2, %v7137_v50, 0.0 }
 0x8a8   :  { %1568 = vadd.xlane.f32.xlu0 %v1567_v6 }
 0x8aa   :  { %1571 = vadd.xlane.f32.xlu1 %v1570_v34 }
 0x8ac   :  { %1574 = vadd.xlane.f32.xlu0 %v1573_v59 }
 0x8ef   :  { %v1530_v56 = vpop.xlane.xlu1 %1529 }
 0x8f0   :  { %v1576_v18 = vmul.f32 0.03125, %v1530_v56 }
 0x8f1   :  { %v1533_v23 = vpop.xlane.xlu0 %1532 }
 0x8f2   :  { %v7152_v17 = vsub.f32 %v7060_v38, %v1576_v18  ;;  %v1577_v53 = vmul.f32 0.03125, %v1533_v23 }
 0x8f3   :  { %v1536_v16 = vpop.xlane.xlu1 %1535 }
 0x8f4   :  { %v7155_v22 = vsub.f32 %v7065_v0, %v1577_v53  ;;  %v1578_v3 = vmul.f32 0.03125, %v1536_v16  ;;  %v1608_v62 = vmul.f32 %v7152_v17, %v7152_v17 }
 0x8f5   :  { %v1539_v36 = vpop.xlane.xlu0 %1538 }
 0x8f6   :  { %v7160_v2 = vsub.f32 %v7068_v28, %v1578_v3  ;;  %v1579_v10 = vmul.f32 0.03125, %v1539_v36  ;;  %v1624_v20 = vsel %vm346_vm2, %v1608_v62, 0.0  ;;  %v1609_v38 = vmul.f32 %v7155_v22, %v7155_v22 }
 0x8f7   :  { %v1542_v8 = vpop.xlane.xlu1 %1541  ;;  %1625 = vadd.xlane.f32.xlu1 %v1624_v20 }
 0x8f8   :  { %v7166_v13 = vsub.f32 %v7073_v19, %v1579_v10  ;;  %v1580_v0 = vmul.f32 0.03125, %v1542_v8  ;;  %v1627_v12 = vsel %vm346_vm2, %v1609_v38, 0.0  ;;  %v1610_v42 = vmul.f32 %v7160_v2, %v7160_v2 }
 0x8f9   :  { %1628 = vadd.xlane.f32.xlu0 %v1627_v12  ;;  %v1545_v28 = vpop.xlane.xlu0 %1544 }
 0x8fa   :  { %v7172_v11 = vsub.f32 %v7084_v24, %v1580_v0  ;;  %v1581_v27 = vmul.f32 0.03125, %v1545_v28  ;;  %v1630_v25 = vsel %vm346_vm2, %v1610_v42, 0.0  ;;  %v1611_v9 = vmul.f32 %v7166_v13, %v7166_v13 }
 0x8fb   :  { %v1548_v14 = vpop.xlane.xlu1 %1547  ;;  %1631 = vadd.xlane.f32.xlu1 %v1630_v25 }
 0x8fc   :  { %v7178_v19 = vsub.f32 %v7089_v60, %v1581_v27  ;;  %v1582_v4 = vmul.f32 0.03125, %v1548_v14  ;;  %v1633_v57 = vsel %vm346_vm2, %v1611_v9, 0.0  ;;  %v1612_v1 = vmul.f32 %v7172_v11, %v7172_v11 }
 0x8fd   :  { %1634 = vadd.xlane.f32.xlu0 %v1633_v57  ;;  %v1551_v24 = vpop.xlane.xlu0 %1550 }
 0x8fe   :  { %v7184_v33 = vsub.f32 %v7092_v32, %v1582_v4  ;;  %v1583_v39 = vmul.f32 0.03125, %v1551_v24  ;;  %v1636_v61 = vsel %vm346_vm2, %v1612_v1, 0.0  ;;  %v1613_v44 = vmul.f32 %v7178_v19, %v7178_v19 }
 0x8ff   :  { %1637 = vadd.xlane.f32.xlu1 %v1636_v61 }
 0x900   :  { %v7190_v60 = vsub.f32 %v7097_v15, %v1583_v39  ;;  %v1639_v46 = vsel %vm346_vm2, %v1613_v44, 0.0  ;;  %v1614_v55 = vmul.f32 %v7184_v33, %v7184_v33  ;;  %v5898_v15 = vld [vmem:[%s8515_s5 + $0x10] sm:$0xff]  }
 0x901   :  { %1640 = vadd.xlane.f32.xlu0 %v1639_v46  ;;  %5526 = vmatprep.subr.bf16.mxu1 %v5898_v15 }
 0x902   :  { %v1642_v48 = vsel %vm346_vm2, %v1614_v55, 0.0  ;;  %v1615_v32 = vmul.f32 %v7190_v60, %v7190_v60  ;;  %5527 = vmatpush3.bf16.msra.mxu1 %v5898_v15 }
 0x903   :  { %1643 = vadd.xlane.f32.xlu1 %v1642_v48  ;;  %5528 = vmatprep.subr.bf16.mxu1 %v5899_v37 }
 0x904   :  { %v1645_v40 = vsel %vm346_vm2, %v1615_v32, 0.0 }
 0x905   :  { %1646 = vadd.xlane.f32.xlu0 %v1645_v40 }
 0x906   :  { %5529 = vmatpush3.bf16.msra.mxu1 %v5899_v37 }
 0x92b   :  { %v1554_v26 = vpop.xlane.xlu1 %1553 }
 0x92c   :  { %v1584_v29 = vmul.f32 0.03125, %v1554_v26 }
 0x92d   :  { %v1557_v43 = vpop.xlane.xlu0 %1556 }
 0x92e   :  { %v7206_v5 = vsub.f32 %v7108_v7, %v1584_v29  ;;  %v1585_v52 = vmul.f32 0.03125, %v1557_v43 }
 0x92f   :  { %v1560_v58 = vpop.xlane.xlu1 %1559 }
 0x930   :  { %v7209_v63 = vsub.f32 %v7113_v21, %v1585_v52  ;;  %v1586_v6 = vmul.f32 0.03125, %v1560_v58  ;;  %v1616_v34 = vmul.f32 %v7206_v5, %v7206_v5 }
 0x931   :  { %v1563_v59 = vpop.xlane.xlu0 %1562 }
 0x932   :  { %v7214_v56 = vsub.f32 %v7116_v41, %v1586_v6  ;;  %v1587_v18 = vmul.f32 0.03125, %v1563_v59  ;;  %v1648_v23 = vsel %vm346_vm2, %v1616_v34, 0.0  ;;  %v1617_v7 = vmul.f32 %v7209_v63, %v7209_v63 }
 0x933   :  { %1649 = vadd.xlane.f32.xlu1 %v1648_v23  ;;  %v1566_v53 = vpop.xlane.xlu1 %1565 }
 0x934   :  { %v7220_v16 = vsub.f32 %v7121_v30, %v1587_v18  ;;  %v1588_v21 = vmul.f32 0.03125, %v1566_v53  ;;  %v1651_v3 = vsel %vm346_vm2, %v1617_v7, 0.0  ;;  %v1618_v62 = vmul.f32 %v7214_v56, %v7214_v56 }
 0x935   :  { %1652 = vadd.xlane.f32.xlu0 %v1651_v3  ;;  %v1569_v41 = vpop.xlane.xlu0 %1568 }
 0x936   :  { %v7226_v36 = vsub.f32 %v7132_v54, %v1588_v21  ;;  %v1589_v10 = vmul.f32 0.03125, %v1569_v41  ;;  %v1654_v20 = vsel %vm346_vm2, %v1618_v62, 0.0  ;;  %v1619_v38 = vmul.f32 %v7220_v16, %v7220_v16 }
 0x937   :  { %1655 = vadd.xlane.f32.xlu1 %v1654_v20  ;;  %v1572_v30 = vpop.xlane.xlu1 %1571 }
 0x938   :  { %v7232_v8 = vsub.f32 %v7137_v50, %v1589_v10  ;;  %v1590_v0 = vmul.f32 0.03125, %v1572_v30  ;;  %v1657_v12 = vsel %vm346_vm2, %v1619_v38, 0.0  ;;  %v1620_v42 = vmul.f32 %v7226_v36, %v7226_v36 }
 0x939   :  { %1658 = vadd.xlane.f32.xlu0 %v1657_v12  ;;  %v1575_v54 = vpop.xlane.xlu0 %1574 }
 0x93a   :  { %v7238_v28 = vsub.f32 %v7140_v35, %v1590_v0  ;;  %v1591_v27 = vmul.f32 0.03125, %v1575_v54  ;;  %v1660_v25 = vsel %vm346_vm2, %v1620_v42, 0.0  ;;  %v1621_v9 = vmul.f32 %v7232_v8, %v7232_v8 }
 0x93b   :  { %1661 = vadd.xlane.f32.xlu1 %v1660_v25 }
 0x93c   :  { %v7244_v50 = vsub.f32 %v7145_v31, %v1591_v27  ;;  %v1663_v14 = vsel %vm346_vm2, %v1621_v9, 0.0  ;;  %v1622_v4 = vmul.f32 %v7238_v28, %v7238_v28 }
 0x93d   :  { %1664 = vadd.xlane.f32.xlu0 %v1663_v14 }
 0x93e   :  { %v1666_v57 = vsel %vm346_vm2, %v1622_v4, 0.0  ;;  %v1623_v35 = vmul.f32 %v7244_v50, %v7244_v50 }
 0x93f   :  { %1667 = vadd.xlane.f32.xlu1 %v1666_v57 }
 0x940   :  { %v1669_v1 = vsel %vm346_vm2, %v1623_v35, 0.0 }
 0x941   :  { %1670 = vadd.xlane.f32.xlu0 %v1669_v1 }
 0x984   :  { %v1626_v24 = vpop.xlane.xlu1 %1625 }
 0x985   :  { %v1672_v39 = vmul.f32 0.03125, %v1626_v24 }
 0x986   :  { %v1629_v61 = vpop.xlane.xlu0 %1628 }
 0x987   :  { %v1688_v31 = vadd.f32 1e-06, %v1672_v39  ;;  %v1673_v44 = vmul.f32 0.03125, %v1629_v61 }
 0x988   :  { %v1632_v46 = vpop.xlane.xlu1 %1631 }
 0x989   :  { %6028 = vrsqrt.f32 %v1688_v31  ;;  %v1689_v55 = vadd.f32 1e-06, %v1673_v44  ;;  %v1674_v48 = vmul.f32 0.03125, %v1632_v46 }
 0x98a   :  { %v1635_v32 = vpop.xlane.xlu0 %1634 }
 0x98b   :  { %6030 = vrsqrt.f32 %v1689_v55  ;;  %v1690_v40 = vadd.f32 1e-06, %v1674_v48  ;;  %v1675_v15 = vmul.f32 0.03125, %v1635_v32 }
 0x98c   :  { %v1638_v37 = vpop.xlane.xlu1 %1637 }
 0x98d   :  { %6032 = vrsqrt.f32 %v1690_v40  ;;  %v1691_v26 = vadd.f32 1e-06, %v1675_v15  ;;  %v1676_v29 = vmul.f32 0.03125, %v1638_v37 }
 0x98e   :  { %v1641_v43 = vpop.xlane.xlu0 %1640 }
 0x98f   :  { %6034 = vrsqrt.f32 %v1691_v26  ;;  %v1692_v52 = vadd.f32 1e-06, %v1676_v29  ;;  %v1677_v58 = vmul.f32 0.03125, %v1641_v43 }
 0x990   :  { %v1644_v6 = vpop.xlane.xlu1 %1643 }
 0x991   :  { %6036 = vrsqrt.f32 %v1692_v52  ;;  %v1693_v34 = vadd.f32 1e-06, %v1677_v58  ;;  %v1678_v59 = vmul.f32 0.03125, %v1644_v6 }
 0x992   :  { %v1647_v18 = vpop.xlane.xlu0 %1646 }
 0x993   :  { %v6029_v23 = vpop.eup %6028  ;;  %6038 = vrsqrt.f32 %v1693_v34  ;;  %v1694_v7 = vadd.f32 1e-06, %v1678_v59  ;;  %v1679_v53 = vmul.f32 0.03125, %v1647_v18 }
 0x994   :  { %v7254_v62 = vmul.f32 %v6029_v23, %v7152_v17 }
 0x995   :  { %v6031_v21 = vpop.eup %6030  ;;  %6040 = vrsqrt.f32 %v1694_v7  ;;  %v1695_v3 = vadd.f32 1e-06, %v1679_v53 }
 0x996   :  { %v7257_v41 = vmul.f32 %v6031_v21, %v7155_v22 }
 0x997   :  { %v6033_v10 = vpop.eup %6032  ;;  %6042 = vrsqrt.f32 %v1695_v3 }
 0x998   :  { %v1736_v20 = vpack.c.bf16 %v7257_v41, %v7254_v62  ;;  %v7262_v30 = vmul.f32 %v6033_v10, %v7160_v2 }
 0x999   :  { %v6035_v38 = vpop.eup %6034 }
 0x99a   :  { %v7265_v0 = vmul.f32 %v6035_v38, %v7166_v13  ;;  %5530 = vmatprep.mubr.msk.bf16.mxu1 %vm346_vm2, %v1736_v20 }
 0x99b   :  { %v6037_v12 = vpop.eup %6036 }
 0x99c   :  { %v1737_v17 = vpack.c.bf16 %v7265_v0, %v7262_v30  ;;  %v7272_v42 = vmul.f32 %v6037_v12, %v7172_v11 }
 0x99d   :  { %v6039_v22 = vpop.eup %6038 }
 0x99e   :  { %5531 = vmatmul.mubr.msk.bf16.vlgmr.msra.gmra.mrb[52].mxu1 %vm346_vm2, %v1737_v17  ;;  %v7275_v54 = vmul.f32 %v6039_v22, %v7178_v19 }
 0x99f   :  { %v6041_v2 = vpop.eup %6040 }
 0x9a0   :  { %v1738_v13 = vpack.c.bf16 %v7275_v54, %v7272_v42  ;;  %v7281_v25 = vmul.f32 %v6041_v2, %v7184_v33 }
 0x9a1   :  { %v6043_v27 = vpop.eup %6042 }
 0x9a2   :  { %5534 = vmatprep.mubr.msk.bf16.mxu1 %vm346_vm2, %v1738_v13  ;;  %v7284_v9 = vmul.f32 %v6043_v27, %v7190_v60 }
 0x9a4   :  { %v1739_v11 = vpack.c.bf16 %v7284_v9, %v7281_v25 }
 0x9a6   :  { %5535 = vmatmul.mubr.msk.bf16.gmra.mrb[56].mxu1 %vm346_vm2, %v1739_v11 }
 0x9c0   :  { %v1650_v19 = vpop.xlane.xlu1 %1649 }
 0x9c1   :  { %v1680_v14 = vmul.f32 0.03125, %v1650_v19 }
 0x9c2   :  { %v1653_v4 = vpop.xlane.xlu0 %1652 }
 0x9c3   :  { %v1696_v57 = vadd.f32 1e-06, %v1680_v14  ;;  %v1681_v35 = vmul.f32 0.03125, %v1653_v4 }
 0x9c4   :  { %v1656_v1 = vpop.xlane.xlu1 %1655 }
 0x9c5   :  { %6044 = vrsqrt.f32 %v1696_v57  ;;  %v1697_v24 = vadd.f32 1e-06, %v1681_v35  ;;  %v1682_v39 = vmul.f32 0.03125, %v1656_v1 }
 0x9c6   :  { %v1659_v61 = vpop.xlane.xlu0 %1658 }
 0x9c7   :  { %6046 = vrsqrt.f32 %v1697_v24  ;;  %v1698_v33 = vadd.f32 1e-06, %v1682_v39  ;;  %v1683_v31 = vmul.f32 0.03125, %v1659_v61 }
 0x9c8   :  { %v1662_v60 = vpop.xlane.xlu1 %1661 }
 0x9c9   :  { %6048 = vrsqrt.f32 %v1698_v33  ;;  %v1699_v44 = vadd.f32 1e-06, %v1683_v31  ;;  %v1684_v46 = vmul.f32 0.03125, %v1662_v60 }
 0x9ca   :  { %v1665_v55 = vpop.xlane.xlu0 %1664 }
 0x9cb   :  { %6050 = vrsqrt.f32 %v1699_v44  ;;  %v1700_v48 = vadd.f32 1e-06, %v1684_v46  ;;  %v1685_v32 = vmul.f32 0.03125, %v1665_v55 }
 0x9cc   :  { %v1668_v40 = vpop.xlane.xlu1 %1667 }
 0x9cd   :  { %6052 = vrsqrt.f32 %v1700_v48  ;;  %v1701_v15 = vadd.f32 1e-06, %v1685_v32  ;;  %v1686_v37 = vmul.f32 0.03125, %v1668_v40 }
 0x9ce   :  { %v1671_v26 = vpop.xlane.xlu0 %1670 }
 0x9cf   :  { %v6045_v29 = vpop.eup %6044  ;;  %6054 = vrsqrt.f32 %v1701_v15  ;;  %v1702_v43 = vadd.f32 1e-06, %v1686_v37  ;;  %v1687_v52 = vmul.f32 0.03125, %v1671_v26 }
 0x9d0   :  { %v7290_v34 = vmul.f32 %v6045_v29, %v7206_v5 }
 0x9d1   :  { %v6047_v58 = vpop.eup %6046  ;;  %6056 = vrsqrt.f32 %v1702_v43  ;;  %v1703_v6 = vadd.f32 1e-06, %v1687_v52 }
 0x9d2   :  { %v7293_v59 = vmul.f32 %v6047_v58, %v7209_v63 }
 0x9d3   :  { %v6049_v18 = vpop.eup %6048  ;;  %6058 = vrsqrt.f32 %v1703_v6 }
 0x9d4   :  { %v1740_v23 = vpack.c.bf16 %v7293_v59, %v7290_v34  ;;  %v7299_v53 = vmul.f32 %v6049_v18, %v7214_v56 }
 0x9d5   :  { %v6051_v7 = vpop.eup %6050 }
 0x9d6   :  { %5538 = vmatprep.mubr.msk.bf16.mxu1 %vm346_vm2, %v1740_v23  ;;  %v7302_v21 = vmul.f32 %v6051_v7, %v7220_v16 }
 0x9d7   :  { %v6053_v3 = vpop.eup %6052 }
 0x9d8   :  { %v1741_v5 = vpack.c.bf16 %v7302_v21, %v7299_v53  ;;  %v7308_v10 = vmul.f32 %v6053_v3, %v7226_v36 }
 0x9d9   :  { %v6055_v63 = vpop.eup %6054 }
 0x9da   :  { %5539 = vmatmul.mubr.msk.bf16.gmra.mrb[60].mxu1 %vm346_vm2, %v1741_v5  ;;  %v7311_v20 = vmul.f32 %v6055_v63, %v7232_v8 }
 0x9db   :  { %v6057_v38 = vpop.eup %6056 }
 0x9dc   :  { %v1742_v56 = vpack.c.bf16 %v7311_v20, %v7308_v10  ;;  %v7317_v16 = vmul.f32 %v6057_v38, %v7238_v28 }
 0x9dd   :  { %v6059_v12 = vpop.eup %6058 }
 0x9de   :  { %5542 = vmatprep.mubr.msk.bf16.mxu1 %vm346_vm2, %v1742_v56  ;;  %v7320_v17 = vmul.f32 %v6059_v12, %v7244_v50 }
 0x9e0   :  { %v1743_v36 = vpack.c.bf16 %v7320_v17, %v7317_v16 }
 0x9e2   :  { %5543 = vmatmul.mubr.msk.bf16.gmra.mrb[64].mxu1 %vm346_vm2, %v1743_v36 }
 0xa71   :  { %v5532_v8 = vpop.f32.mrb[52].mxu1 }
 0xa72   :  { %v1819_v22 = vpop.f32.mrb[53].mxu1 }
 0xa73   :  { %v5533_v2 = vpop.f32.mrb[54].mxu1 }
 0xa74   :  { %v7325_v13 = vpack.c.bf16 %v5533_v2, %v5532_v8  ;;  %v1822_v27 = vpop.f32.mrb[55].mxu1 }
 0xa75   :  { %v1882_v11 = vpack.c.bf16 %v1822_v27, %v1819_v22 }
 0xa76   :  { %1900 = vrot.lane.b32.xlu0 %v7325_v13, %s6284_s4 }
 0xa77   :  { %1898 = vrot.lane.b32.xlu1 %v1882_v11, %s6284_s4  ;;  %5562 = vmatprep.mubr.msk.bf16.mxu0 %vm346_vm2, %v1882_v11 }
 0xa79   :  { %v5536_v28 = vpop.f32.mrb[56].mxu1 }
 0xa7a   :  { %v1835_v50 = vpop.f32.mrb[57].mxu1 }
 0xa7b   :  { %v5537_v19 = vpop.f32.mrb[58].mxu1 }
 0xa7c   :  { %v7331_v14 = vpack.c.bf16 %v5537_v19, %v5536_v28  ;;  %v1838_v4 = vpop.f32.mrb[59].mxu1 }
 0xa7d   :  { %v7333_v57 = vpack.c.bf16 %v1838_v4, %v1835_v50 }
 0xa7f   :  { %1902 = vrot.lane.b32.xlu1 %v7333_v57, %s6284_s4 }
 0xa83   :  { %1904 = vrot.lane.b32.xlu1 %v7331_v14, %s6284_s4 }
 0xaad   :  { %v5540_v35 = vpop.f32.mrb[60].mxu1 }
 0xaae   :  { %v1851_v1 = vpop.f32.mrb[61].mxu1 }
 0xaaf   :  { %v5541_v24 = vpop.f32.mrb[62].mxu1 }
 0xab0   :  { %v7339_v39 = vpack.c.bf16 %v5541_v24, %v5540_v35  ;;  %v1854_v61 = vpop.f32.mrb[63].mxu1 }
 0xab1   :  { %v7341_v33 = vpack.c.bf16 %v1854_v61, %v1851_v1 }
 0xab2   :  { %1908 = vrot.lane.b32.xlu1 %v7339_v39, %s6284_s4 }
 0xab3   :  { %1906 = vrot.lane.b32.xlu0 %v7341_v33, %s6284_s4 }
 0xab5   :  { %v5544_v31 = vpop.f32.mrb[64].mxu1 }
 0xab6   :  { %v1867_v60 = vpop.f32.mrb[65].mxu1 }
 0xab7   :  { %v5545_v44 = vpop.f32.mrb[66].mxu1 }
 0xab8   :  { %v7347_v46 = vpack.c.bf16 %v5545_v44, %v5544_v31  ;;  %v1870_v55 = vpop.f32.mrb[67].mxu1 }
 0xab9   :  { %v7349_v48 = vpack.c.bf16 %v1870_v55, %v1867_v60 }
 0xaba   :  { %1912 = vrot.lane.b32.xlu1 %v7347_v46, %s6284_s4 }
 0xabb   :  { %1910 = vrot.lane.b32.xlu0 %v7349_v48, %s6284_s4 }
 0xabe   :  { %2227 = vrot.lane.b32.xlu1 %v1882_v11, %s6285_s27 }
 0xac2   :  { %2229 = vrot.lane.b32.xlu1 %v7325_v13, %s6285_s27 }
 0xae8   :  { %v1901_v15 = vpop.permute.xlu0 %1900 }
 0xae9   :  { %v1899_v32 = vpop.permute.xlu1 %1898  ;;  %v1942_v37 = vsel %vm346_vm2, %v1901_v15, 0 }
 0xaea   :  { %5864 = vmatprep.subr.msk.bf16.mxu0 %vm346_vm2, %v1899_v32  ;;  %v1939_v40 = vsel %vm346_vm2, %v1899_v32, 0 }
 0xaeb   :  { %5547 = vmatpush3.bf16.xpose.msra.mxu0 %v1939_v40 }
 0xaec   :  { %5865 = vmatprep.subr.msk.bf16.mxu0 %vm346_vm2, %v1901_v15 }
 0xaf1   :  { %v1903_v26 = vpop.permute.xlu1 %1902 }
 0xaf2   :  { %v1945_v29 = vsel %vm346_vm2, %v1903_v26, 0 }
 0xaf3   :  { %5549 = vmatpush3.bf16.xpose.msra.mxu0 %v1942_v37 }
 0xaf4   :  { %5866 = vmatprep.subr.msk.bf16.mxu0 %vm346_vm2, %v1903_v26 }
 0xaf5   :  { %v1905_v43 = vpop.permute.xlu1 %1904 }
 0xaf6   :  { %v1948_v52 = vsel %vm346_vm2, %v1905_v43, 0 }
 0xafb   :  { %5551 = vmatpush3.bf16.xpose.msra.mxu0 %v1945_v29 }
 0xafc   :  { %5867 = vmatprep.subr.msk.bf16.mxu0 %vm346_vm2, %v1905_v43 }
 0xb03   :  { %5553 = vmatpush3.bf16.xpose.msra.mxu0 %v1948_v52 }
 0xb24   :  { %v1909_v18 = vpop.permute.xlu1 %1908 }
 0xb25   :  { %v1907_v58 = vpop.permute.xlu0 %1906  ;;  %v1954_v7 = vsel %vm346_vm2, %v1909_v18, 0 }
 0xb26   :  { %5868 = vmatprep.subr.msk.bf16.mxu0 %vm346_vm2, %v1907_v58  ;;  %v1951_v6 = vsel %vm346_vm2, %v1907_v58, 0 }
 0xb27   :  { %5555 = vmatpush3.bf16.xpose.msra.mxu0 %v1951_v6 }
 0xb28   :  { %5869 = vmatprep.subr.msk.bf16.mxu0 %vm346_vm2, %v1909_v18 }
 0xb2c   :  { %v1913_v23 = vpop.permute.xlu1 %1912 }
 0xb2d   :  { %v1911_v3 = vpop.permute.xlu0 %1910  ;;  %v1960_v56 = vsel %vm346_vm2, %v1913_v23, 0 }
 0xb2e   :  { %v1957_v38 = vsel %vm346_vm2, %v1911_v3, 0 }
 0xb2f   :  { %5557 = vmatpush3.bf16.xpose.msra.mxu0 %v1954_v7 }
 0xb30   :  { %v2228_v5 = vpop.permute.xlu1 %2227  ;;  %5870 = vmatprep.subr.msk.bf16.mxu0 %vm346_vm2, %v1911_v3 }
 0xb31   :  { %5578 = vmatprep.subr.bf16.mxu1 %v2228_v5 }
 0xb32   :  { %5579 = vmatpush3.bf16.msra.mxu1 %v2228_v5 }
 0xb34   :  { %v2230_v63 = vpop.permute.xlu1 %2229 }
 0xb35   :  { %5580 = vmatprep.subr.bf16.mxu1 %v2230_v63 }
 0xb36   :  { %5581 = vmatpush3.bf16.msra.mxu1 %v2230_v63 }
 0xb37   :  { %5559 = vmatpush3.bf16.xpose.msra.mxu0 %v1957_v38  ;;  %v6268_v38 = vld [vmem:[%s8517_s29 + $0x10] sm:$0xff] }
 0xb38   :  { %5871 = vmatprep.subr.msk.bf16.mxu0 %vm346_vm2, %v1913_v23 }
 0xb3f   :  { %5561 = vmatpush3.bf16.xpose.msra.mxu0 %v1960_v56 }
 0xb46   :  { %5563 = vmatmul.mubr.msk.bf16.vlgmr.msra.gmra.mrb[48].mxu0 %vm346_vm2, %v7325_v13 }
 0xb47   :  { %5566 = vmatprep.mubr.msk.bf16.mxu0 %vm346_vm2, %v7333_v57 }
 0xb4e   :  { %5567 = vmatmul.mubr.msk.bf16.gmra.mrb[52].mxu0 %vm346_vm2, %v7331_v14 }
 0xb4f   :  { %5570 = vmatprep.mubr.msk.bf16.mxu0 %vm346_vm2, %v7341_v33 }
 0xb56   :  { %5571 = vmatmul.mubr.msk.bf16.gmra.mrb[56].mxu0 %vm346_vm2, %v7339_v39 }
 0xb57   :  { %5574 = vmatprep.mubr.msk.bf16.mxu0 %vm346_vm2, %v7349_v48 }
 0xb5e   :  { %5575 = vmatmul.mubr.msk.bf16.gmra.mrb[60].mxu0 %vm346_vm2, %v7347_v46 }
 0xc19   :  { %v5564_v12 = vpop.f32.mrb[48].mxu0 }
 0xc1a   :  { %2063 = vmax.xlane.f32.xlu0 %v5564_v12  ;;  %v1996_v36 = vpop.f32.mrb[49].mxu0 }
 0xc1b   :  { %v5565_v8 = vpop.f32.mrb[50].mxu0 }
 0xc1c   :  { %v1999_v22 = vpop.f32.mrb[51].mxu0 }
 0xc1d   :  { %2061 = vmax.xlane.f32.xlu1 %v1999_v22 }
 0xc1e   :  { %2059 = vmax.xlane.f32.xlu0 %v1996_v36 }
 0xc21   :  { %v5568_v2 = vpop.f32.mrb[52].mxu0 }
 0xc22   :  { %2065 = vmax.xlane.f32.xlu0 %v5565_v8  ;;  %2071 = vmax.xlane.f32.xlu1 %v5568_v2  ;;  %v2012_v13 = vpop.f32.mrb[53].mxu0 }
 0xc23   :  { %v5569_v27 = vpop.f32.mrb[54].mxu0 }
 0xc24   :  { %v2015_v11 = vpop.f32.mrb[55].mxu0 }
 0xc26   :  { %2067 = vmax.xlane.f32.xlu1 %v2012_v13  ;;  %2073 = vmax.xlane.f32.xlu0 %v5569_v27 }
 0xc29   :  { %v7388_v28 = vpop.f32.mrb[56].mxu0 }
 0xc2a   :  { %2069 = vmax.xlane.f32.xlu0 %v2015_v11  ;;  %2079 = vmax.xlane.f32.xlu1 %v7388_v28  ;;  %v7391_v50 = vpop.f32.mrb[57].mxu0 }
 0xc2b   :  { %v7393_v19 = vpop.f32.mrb[58].mxu0 }
 0xc2c   :  { %v7395_v4 = vpop.f32.mrb[59].mxu0 }
 0xc2e   :  { %2075 = vmax.xlane.f32.xlu1 %v7391_v50  ;;  %2081 = vmax.xlane.f32.xlu0 %v7393_v19 }
 0xc31   :  { %v7399_v35 = vpop.f32.mrb[60].mxu0 }
 0xc32   :  { %2077 = vmax.xlane.f32.xlu0 %v7395_v4  ;;  %v7402_v1 = vpop.f32.mrb[61].mxu0 }
 0xc33   :  { %v7404_v24 = vpop.f32.mrb[62].mxu0 }
 0xc34   :  { %v7406_v61 = vpop.f32.mrb[63].mxu0 }
 0xc3f   :  { %2233 = vrot.lane.b32.xlu1 %v7331_v14, %s6285_s27 }
 0xc48   :  { %2231 = vrot.lane.b32.xlu0 %v7333_v57, %s6285_s27 }
 0xc63   :  { %2087 = vmax.xlane.f32.xlu1 %v7399_v35 }
 0xc67   :  { %2083 = vmax.xlane.f32.xlu1 %v7402_v1  ;;  %2089 = vmax.xlane.f32.xlu0 %v7404_v24 }
 0xc6b   :  { %2085 = vmax.xlane.f32.xlu0 %v7406_v61 }
 0xc78   :  { %2235 = vrot.lane.b32.xlu1 %v7341_v33, %s6285_s27 }
 0xca7   :  { %v2064_v31 = vpop.xlane.xlu0 %2063 }
 0xca8   :  { %v2093_v60 = vsub.f32 %v5564_v12, %v2064_v31 }
 0xcaa   :  { %v2111_v44 = vmul.f32 1.442695, %v2093_v60  ;;  %v2062_v55 = vpop.xlane.xlu1 %2061 }
 0xcab   :  { %v2060_v32 = vpop.xlane.xlu0 %2059  ;;  %v2092_v40 = vsub.f32 %v1999_v22, %v2062_v55  ;;  %v6270_v55 = vld [vmem:[%s8517_s29 + $0x18] sm:$0xff] }
 0xcac   :  { %6060 = vpow2.f32 %v2111_v44  ;;  %v2091_v14 = vsub.f32 %v1996_v36, %v2060_v32 }
 0xcad   :  { %v2109_v43 = vmul.f32 1.442695, %v2092_v40  ;;  %v6271_v40 = vld [vmem:[%s8517_s29 + $0x30] sm:$0xff] }
 0xcae   :  { %v2107_v57 = vmul.f32 1.442695, %v2091_v14 }
 0xcaf   :  { %v2066_v15 = vpop.xlane.xlu0 %2065  ;;  %v2072_v37 = vpop.xlane.xlu1 %2071 }
 0xcb0   :  { %6062 = vpow2.f32 %v2107_v57  ;;  %v2094_v26 = vsub.f32 %v5565_v8, %v2066_v15  ;;  %v2097_v29 = vsub.f32 %v5568_v2, %v2072_v37 }
 0xcb2   :  { %v2113_v52 = vmul.f32 1.442695, %v2094_v26  ;;  %v2119_v58 = vmul.f32 1.442695, %v2097_v29  ;;  %v6272_v26 = vld [vmem:[%s8517_s29 + $0x20] sm:$0xff] }
 0xcb3   :  { %v2068_v6 = vpop.xlane.xlu1 %2067  ;;  %v2074_v18 = vpop.xlane.xlu0 %2073 }
 0xcb4   :  { %6064 = vpow2.f32 %v2113_v52  ;;  %v2095_v33 = vsub.f32 %v2012_v13, %v2068_v6  ;;  %v2098_v23 = vsub.f32 %v5569_v27, %v2074_v18  ;;  %v6269_v13 = vld [vmem:[%s8517_s29] sm:$0xff] }
 0xcb5   :  { %6066 = vpow2.f32 %v2119_v58 }
 0xcb6   :  { %v6061_v7 = vpop.eup %6060  ;;  %6068 = vpow2.f32 %v2109_v43  ;;  %v2115_v3 = vmul.f32 1.442695, %v2095_v33  ;;  %v2121_v5 = vmul.f32 1.442695, %v2098_v23  ;;  %v6273_v43 = vld [vmem:[%s8517_s29 + $0x8] sm:$0xff] }
 0xcb7   :  { %v2070_v63 = vpop.xlane.xlu0 %2069  ;;  %v7421_v56 = vmul.f32 %v6268_v38, %v6061_v7  ;;  %v2080_v36 = vpop.xlane.xlu1 %2079  ;;  %v6274_v33 = vld [vmem:[%s8517_s29 + $0x28] sm:$0xff]  ;;  %v6275_v7 = vld [vmem:[%s8517_s29 + $0x38] sm:$0xff] }
 0xcb8   :  { %6070 = vpow2.f32 %v2115_v3  ;;  %v2096_v12 = vsub.f32 %v2015_v11, %v2070_v63  ;;  %v2101_v63 = vsub.f32 %v7388_v28, %v2080_v36 }
 0xcb9   :  { %2159 = vadd.xlane.f32.xlu0 %v7421_v56  ;;  %6072 = vpow2.f32 %v2121_v5 }
 0xcba   :  { %v6063_v8 = vpop.eup %6062  ;;  %v2117_v22 = vmul.f32 1.442695, %v2096_v12 }
 0xcbb   :  { %v2082_v2 = vpop.xlane.xlu0 %2081  ;;  %v7427_v27 = vmul.f32 %v6269_v13, %v6063_v8  ;;  %v2076_v44 = vpop.xlane.xlu1 %2075  ;;  %v2127_v8 = vmul.f32 1.442695, %v2101_v63 }
 0xcbc   :  { %6074 = vpow2.f32 %v2117_v22  ;;  %v2099_v5 = vsub.f32 %v7391_v50, %v2076_v44  ;;  %v2102_v22 = vsub.f32 %v7393_v19, %v2082_v2 }
 0xcbd   :  { %2155 = vadd.xlane.f32.xlu0 %v7427_v27 }
 0xcbe   :  { %v6065_v31 = vpop.eup %6064  ;;  %v2123_v38 = vmul.f32 1.442695, %v2099_v5 }
 0xcbf   :  { %v6067_v60 = vpop.eup %6066  ;;  %v2078_v11 = vpop.xlane.xlu0 %2077  ;;  %v7433_v32 = vmul.f32 %v6270_v55, %v6065_v31 }
 0xcc0   :  { %v6069_v14 = vpop.eup %6068  ;;  %v7438_v57 = vmul.f32 %v6271_v40, %v6067_v60  ;;  %v2234_v6 = vpop.permute.xlu1 %2233  ;;  %v2100_v12 = vsub.f32 %v7395_v4, %v2078_v11  ;;  %6076 = vpow2.f32 %v2123_v38  ;;  %v6281_v38 = vld [vmem:[%s8517_s29 + $0x68] sm:$0xff] }
 0xcc1   :  { %2161 = vadd.xlane.f32.xlu0 %v7433_v32  ;;  %v7450_v52 = vmul.f32 %v6273_v43, %v6069_v14  ;;  %6078 = vpow2.f32 %v2127_v8 }
 0xcc2   :  { %v6071_v15 = vpop.eup %6070  ;;  %2167 = vadd.xlane.f32.xlu1 %v7438_v57  ;;  %v2125_v13 = vmul.f32 1.442695, %v2100_v12 }
 0xcc3   :  { %v2232_v37 = vpop.permute.xlu0 %2231  ;;  %v7445_v29 = vmul.f32 %v6272_v26, %v6071_v15  ;;  %v6073_v58 = vpop.eup %6072  ;;  %v6278_v26 = vld [vmem:[%s8517_s29 + $0x48] sm:$0xff] }
 0xcc4   :  { %5582 = vmatprep.subr.bf16.mxu1 %v2232_v37  ;;  %v7462_v3 = vmul.f32 %v6275_v7, %v6073_v58  ;;  %6080 = vpow2.f32 %v2125_v13 }
 0xcc5   :  { %5583 = vmatpush3.bf16.msra.mxu1 %v2232_v37  ;;  %2157 = vadd.xlane.f32.xlu0 %v7450_v52 }
 0xcc6   :  { %v6075_v18 = vpop.eup %6074  ;;  %2163 = vadd.xlane.f32.xlu1 %v7445_v29  ;;  %5584 = vmatprep.subr.bf16.mxu1 %v2234_v6 }
 0xcc7   :  { %v7457_v23 = vmul.f32 %v6274_v33, %v6075_v18  ;;  %v6280_v33 = vld [vmem:[%s8517_s29 + $0x58] sm:$0xff] }
 0xcc9   :  { %5585 = vmatpush3.bf16.msra.mxu1 %v2234_v6  ;;  %2165 = vadd.xlane.f32.xlu0 %v7457_v23  ;;  %v6279_v6 = vld [vmem:[%s8517_s29 + $0x60] sm:$0xff] }
 0xcca   :  { %2169 = vadd.xlane.f32.xlu1 %v7462_v3  ;;  %v6077_v55 = vpop.eup %6076 }
 0xccb   :  { %v6079_v40 = vpop.eup %6078 }
 0xcdb   :  { %2239 = vrot.lane.b32.xlu1 %v7349_v48, %s6285_s27  ;;  %v2129_v48 = vmul.f32 1.442695, %v2102_v22  ;;  %v6282_v22 = vld [vmem:[%s8517_s29 + $0x70] sm:$0xff] }
 0xcdd   :  { %6082 = vpow2.f32 %v2129_v48 }
 0xcdf   :  { %2241 = vrot.lane.b32.xlu1 %v7347_v46, %s6285_s27  ;;  %2237 = vrot.lane.b32.xlu0 %v7339_v39, %s6285_s27 }
 0xcf0   :  { %v2088_v31 = vpop.xlane.xlu1 %2087 }
 0xcf1   :  { %v2105_v46 = vsub.f32 %v7399_v35, %v2088_v31  ;;  %v6276_v35 = vld [vmem:[%s8517_s29 + $0x40] sm:$0xff]  ;;  %v6283_v31 = vld [vmem:[%s8517_s29 + $0x78] sm:$0xff] }
 0xcf3   :  { %v2135_v4 = vmul.f32 1.442695, %v2105_v46 }
 0xcf4   :  { %v2084_v60 = vpop.xlane.xlu1 %2083  ;;  %v2090_v39 = vpop.xlane.xlu0 %2089 }
 0xcf5   :  { %v2103_v50 = vsub.f32 %v7402_v1, %v2084_v60  ;;  %v2106_v36 = vsub.f32 %v7404_v24, %v2090_v39  ;;  %v7483_v1 = vmul.f32 %v6276_v35, %v6077_v55  ;;  %v6081_v24 = vpop.eup %6080 }
 0xcf6   :  { %v6083_v37 = vpop.eup %6082  ;;  %v7494_v43 = vmul.f32 %v6278_v26, %v6081_v24 }
 0xcf7   :  { %v2131_v28 = vmul.f32 1.442695, %v2103_v50  ;;  %v2137_v2 = vmul.f32 1.442695, %v2106_v36  ;;  %v7506_v7 = vmul.f32 %v6280_v33, %v6083_v37 }
 0xcf8   :  { %v2236_v44 = vpop.permute.xlu1 %2235  ;;  %v2086_v11 = vpop.xlane.xlu0 %2085 }
 0xcf9   :  { %6084 = vpow2.f32 %v2131_v28  ;;  %v2104_v19 = vsub.f32 %v7406_v61, %v2086_v11  ;;  %5586 = vmatprep.subr.bf16.mxu1 %v2236_v44  ;;  %v6277_v61 = vld [vmem:[%s8517_s29 + $0x50] sm:$0xff] }
 0xcfa   :  { %5587 = vmatpush3.bf16.msra.mxu1 %v2236_v44  ;;  %6086 = vpow2.f32 %v2135_v4  ;;  %v7489_v15 = vmul.f32 %v6277_v61, %v6079_v40 }
 0xcfb   :  { %v2133_v14 = vmul.f32 1.442695, %v2104_v19 }
 0xcfd   :  { %6088 = vpow2.f32 %v2133_v14 }
 0xcfe   :  { %2171 = vadd.xlane.f32.xlu0 %v7483_v1  ;;  %6090 = vpow2.f32 %v2137_v2 }
 0xd02   :  { %2175 = vadd.xlane.f32.xlu0 %v7489_v15 }
 0xd03   :  { %v6085_v58 = vpop.eup %6084  ;;  %2173 = vadd.xlane.f32.xlu1 %v7494_v43 }
 0xd04   :  { %v7501_v18 = vmul.f32 %v6279_v6, %v6085_v58  ;;  %v6087_v5 = vpop.eup %6086 }
 0xd05   :  { %v7518_v13 = vmul.f32 %v6282_v22, %v6087_v5 }
 0xd06   :  { %2177 = vadd.xlane.f32.xlu0 %v7506_v7 }
 0xd07   :  { %v6089_v63 = vpop.eup %6088  ;;  %2179 = vadd.xlane.f32.xlu1 %v7501_v18 }
 0xd08   :  { %v7513_v12 = vmul.f32 %v6281_v38, %v6089_v63  ;;  %v6091_v8 = vpop.eup %6090 }
 0xd09   :  { %v7525_v48 = vmul.f32 %v6283_v31, %v6091_v8 }
 0xd0a   :  { %2181 = vadd.xlane.f32.xlu0 %v7513_v12 }
 0xd0b   :  { %2183 = vadd.xlane.f32.xlu1 %v7518_v13 }
 0xd0e   :  { %2185 = vadd.xlane.f32.xlu0 %v7525_v48 }
 0xd46   :  { %v2160_v46 = vpop.xlane.xlu0 %2159 }
 0xd4a   :  { %v2156_v60 = vpop.xlane.xlu0 %2155 }
 0xd4b   :  { %6092 = vrcp.f32 %v2156_v60 }
 0xd4e   :  { %v2162_v39 = vpop.xlane.xlu0 %2161 }
 0xd4f   :  { %v2168_v50 = vpop.xlane.xlu1 %2167 }
 0xd52   :  { %v2158_v28 = vpop.xlane.xlu0 %2157 }
 0xd53   :  { %v2164_v36 = vpop.xlane.xlu1 %2163  ;;  %6094 = vrcp.f32 %v2158_v28 }
 0xd54   :  { %6096 = vrcp.f32 %v2162_v39 }
 0xd55   :  { %6098 = vrcp.f32 %v2160_v46  ;;  %v6093_v55 = vpop.eup %6092 }
 0xd56   :  { %6100 = vrcp.f32 %v2164_v36  ;;  %v2166_v4 = vpop.xlane.xlu0 %2165  ;;  %v2203_v35 = vmul.f32 %v6093_v55, %v7427_v27 }
 0xd57   :  { %v2170_v44 = vpop.xlane.xlu1 %2169  ;;  %6102 = vrcp.f32 %v2166_v4 }
 0xd58   :  { %6104 = vrcp.f32 %v2170_v44 }
 0xd59   :  { %6106 = vrcp.f32 %v2168_v50 }
 0xd5a   :  { %v2238_v11 = vpop.permute.xlu0 %2237 }
 0xd5b   :  { %v2240_v19 = vpop.permute.xlu1 %2239  ;;  %5588 = vmatprep.subr.bf16.mxu1 %v2238_v11 }
 0xd5c   :  { %5589 = vmatpush3.bf16.msra.mxu1 %v2238_v11 }
 0xd5d   :  { %v6095_v2 = vpop.eup %6094  ;;  %5590 = vmatprep.subr.bf16.mxu1 %v2240_v19 }
 0xd5e   :  { %v6097_v14 = vpop.eup %6096  ;;  %v2204_v40 = vmul.f32 %v6095_v2, %v7450_v52 }
 0xd5f   :  { %v6099_v24 = vpop.eup %6098  ;;  %v2242_v37 = vpop.permute.xlu1 %2241  ;;  %v2206_v6 = vmul.f32 %v6097_v14, %v7433_v32 }
 0xd60   :  { %v6101_v61 = vpop.eup %6100  ;;  %5591 = vmatpush3.bf16.msra.mxu1 %v2240_v19  ;;  %v2219_v26 = vpack.c.bf16 %v2204_v40, %v2203_v35  ;;  %v2205_v5 = vmul.f32 %v6099_v24, %v7421_v56 }
 0xd61   :  { %v6103_v58 = vpop.eup %6102  ;;  %5592 = vmatprep.subr.bf16.mxu1 %v2242_v37  ;;  %v2207_v63 = vmul.f32 %v6101_v61, %v7445_v29 }
 0xd62   :  { %5594 = vmatprep.mubr.bf16.mxu1 %v2219_v26  ;;  %v2208_v33 = vmul.f32 %v6103_v58, %v7457_v23  ;;  %v2220_v27 = vpack.c.bf16 %v2206_v6, %v2205_v5  ;;  %v6105_v38 = vpop.eup %6104 }
 0xd63   :  { %v6107_v8 = vpop.eup %6106  ;;  %v2210_v22 = vmul.f32 %v6105_v38, %v7462_v3 }
 0xd64   :  { %5593 = vmatpush3.bf16.msra.mxu1 %v2242_v37  ;;  %v2221_v52 = vpack.c.bf16 %v2208_v33, %v2207_v63  ;;  %v2209_v31 = vmul.f32 %v6107_v8, %v7438_v57 }
 0xd66   :  { %v2222_v32 = vpack.c.bf16 %v2210_v22, %v2209_v31 }
 0xd67   :  { %5595 = vmatmul.mubr.bf16.vlgmr.msra.gmra.mrb[68].mxu1 %v2220_v27 }
 0xd68   :  { %5598 = vmatprep.mubr.bf16.mxu1 %v2221_v52 }
 0xd6f   :  { %5599 = vmatmul.mubr.bf16.gmra.mrb[72].mxu1 %v2222_v32 }
 0xd8b   :  { %v2172_v46 = vpop.xlane.xlu0 %2171 }
 0xd8c   :  { %6108 = vrcp.f32 %v2172_v46 }
 0xd8f   :  { %v2176_v23 = vpop.xlane.xlu0 %2175 }
 0xd90   :  { %v2174_v60 = vpop.xlane.xlu1 %2173 }
 0xd91   :  { %6110 = vrcp.f32 %v2174_v60 }
 0xd92   :  { %6112 = vrcp.f32 %v2176_v23 }
 0xd93   :  { %v2178_v56 = vpop.xlane.xlu0 %2177 }
 0xd94   :  { %v2180_v29 = vpop.xlane.xlu1 %2179  ;;  %6114 = vrcp.f32 %v2178_v56 }
 0xd95   :  { %6116 = vrcp.f32 %v2180_v29 }
 0xd96   :  { %v6109_v28 = vpop.eup %6108 }
 0xd97   :  { %v2182_v39 = vpop.xlane.xlu0 %2181  ;;  %v2211_v4 = vmul.f32 %v6109_v28, %v7483_v1 }
 0xd98   :  { %v2184_v50 = vpop.xlane.xlu1 %2183  ;;  %6118 = vrcp.f32 %v2182_v39 }
 0xd99   :  { %6120 = vrcp.f32 %v2184_v50 }
 0xd9b   :  { %v6111_v3 = vpop.eup %6110  ;;  %v2186_v36 = vpop.xlane.xlu0 %2185 }
 0xd9c   :  { %v6113_v57 = vpop.eup %6112  ;;  %6122 = vrcp.f32 %v2186_v36  ;;  %v2212_v44 = vmul.f32 %v6111_v3, %v7494_v43 }
 0xd9d   :  { %v2213_v19 = vmul.f32 %v6113_v57, %v7489_v15 }
 0xd9e   :  { %v6115_v11 = vpop.eup %6114  ;;  %v2223_v55 = vpack.c.bf16 %v2212_v44, %v2211_v4 }
 0xd9f   :  { %v2214_v2 = vmul.f32 %v6115_v11, %v7506_v7  ;;  %v6117_v14 = vpop.eup %6116 }
 0xda0   :  { %5602 = vmatprep.mubr.bf16.mxu1 %v2223_v55  ;;  %v2215_v24 = vmul.f32 %v6117_v14, %v7501_v18 }
 0xda1   :  { %v2224_v35 = vpack.c.bf16 %v2214_v2, %v2213_v19 }
 0xda2   :  { %v6119_v40 = vpop.eup %6118 }
 0xda3   :  { %5603 = vmatmul.mubr.bf16.gmra.mrb[76].mxu1 %v2224_v35  ;;  %v2216_v61 = vmul.f32 %v6119_v40, %v7513_v12  ;;  %v6121_v37 = vpop.eup %6120 }
 0xda4   :  { %v2217_v43 = vmul.f32 %v6121_v37, %v7518_v13 }
 0xda5   :  { %v2225_v26 = vpack.c.bf16 %v2216_v61, %v2215_v24 }
 0xda6   :  { %v6123_v1 = vpop.eup %6122 }
 0xda7   :  { %5606 = vmatprep.mubr.bf16.mxu1 %v2225_v26  ;;  %v2218_v58 = vmul.f32 %v6123_v1, %v7525_v48 }
 0xda9   :  { %v2226_v15 = vpack.c.bf16 %v2218_v58, %v2217_v43 }
 0xdab   :  { %5607 = vmatmul.mubr.bf16.gmra.mrb[80].mxu1 %v2226_v15 }
 0xe3a   :  { %v5596_v7 = vpop.f32.mrb[68].mxu1 }
 0xe3b   :  { %v2285_v6 = vpop.f32.mrb[69].mxu1  ;;  %v7548_v18 = vadd.f32 %v5596_v7, %v7262_v30 }
 0xe3c   :  { %v7545_v33 = vadd.f32 %v2285_v6, %v7254_v62  ;;  %v5597_v5 = vpop.f32.mrb[70].mxu1 }
 0xe3d   :  { %v2288_v63 = vpop.f32.mrb[71].mxu1  ;;  %v7556_v48 = vadd.f32 %v5597_v5, %v7265_v0  ;;  %v2370_v38 = vsel %vm346_vm2, %v7548_v18, 0.0 }
 0xe3e   :  { %v7551_v12 = vadd.f32 %v2288_v63, %v7257_v41  ;;  %v2364_v13 = vsel %vm346_vm2, %v7545_v33, 0.0 }
 0xe3f   :  { %2365 = vadd.xlane.f32.xlu1 %v2364_v13  ;;  %v2373_v8 = vsel %vm346_vm2, %v7556_v48, 0.0 }
 0xe40   :  { %v2367_v27 = vsel %vm346_vm2, %v7551_v12, 0.0 }
 0xe41   :  { %2368 = vadd.xlane.f32.xlu0 %v2367_v27 }
 0xe42   :  { %v5600_v62 = vpop.f32.mrb[72].mxu1 }
 0xe43   :  { %2371 = vadd.xlane.f32.xlu1 %v2370_v38  ;;  %v2301_v30 = vpop.f32.mrb[73].mxu1  ;;  %v7568_v22 = vadd.f32 %v5600_v62, %v7281_v25 }
 0xe44   :  { %v7563_v41 = vadd.f32 %v2301_v30, %v7272_v42  ;;  %v5601_v52 = vpop.f32.mrb[74].mxu1 }
 0xe45   :  { %2374 = vadd.xlane.f32.xlu0 %v2373_v8  ;;  %v2304_v0 = vpop.f32.mrb[75].mxu1  ;;  %v7576_v46 = vadd.f32 %v5601_v52, %v7284_v9  ;;  %v2382_v23 = vsel %vm346_vm2, %v7568_v22, 0.0 }
 0xe46   :  { %v7571_v31 = vadd.f32 %v2304_v0, %v7275_v54  ;;  %v2376_v32 = vsel %vm346_vm2, %v7563_v41, 0.0 }
 0xe47   :  { %2377 = vadd.xlane.f32.xlu1 %v2376_v32  ;;  %v2385_v25 = vsel %vm346_vm2, %v7576_v46, 0.0 }
 0xe48   :  { %v2379_v42 = vsel %vm346_vm2, %v7571_v31, 0.0 }
 0xe49   :  { %2380 = vadd.xlane.f32.xlu0 %v2379_v42 }
 0xe4b   :  { %2383 = vadd.xlane.f32.xlu1 %v2382_v23 }
 0xe4d   :  { %2386 = vadd.xlane.f32.xlu0 %v2385_v25 }
 0xe76   :  { %v5604_v54 = vpop.f32.mrb[76].mxu1 }
 0xe77   :  { %v2317_v60 = vpop.f32.mrb[77].mxu1  ;;  %v7588_v39 = vadd.f32 %v5604_v54, %v7299_v53 }
 0xe78   :  { %v7585_v56 = vadd.f32 %v2317_v60, %v7290_v34  ;;  %v5605_v29 = vpop.f32.mrb[78].mxu1 }
 0xe79   :  { %v2320_v9 = vpop.f32.mrb[79].mxu1  ;;  %v7596_v3 = vadd.f32 %v5605_v29, %v7302_v21  ;;  %v2394_v57 = vsel %vm346_vm2, %v7588_v39, 0.0 }
 0xe7a   :  { %v7591_v50 = vadd.f32 %v2320_v9, %v7293_v59  ;;  %v2388_v28 = vsel %vm346_vm2, %v7585_v56, 0.0 }
 0xe7b   :  { %2389 = vadd.xlane.f32.xlu1 %v2388_v28  ;;  %v2397_v44 = vsel %vm346_vm2, %v7596_v3, 0.0 }
 0xe7c   :  { %v2391_v36 = vsel %vm346_vm2, %v7591_v50, 0.0 }
 0xe7d   :  { %2392 = vadd.xlane.f32.xlu0 %v2391_v36  ;;  %v5901_v36 = vld [vmem:[%s8484_s9 + $0x18] sm:$0xff]  }
 0xe7e   :  { %v5608_v34 = vpop.f32.mrb[80].mxu1 }
 0xe7f   :  { %2395 = vadd.xlane.f32.xlu1 %v2394_v57  ;;  %v2333_v53 = vpop.f32.mrb[81].mxu1  ;;  %v7608_v11 = vadd.f32 %v5608_v34, %v7317_v16 }
 0xe80   :  { %v7603_v59 = vadd.f32 %v2333_v53, %v7308_v10  ;;  %v5609_v4 = vpop.f32.mrb[82].mxu1 }
 0xe81   :  { %2398 = vadd.xlane.f32.xlu0 %v2397_v44  ;;  %v2336_v21 = vpop.f32.mrb[83].mxu1  ;;  %v7616_v2 = vadd.f32 %v5609_v4, %v7320_v17  ;;  %v2406_v14 = vsel %vm346_vm2, %v7608_v11, 0.0 }
 0xe82   :  { %v7611_v55 = vadd.f32 %v2336_v21, %v7311_v20  ;;  %v2400_v19 = vsel %vm346_vm2, %v7603_v59, 0.0 }
 0xe83   :  { %2401 = vadd.xlane.f32.xlu1 %v2400_v19  ;;  %v2409_v16 = vsel %vm346_vm2, %v7616_v2, 0.0 }
 0xe84   :  { %v2403_v10 = vsel %vm346_vm2, %v7611_v55, 0.0 }
 0xe85   :  { %2404 = vadd.xlane.f32.xlu0 %v2403_v10 }
 0xe87   :  { %2407 = vadd.xlane.f32.xlu1 %v2406_v14 }
 0xe89   :  { %2410 = vadd.xlane.f32.xlu0 %v2409_v16 }
 0xecc   :  { %v2366_v20 = vpop.xlane.xlu1 %2365 }
 0xecd   :  { %v2412_v35 = vmul.f32 0.03125, %v2366_v20 }
 0xece   :  { %v2369_v40 = vpop.xlane.xlu0 %2368 }
 0xecf   :  { %v7625_v24 = vsub.f32 %v7545_v33, %v2412_v35  ;;  %v2413_v17 = vmul.f32 0.03125, %v2369_v40 }
 0xed0   :  { %v2372_v61 = vpop.xlane.xlu1 %2371 }
 0xed1   :  { %v7628_v37 = vsub.f32 %v7551_v12, %v2413_v17  ;;  %v2414_v26 = vmul.f32 0.03125, %v2372_v61  ;;  %v2444_v1 = vmul.f32 %v7625_v24, %v7625_v24 }
 0xed2   :  { %v2375_v43 = vpop.xlane.xlu0 %2374 }
 0xed3   :  { %v7633_v58 = vsub.f32 %v7548_v18, %v2414_v26  ;;  %v2415_v15 = vmul.f32 0.03125, %v2375_v43  ;;  %v2460_v7 = vsel %vm346_vm2, %v2444_v1, 0.0  ;;  %v2445_v6 = vmul.f32 %v7628_v37, %v7628_v37 }
 0xed4   :  { %v2378_v33 = vpop.xlane.xlu1 %2377  ;;  %2461 = vadd.xlane.f32.xlu1 %v2460_v7 }
 0xed5   :  { %v7639_v5 = vsub.f32 %v7556_v48, %v2415_v15  ;;  %v2416_v63 = vmul.f32 0.03125, %v2378_v33  ;;  %v2463_v12 = vsel %vm346_vm2, %v2445_v6, 0.0  ;;  %v2446_v13 = vmul.f32 %v7633_v58, %v7633_v58 }
 0xed6   :  { %2464 = vadd.xlane.f32.xlu0 %v2463_v12  ;;  %v2381_v18 = vpop.xlane.xlu0 %2380 }
 0xed7   :  { %v7645_v27 = vsub.f32 %v7563_v41, %v2416_v63  ;;  %v2417_v62 = vmul.f32 0.03125, %v2381_v18  ;;  %v2466_v38 = vsel %vm346_vm2, %v2446_v13, 0.0  ;;  %v2447_v30 = vmul.f32 %v7639_v5, %v7639_v5 }
 0xed8   :  { %v2384_v52 = vpop.xlane.xlu1 %2383  ;;  %2467 = vadd.xlane.f32.xlu1 %v2466_v38 }
 0xed9   :  { %v7651_v48 = vsub.f32 %v7571_v31, %v2417_v62  ;;  %v2418_v8 = vmul.f32 0.03125, %v2384_v52  ;;  %v2469_v0 = vsel %vm346_vm2, %v2447_v30, 0.0  ;;  %v2448_v32 = vmul.f32 %v7645_v27, %v7645_v27 }
 0xeda   :  { %2470 = vadd.xlane.f32.xlu0 %v2469_v0  ;;  %v2387_v41 = vpop.xlane.xlu0 %2386 }
 0xedb   :  { %v7657_v42 = vsub.f32 %v7568_v22, %v2418_v8  ;;  %v2419_v23 = vmul.f32 0.03125, %v2387_v41  ;;  %v2472_v25 = vsel %vm346_vm2, %v2448_v32, 0.0  ;;  %v2449_v54 = vmul.f32 %v7651_v48, %v7651_v48  ;;  %v5904_v41 = vld [vmem:[%s8485_s11 + $0x20] sm:$0xff]  }
 0xedc   :  { %2473 = vadd.xlane.f32.xlu1 %v2472_v25  ;;  %5630 = vmatprep.subr.bf16.mxu0 %v5904_v41 }
 0xedd   :  { %v7663_v31 = vsub.f32 %v7576_v46, %v2419_v23  ;;  %v2475_v60 = vsel %vm346_vm2, %v2449_v54, 0.0  ;;  %v2450_v29 = vmul.f32 %v7657_v42, %v7657_v42  ;;  %v5900_v46 = vld [vmem:[%s8484_s9 + $0x10] sm:$0xff]   ;;  %v5905_v23 = vld [vmem:[%s8485_s11 + $0x28] sm:$0xff]   ;;  %5631 = vmatpush3.bf16.msra.mxu0 %v5904_v41 }
 0xede   :  { %2476 = vadd.xlane.f32.xlu0 %v2475_v60  ;;  %5610 = vmatprep.subr.bf16.mxu1 %v5900_v46 }
 0xedf   :  { %v2478_v9 = vsel %vm346_vm2, %v2450_v29, 0.0  ;;  %v2451_v22 = vmul.f32 %v7663_v31, %v7663_v31  ;;  %5611 = vmatpush3.bf16.msra.mxu1 %v5900_v46  ;;  %5632 = vmatprep.subr.bf16.mxu0 %v5905_v23 }
 0xee0   :  { %2479 = vadd.xlane.f32.xlu1 %v2478_v9  ;;  %5612 = vmatprep.subr.bf16.mxu1 %v5901_v36 }
 0xee1   :  { %v2481_v28 = vsel %vm346_vm2, %v2451_v22, 0.0  ;;  %5633 = vmatpush3.bf16.msra.mxu0 %v5905_v23 }
 0xee2   :  { %2482 = vadd.xlane.f32.xlu0 %v2481_v28 }
 0xee3   :  { %5613 = vmatpush3.bf16.msra.mxu1 %v5901_v36 }
 0xf08   :  { %v2390_v34 = vpop.xlane.xlu1 %2389 }
 0xf09   :  { %v2420_v57 = vmul.f32 0.03125, %v2390_v34 }
 0xf0a   :  { %v2393_v53 = vpop.xlane.xlu0 %2392 }
 0xf0b   :  { %v7679_v4 = vsub.f32 %v7585_v56, %v2420_v57  ;;  %v2421_v44 = vmul.f32 0.03125, %v2393_v53 }
 0xf0c   :  { %v2396_v21 = vpop.xlane.xlu1 %2395 }
 0xf0d   :  { %v7682_v19 = vsub.f32 %v7591_v50, %v2421_v44  ;;  %v2422_v10 = vmul.f32 0.03125, %v2396_v21  ;;  %v2452_v14 = vmul.f32 %v7679_v4, %v7679_v4 }
 0xf0e   :  { %v2399_v16 = vpop.xlane.xlu0 %2398 }
 0xf0f   :  { %v7687_v20 = vsub.f32 %v7588_v39, %v2422_v10  ;;  %v2423_v35 = vmul.f32 0.03125, %v2399_v16  ;;  %v2484_v40 = vsel %vm346_vm2, %v2452_v14, 0.0  ;;  %v2453_v56 = vmul.f32 %v7682_v19, %v7682_v19 }
 0xf10   :  { %2485 = vadd.xlane.f32.xlu1 %v2484_v40  ;;  %v2402_v17 = vpop.xlane.xlu1 %2401 }
 0xf11   :  { %v7693_v61 = vsub.f32 %v7596_v3, %v2423_v35  ;;  %v2424_v50 = vmul.f32 0.03125, %v2402_v17  ;;  %v2487_v26 = vsel %vm346_vm2, %v2453_v56, 0.0  ;;  %v2454_v1 = vmul.f32 %v7687_v20, %v7687_v20 }
 0xf12   :  { %2488 = vadd.xlane.f32.xlu0 %v2487_v26  ;;  %v2405_v39 = vpop.xlane.xlu0 %2404 }
 0xf13   :  { %v7699_v43 = vsub.f32 %v7603_v59, %v2424_v50  ;;  %v2425_v15 = vmul.f32 0.03125, %v2405_v39  ;;  %v2490_v7 = vsel %vm346_vm2, %v2454_v1, 0.0  ;;  %v2455_v6 = vmul.f32 %v7693_v61, %v7693_v61 }
 0xf14   :  { %2491 = vadd.xlane.f32.xlu1 %v2490_v7  ;;  %v2408_v3 = vpop.xlane.xlu1 %2407 }
 0xf15   :  { %v7705_v33 = vsub.f32 %v7611_v55, %v2425_v15  ;;  %v2426_v63 = vmul.f32 0.03125, %v2408_v3  ;;  %v2493_v12 = vsel %vm346_vm2, %v2455_v6, 0.0  ;;  %v2456_v13 = vmul.f32 %v7699_v43, %v7699_v43 }
 0xf16   :  { %2494 = vadd.xlane.f32.xlu0 %v2493_v12  ;;  %v2411_v59 = vpop.xlane.xlu0 %2410 }
 0xf17   :  { %v7711_v18 = vsub.f32 %v7608_v11, %v2426_v63  ;;  %v2427_v62 = vmul.f32 0.03125, %v2411_v59  ;;  %v2496_v38 = vsel %vm346_vm2, %v2456_v13, 0.0  ;;  %v2457_v30 = vmul.f32 %v7705_v33, %v7705_v33 }
 0xf18   :  { %2497 = vadd.xlane.f32.xlu1 %v2496_v38 }
 0xf19   :  { %v7717_v55 = vsub.f32 %v7616_v2, %v2427_v62  ;;  %v2499_v52 = vsel %vm346_vm2, %v2457_v30, 0.0  ;;  %v2458_v8 = vmul.f32 %v7711_v18, %v7711_v18  ;;  %v5902_v2 = vld [vmem:[%s8488_s13] sm:$0xff]  }
 0xf1a   :  { %2500 = vadd.xlane.f32.xlu0 %v2499_v52  ;;  %5654 = vmatprep.subr.bf16.mxu1 %v5902_v2 }
 0xf1b   :  { %v2502_v0 = vsel %vm346_vm2, %v2458_v8, 0.0  ;;  %v2459_v11 = vmul.f32 %v7717_v55, %v7717_v55 }
 0xf1c   :  { %2503 = vadd.xlane.f32.xlu1 %v2502_v0 }
 0xf1d   :  { %v2505_v32 = vsel %vm346_vm2, %v2459_v11, 0.0 }
 0xf1e   :  { %2506 = vadd.xlane.f32.xlu0 %v2505_v32 }
 0xf61   :  { %v2462_v25 = vpop.xlane.xlu1 %2461 }
 0xf62   :  { %v2508_v54 = vmul.f32 0.03125, %v2462_v25 }
 0xf63   :  { %v2465_v60 = vpop.xlane.xlu0 %2464 }
 0xf64   :  { %v2524_v29 = vadd.f32 1e-06, %v2508_v54  ;;  %v2509_v9 = vmul.f32 0.03125, %v2465_v60 }
 0xf65   :  { %v2468_v22 = vpop.xlane.xlu1 %2467 }
 0xf66   :  { %6124 = vrsqrt.f32 %v2524_v29  ;;  %v2525_v28 = vadd.f32 1e-06, %v2509_v9  ;;  %v2510_v46 = vmul.f32 0.03125, %v2468_v22 }
 0xf67   :  { %v2471_v36 = vpop.xlane.xlu0 %2470 }
 0xf68   :  { %6126 = vrsqrt.f32 %v2525_v28  ;;  %v2526_v34 = vadd.f32 1e-06, %v2510_v46  ;;  %v2511_v57 = vmul.f32 0.03125, %v2471_v36 }
 0xf69   :  { %v2474_v53 = vpop.xlane.xlu1 %2473 }
 0xf6a   :  { %6128 = vrsqrt.f32 %v2526_v34  ;;  %v2527_v44 = vadd.f32 1e-06, %v2511_v57  ;;  %v2512_v21 = vmul.f32 0.03125, %v2474_v53 }
 0xf6b   :  { %v2477_v10 = vpop.xlane.xlu0 %2476 }
 0xf6c   :  { %6130 = vrsqrt.f32 %v2527_v44  ;;  %v2528_v14 = vadd.f32 1e-06, %v2512_v21  ;;  %v2513_v16 = vmul.f32 0.03125, %v2477_v10 }
 0xf6d   :  { %v2480_v35 = vpop.xlane.xlu1 %2479 }
 0xf6e   :  { %6132 = vrsqrt.f32 %v2528_v14  ;;  %v2529_v40 = vadd.f32 1e-06, %v2513_v16  ;;  %v2514_v56 = vmul.f32 0.03125, %v2480_v35 }
 0xf6f   :  { %v2483_v17 = vpop.xlane.xlu0 %2482 }
 0xf70   :  { %v6125_v50 = vpop.eup %6124  ;;  %6134 = vrsqrt.f32 %v2529_v40  ;;  %v2530_v26 = vadd.f32 1e-06, %v2514_v56  ;;  %v2515_v1 = vmul.f32 0.03125, %v2483_v17 }
 0xf71   :  { %v7736_v7 = vmul.f32 %v6125_v50, %v7625_v24 }
 0xf72   :  { %v6127_v39 = vpop.eup %6126  ;;  %6136 = vrsqrt.f32 %v2530_v26  ;;  %v2531_v15 = vadd.f32 1e-06, %v2515_v1 }
 0xf73   :  { %v7739_v6 = vmul.f32 %v6127_v39, %v7628_v37  ;;  %v5903_v37 = vld [vmem:[%s8488_s13 + $0x8] sm:$0xff]  }
 0xf74   :  { %v6129_v3 = vpop.eup %6128  ;;  %6138 = vrsqrt.f32 %v2531_v15 }
 0xf75   :  { %v2572_v63 = vpack.c.bf16 %v7739_v6, %v7736_v7  ;;  %v7744_v13 = vmul.f32 %v6129_v3, %v7633_v58 }
 0xf76   :  { %v6131_v12 = vpop.eup %6130 }
 0xf77   :  { %v7747_v59 = vmul.f32 %v6131_v12, %v7639_v5  ;;  %5614 = vmatprep.mubr.msk.bf16.mxu1 %vm346_vm2, %v2572_v63  ;;  %v4934_v63 = vld [vmem:[%s8489_s7] ss:$0 sm:$0xff] }
 0xf78   :  { %v6133_v62 = vpop.eup %6132 }
 0xf79   :  { %v2573_v24 = vpack.c.bf16 %v7747_v59, %v7744_v13  ;;  %v7757_v30 = vmul.f32 %v6133_v62, %v7645_v27 }
 0xf7a   :  { %v6135_v38 = vpop.eup %6134 }
 0xf7b   :  { %5615 = vmatmul.mubr.msk.bf16.vlgmr.msra.gmra.mrb[84].mxu1 %vm346_vm2, %v2573_v24  ;;  %v7760_v58 = vmul.f32 %v6135_v38, %v7651_v48  ;;  %v7807_v38 = vadd.f32 %v4934_v63, %v6509_v51  ;;  %v7826_v51 = vadd.f32 %v6506_v49, %v4934_v63 }
 0xf7c   :  { %v6137_v5 = vpop.eup %6136  ;;  %5655 = vmatpush3.bf16.msra.mxu1 %v5902_v2 }
 0xf7d   :  { %v2574_v52 = vpack.c.bf16 %v7760_v58, %v7757_v30  ;;  %5656 = vmatprep.subr.bf16.mxu1 %v5903_v37  ;;  %v7766_v0 = vmul.f32 %v6137_v5, %v7657_v42 }
 0xf7e   :  { %v6139_v8 = vpop.eup %6138 }
 0xf7f   :  { %5618 = vmatprep.mubr.msk.bf16.mxu1 %vm346_vm2, %v2574_v52  ;;  %v7769_v11 = vmul.f32 %v6139_v8, %v7663_v31  ;;  %v5907_v8 = vld [vmem:[%s8485_s11 + $0x38] sm:$0xff]  }
 0xf80   :  { %5657 = vmatpush3.bf16.msra.mxu1 %v5903_v37  ;;  %v7804_v37 = vadd.f32 %v4934_v63, %v6502_v47  ;;  %v7823_v47 = vadd.f32 %v6498_v45, %v4934_v63  ;;  %v5006_v45 = vld [vmem:[%s8486_s10 + $0x1] ss:$0 sm:$0xff] }
 0xf81   :  { %v2575_v27 = vpack.c.bf16 %v7769_v11, %v7766_v0 }
 0xf82   :  { %v3160_v52 = vpack.c.bf16 %v7807_v38, %v7804_v37 }
 0xf83   :  { %5619 = vmatmul.mubr.msk.bf16.gmra.mrb[88].mxu1 %vm346_vm2, %v2575_v27 }
 0xf9d   :  { %v2486_v48 = vpop.xlane.xlu1 %2485 }
 0xf9e   :  { %v2516_v32 = vmul.f32 0.03125, %v2486_v48 }
 0xf9f   :  { %v2489_v2 = vpop.xlane.xlu0 %2488 }
 0xfa0   :  { %v2532_v41 = vadd.f32 1e-06, %v2516_v32  ;;  %v2517_v23 = vmul.f32 0.03125, %v2489_v2 }
 0xfa1   :  { %v2492_v25 = vpop.xlane.xlu1 %2491 }
 0xfa2   :  { %6140 = vrsqrt.f32 %v2532_v41  ;;  %v2533_v54 = vadd.f32 1e-06, %v2517_v23  ;;  %v2518_v60 = vmul.f32 0.03125, %v2492_v25 }
 0xfa3   :  { %v2495_v42 = vpop.xlane.xlu0 %2494 }
 0xfa4   :  { %6142 = vrsqrt.f32 %v2533_v54  ;;  %v2534_v29 = vadd.f32 1e-06, %v2518_v60  ;;  %v2519_v31 = vmul.f32 0.03125, %v2495_v42 }
 0xfa5   :  { %v2498_v9 = vpop.xlane.xlu1 %2497 }
 0xfa6   :  { %6144 = vrsqrt.f32 %v2534_v29  ;;  %v2535_v22 = vadd.f32 1e-06, %v2519_v31  ;;  %v2520_v28 = vmul.f32 0.03125, %v2498_v9 }
 0xfa7   :  { %v2501_v46 = vpop.xlane.xlu0 %2500 }
 0xfa8   :  { %6146 = vrsqrt.f32 %v2535_v22  ;;  %v2536_v36 = vadd.f32 1e-06, %v2520_v28  ;;  %v2521_v34 = vmul.f32 0.03125, %v2501_v46 }
 0xfa9   :  { %v2504_v57 = vpop.xlane.xlu1 %2503 }
 0xfaa   :  { %6148 = vrsqrt.f32 %v2536_v36  ;;  %v2537_v53 = vadd.f32 1e-06, %v2521_v34  ;;  %v2522_v44 = vmul.f32 0.03125, %v2504_v57 }
 0xfab   :  { %v2507_v21 = vpop.xlane.xlu0 %2506 }
 0xfac   :  { %v6141_v10 = vpop.eup %6140  ;;  %6150 = vrsqrt.f32 %v2537_v53  ;;  %v2538_v14 = vadd.f32 1e-06, %v2522_v44  ;;  %v2523_v16 = vmul.f32 0.03125, %v2507_v21 }
 0xfad   :  { %v7775_v56 = vmul.f32 %v6141_v10, %v7679_v4 }
 0xfae   :  { %v6143_v35 = vpop.eup %6142  ;;  %6152 = vrsqrt.f32 %v2538_v14  ;;  %v2539_v40 = vadd.f32 1e-06, %v2523_v16 }
 0xfaf   :  { %v7778_v17 = vmul.f32 %v6143_v35, %v7682_v19 }
 0xfb0   :  { %v6145_v50 = vpop.eup %6144  ;;  %6154 = vrsqrt.f32 %v2539_v40 }
 0xfb1   :  { %v2576_v26 = vpack.c.bf16 %v7778_v17, %v7775_v56  ;;  %v7784_v39 = vmul.f32 %v6145_v50, %v7687_v20 }
 0xfb2   :  { %v6147_v1 = vpop.eup %6146 }
 0xfb3   :  { %5622 = vmatprep.mubr.msk.bf16.mxu1 %vm346_vm2, %v2576_v26  ;;  %v7787_v15 = vmul.f32 %v6147_v1, %v7693_v61 }
 0xfb4   :  { %v6149_v3 = vpop.eup %6148 }
 0xfb5   :  { %v2577_v4 = vpack.c.bf16 %v7787_v15, %v7784_v39  ;;  %v7796_v12 = vmul.f32 %v6149_v3, %v7699_v43 }
 0xfb6   :  { %v6151_v19 = vpop.eup %6150 }
 0xfb7   :  { %5623 = vmatmul.mubr.msk.bf16.gmra.mrb[92].mxu1 %vm346_vm2, %v2577_v4  ;;  %v7799_v20 = vmul.f32 %v6151_v19, %v7705_v33 }
 0xfb8   :  { %v6153_v62 = vpop.eup %6152 }
 0xfb9   :  { %v2578_v61 = vpack.c.bf16 %v7799_v20, %v7796_v12  ;;  %v7811_v5 = vmul.f32 %v6153_v62, %v7711_v18  ;;  %v3161_v18 = vpack.c.bf16 %v7826_v51, %v7823_v47 }
 0xfba   :  { %v6155_v24 = vpop.eup %6154 }
 0xfbb   :  { %5626 = vmatprep.mubr.msk.bf16.mxu1 %vm346_vm2, %v2578_v61  ;;  %v7814_v43 = vmul.f32 %v6155_v24, %v7717_v55  ;;  %v5906_v55 = vld [vmem:[%s8485_s11 + $0x30] sm:$0xff]  }
 0xfbc   :  { %5634 = vmatprep.subr.bf16.mxu0 %v5906_v55 }
 0xfbd   :  { %v2579_v33 = vpack.c.bf16 %v7814_v43, %v7811_v5  ;;  %5635 = vmatpush3.bf16.msra.mxu0 %v5906_v55 }
 0xfbe   :  { %5636 = vmatprep.subr.bf16.mxu0 %v5907_v8 }
 0xfbf   :  { %5627 = vmatmul.mubr.msk.bf16.gmra.mrb[96].mxu1 %vm346_vm2, %v2579_v33 }
 0xfc0   :  { %5658 = vmatprep.mubr.msk.bf16.mxu1 %vm346_vm2, %v3160_v52 }
 0xfc1   :  { %5637 = vmatpush3.bf16.msra.mxu0 %v5907_v8 }
 0xfc7   :  { %5659 = vmatmul.mubr.msk.bf16.vlgmr.msra.gmra.mrb[100].mxu1 %vm346_vm2, %v3161_v18 }
0x104e   :  { %v5616_v49 = vpop.f32.mrb[84].mxu1 }
0x104f   :  { %v2672_v27 = vadd.f32 %v5616_v49, %v5006_v45  ;;  %v2663_v48 = vpop.f32.mrb[85].mxu1 }
0x1050   :  { %v2664_v32 = vadd.f32 %v5006_v45, %v2663_v48  ;;  %v5617_v2 = vpop.f32.mrb[86].mxu1 }
0x1051   :  { %v2675_v41 = vadd.f32 %v5617_v2, %v5006_v45  ;;  %v2666_v23 = vpop.f32.mrb[87].mxu1  ;;  %v2728_v54 = vmax.f32 %v2672_v27, 0.0 }
0x1052   :  { %v2667_v25 = vadd.f32 %v5006_v45, %v2666_v23  ;;  %v2726_v42 = vmax.f32 %v2664_v32, 0.0 }
0x1053   :  { %v2729_v60 = vmax.f32 %v2675_v41, 0.0 }
0x1054   :  { %v2727_v29 = vmax.f32 %v2667_v25, 0.0 }
0x1055   :  { %v2743_v31 = vpack.c.bf16 %v2729_v60, %v2728_v54 }
0x1056   :  { %v2742_v9 = vpack.c.bf16 %v2727_v29, %v2726_v42  ;;  %v5620_v22 = vpop.f32.mrb[88].mxu1 }
0x1057   :  { %v2688_v28 = vadd.f32 %v5620_v22, %v5006_v45  ;;  %v2679_v46 = vpop.f32.mrb[89].mxu1 }
0x1058   :  { %v2680_v36 = vadd.f32 %v5006_v45, %v2679_v46  ;;  %v5621_v34 = vpop.f32.mrb[90].mxu1  ;;  %5638 = vmatprep.mubr.msk.bf16.mxu0 %vm1367_vm3, %v2742_v9 }
0x1059   :  { %v2691_v57 = vadd.f32 %v5621_v34, %v5006_v45  ;;  %v2682_v53 = vpop.f32.mrb[91].mxu1  ;;  %5639 = vmatmul.mubr.msk.bf16.vlgmr.msra.gmra.mrb[64].mxu0 %vm1367_vm3, %v2743_v31  ;;  %v2732_v21 = vmax.f32 %v2688_v28, 0.0 }
0x105a   :  { %v2683_v44 = vadd.f32 %v5006_v45, %v2682_v53  ;;  %v2730_v14 = vmax.f32 %v2680_v36, 0.0 }
0x105b   :  { %v2733_v10 = vmax.f32 %v2691_v57, 0.0 }
0x105c   :  { %v2731_v16 = vmax.f32 %v2683_v44, 0.0 }
0x105d   :  { %v2745_v35 = vpack.c.bf16 %v2733_v10, %v2732_v21  ;;  %v7871_v21 = vld [vmem:[%s8487_s12 + $0x1] ss:$0 sm:$0xff] }
0x105e   :  { %v2744_v40 = vpack.c.bf16 %v2731_v16, %v2730_v14 }
0x1060   :  { %5642 = vmatprep.mubr.msk.bf16.mxu0 %vm1367_vm3, %v2744_v40 }
0x1061   :  { %5643 = vmatmul.mubr.msk.bf16.gmra.mrb[68].mxu0 %vm1367_vm3, %v2745_v35 }
0x108a   :  { %v5624_v50 = vpop.f32.mrb[92].mxu1 }
0x108b   :  { %v2704_v26 = vadd.f32 %v5624_v50, %v5006_v45  ;;  %v2695_v1 = vpop.f32.mrb[93].mxu1 }
0x108c   :  { %v2696_v3 = vadd.f32 %v5006_v45, %v2695_v1  ;;  %v5625_v4 = vpop.f32.mrb[94].mxu1 }
0x108d   :  { %v2707_v19 = vadd.f32 %v5625_v4, %v5006_v45  ;;  %v2698_v63 = vpop.f32.mrb[95].mxu1  ;;  %v2736_v61 = vmax.f32 %v2704_v26, 0.0 }
0x108e   :  { %v2699_v62 = vadd.f32 %v5006_v45, %v2698_v63  ;;  %v2734_v33 = vmax.f32 %v2696_v3, 0.0 }
0x108f   :  { %v2737_v24 = vmax.f32 %v2707_v19, 0.0 }
0x1090   :  { %v2735_v52 = vmax.f32 %v2699_v62, 0.0 }
0x1091   :  { %v2747_v18 = vpack.c.bf16 %v2737_v24, %v2736_v61 }
0x1092   :  { %v2746_v55 = vpack.c.bf16 %v2735_v52, %v2734_v33  ;;  %v5628_v8 = vpop.f32.mrb[96].mxu1 }
0x1093   :  { %v2720_v49 = vadd.f32 %v5628_v8, %v5006_v45  ;;  %v2711_v27 = vpop.f32.mrb[97].mxu1 }
0x1094   :  { %v2712_v48 = vadd.f32 %v5006_v45, %v2711_v27  ;;  %v5629_v32 = vpop.f32.mrb[98].mxu1  ;;  %5646 = vmatprep.mubr.msk.bf16.mxu0 %vm1367_vm3, %v2746_v55 }
0x1095   :  { %v2723_v2 = vadd.f32 %v5629_v32, %v5006_v45  ;;  %v2714_v41 = vpop.f32.mrb[99].mxu1  ;;  %5647 = vmatmul.mubr.msk.bf16.gmra.mrb[72].mxu0 %vm1367_vm3, %v2747_v18  ;;  %v2740_v25 = vmax.f32 %v2720_v49, 0.0 }
0x1096   :  { %v2715_v23 = vadd.f32 %v5006_v45, %v2714_v41  ;;  %v2738_v60 = vmax.f32 %v2712_v48, 0.0 }
0x1097   :  { %v2741_v54 = vmax.f32 %v2723_v2, 0.0 }
0x1098   :  { %v2739_v42 = vmax.f32 %v2715_v23, 0.0 }
0x1099   :  { %v2749_v29 = vpack.c.bf16 %v2741_v54, %v2740_v25 }
0x109a   :  { %v2748_v31 = vpack.c.bf16 %v2739_v42, %v2738_v60  ;;  %v5660_v9 = vpop.f32.mrb[100].mxu1 }
0x109b   :  { %v3218_v22 = vpop.f32.mrb[101].mxu1  ;;  %v7852_v34 = vadd.f32 %v5660_v9, %v7823_v47 }
0x109c   :  { %v7847_v28 = vadd.f32 %v3218_v22, %v7804_v37  ;;  %5650 = vmatprep.mubr.msk.bf16.mxu0 %vm1367_vm3, %v2748_v31  ;;  %v5661_v46 = vpop.f32.mrb[102].mxu1 }
0x109d   :  { %5651 = vmatmul.mubr.msk.bf16.gmra.mrb[76].mxu0 %vm1367_vm3, %v2749_v29  ;;  %v3221_v36 = vpop.f32.mrb[103].mxu1  ;;  %v7860_v53 = vadd.f32 %v5661_v46, %v7826_v51  ;;  %v3243_v44 = vsel %vm346_vm2, %v7852_v34, 0.0 }
0x109e   :  { %v7855_v45 = vadd.f32 %v3221_v36, %v7807_v38  ;;  %v3237_v57 = vsel %vm346_vm2, %v7847_v28, 0.0 }
0x109f   :  { %3238 = vadd.xlane.f32.xlu1 %v3237_v57  ;;  %v3246_v47 = vsel %vm346_vm2, %v7860_v53, 0.0 }
0x10a0   :  { %v3240_v37 = vsel %vm346_vm2, %v7855_v45, 0.0 }
0x10a1   :  { %3241 = vadd.xlane.f32.xlu0 %v3240_v37 }
0x10a3   :  { %3244 = vadd.xlane.f32.xlu1 %v3243_v44 }
0x10a5   :  { %3247 = vadd.xlane.f32.xlu0 %v3246_v47 }
0x112c   :  { %v5640_v38 = vpop.f32.mrb[64].mxu0  ;;  %v3239_v29 = vpop.xlane.xlu1 %3238 }
0x112d   :  { %v2841_v51 = vpop.f32.mrb[65].mxu0  ;;  %v2906_v10 = vadd.f32 %v5640_v38, %v7744_v13 }
0x112e   :  { %v2904_v14 = vadd.f32 %v2841_v51, %v7736_v7  ;;  %v5641_v16 = vpop.f32.mrb[66].mxu0 }
0x112f   :  { %v2844_v35 = vpop.f32.mrb[67].mxu0  ;;  %v2907_v50 = vadd.f32 %v5641_v16, %v7747_v59  ;;  %v7881_v1 = vadd.f32 %v7871_v21, %v2906_v10 }
0x1130   :  { %v7876_v40 = vadd.f32 %v7871_v21, %v2904_v14  ;;  %v2905_v26 = vadd.f32 %v2844_v35, %v7739_v6  ;;  %v3245_v51 = vpop.xlane.xlu1 %3244 }
0x1131   :  { %v7889_v7 = vadd.f32 %v7871_v21, %v2907_v50  ;;  %v2950_v61 = vsel %vm346_vm2, %v7881_v1, 0.0 }
0x1132   :  { %v7884_v3 = vadd.f32 %v7871_v21, %v2905_v26  ;;  %v2944_v13 = vsel %vm346_vm2, %v7876_v40, 0.0  ;;  %v3251_v26 = vmul.f32 0.03125, %v3245_v51 }
0x1133   :  { %2945 = vadd.xlane.f32.xlu1 %v2944_v13  ;;  %v2953_v55 = vsel %vm346_vm2, %v7889_v7, 0.0 }
0x1134   :  { %v5644_v4 = vpop.f32.mrb[68].mxu0  ;;  %v2947_v19 = vsel %vm346_vm2, %v7884_v3, 0.0 }
0x1135   :  { %v2857_v59 = vpop.f32.mrb[69].mxu0  ;;  %2948 = vadd.xlane.f32.xlu0 %v2947_v19  ;;  %v2910_v6 = vadd.f32 %v5644_v4, %v7766_v0 }
0x1136   :  { %v2908_v63 = vadd.f32 %v2857_v59, %v7757_v30  ;;  %v5645_v62 = vpop.f32.mrb[70].mxu0 }
0x1137   :  { %v2860_v24 = vpop.f32.mrb[71].mxu0  ;;  %2951 = vadd.xlane.f32.xlu1 %v2950_v61  ;;  %v2911_v52 = vadd.f32 %v5645_v62, %v7769_v11  ;;  %v7905_v0 = vadd.f32 %v7871_v21, %v2910_v6  ;;  %v7972_v6 = vsub.f32 %v7852_v34, %v3251_v26 }
0x1138   :  { %v7898_v33 = vadd.f32 %v7871_v21, %v2908_v63  ;;  %v2909_v18 = vadd.f32 %v2860_v24, %v7760_v58 }
0x1139   :  { %2954 = vadd.xlane.f32.xlu0 %v2953_v55  ;;  %v7913_v49 = vadd.f32 %v7871_v21, %v2911_v52  ;;  %v2962_v11 = vsel %vm346_vm2, %v7905_v0, 0.0  ;;  %v3259_v24 = vmul.f32 %v7972_v6, %v7972_v6 }
0x113a   :  { %v7908_v30 = vadd.f32 %v7871_v21, %v2909_v18  ;;  %v2956_v8 = vsel %vm346_vm2, %v7898_v33, 0.0 }
0x113b   :  { %2957 = vadd.xlane.f32.xlu1 %v2956_v8  ;;  %v2965_v27 = vsel %vm346_vm2, %v7913_v49, 0.0  ;;  %v5908_v8 = vld [vmem:[%s8490_s14] sm:$0xff]  }
0x113c   :  { %v2959_v58 = vsel %vm346_vm2, %v7908_v30, 0.0  ;;  %5662 = vmatprep.subr.bf16.mxu1 %v5908_v8 }
0x113d   :  { %2960 = vadd.xlane.f32.xlu0 %v2959_v58  ;;  %5663 = vmatpush3.bf16.msra.mxu1 %v5908_v8  ;;  %v5909_v58 = vld [vmem:[%s8490_s14 + $0x8] sm:$0xff]  }
0x113e   :  { %5664 = vmatprep.subr.bf16.mxu1 %v5909_v58 }
0x113f   :  { %2963 = vadd.xlane.f32.xlu1 %v2962_v11 }
0x1141   :  { %2966 = vadd.xlane.f32.xlu0 %v2965_v27  ;;  %5665 = vmatpush3.bf16.msra.mxu1 %v5909_v58 }
0x1168   :  { %v5648_v48 = vpop.f32.mrb[72].mxu0 }
0x1169   :  { %v2873_v32 = vpop.f32.mrb[73].mxu0  ;;  %v2914_v2 = vadd.f32 %v5648_v48, %v7784_v39 }
0x116a   :  { %v2912_v41 = vadd.f32 %v2873_v32, %v7775_v56  ;;  %v5649_v23 = vpop.f32.mrb[74].mxu0  ;;  %v3242_v56 = vpop.xlane.xlu0 %3241 }
0x116b   :  { %v2876_v25 = vpop.f32.mrb[75].mxu0  ;;  %v2915_v60 = vadd.f32 %v5649_v23, %v7787_v15  ;;  %v7929_v31 = vadd.f32 %v7871_v21, %v2914_v2  ;;  %v3250_v38 = vmul.f32 0.03125, %v3242_v56 }
0x116c   :  { %v7924_v54 = vadd.f32 %v7871_v21, %v2912_v41  ;;  %v2913_v42 = vadd.f32 %v2876_v25, %v7778_v17  ;;  %v3249_v17 = vmul.f32 0.03125, %v3239_v29 }
0x116d   :  { %v7937_v22 = vadd.f32 %v7871_v21, %v2915_v60  ;;  %v2974_v47 = vsel %vm346_vm2, %v7929_v31, 0.0 }
0x116e   :  { %v7932_v9 = vadd.f32 %v7871_v21, %v2913_v42  ;;  %v2968_v39 = vsel %vm346_vm2, %v7924_v54, 0.0  ;;  %v3248_v50 = vpop.xlane.xlu0 %3247 }
0x116f   :  { %2969 = vadd.xlane.f32.xlu1 %v2968_v39  ;;  %v3252_v19 = vmul.f32 0.03125, %v3248_v50 }
0x1170   :  { %v5652_v46 = vpop.f32.mrb[76].mxu0  ;;  %v2971_v15 = vsel %vm346_vm2, %v7932_v9, 0.0 }
0x1171   :  { %2972 = vadd.xlane.f32.xlu0 %v2971_v15  ;;  %v2889_v36 = vpop.f32.mrb[77].mxu0  ;;  %v2918_v57 = vadd.f32 %v5652_v46, %v7811_v5  ;;  %v2977_v5 = vsel %vm346_vm2, %v7937_v22, 0.0 }
0x1172   :  { %v2916_v37 = vadd.f32 %v2889_v36, %v7796_v12  ;;  %v5653_v44 = vpop.f32.mrb[78].mxu0  ;;  %v7953_v12 = vsub.f32 %v7847_v28, %v3249_v17 }
0x1173   :  { %2975 = vadd.xlane.f32.xlu1 %v2974_v47  ;;  %v2892_v10 = vpop.f32.mrb[79].mxu0  ;;  %v2919_v16 = vadd.f32 %v5653_v44, %v7814_v43  ;;  %v7956_v13 = vadd.f32 %v7871_v21, %v2918_v57 }
0x1174   :  { %v7946_v14 = vadd.f32 %v7871_v21, %v2916_v37  ;;  %v2917_v35 = vadd.f32 %v2892_v10, %v7799_v20  ;;  %v7964_v20 = vsub.f32 %v7855_v45, %v3250_v38  ;;  %v3257_v62 = vmul.f32 %v7953_v12, %v7953_v12 }
0x1175   :  { %2978 = vadd.xlane.f32.xlu0 %v2977_v5  ;;  %v7967_v28 = vadd.f32 %v7871_v21, %v2919_v16  ;;  %v2986_v63 = vsel %vm346_vm2, %v7956_v13, 0.0  ;;  %v7979_v45 = vsub.f32 %v7860_v53, %v3252_v19  ;;  %v3267_v53 = vsel %vm346_vm2, %v3259_v24, 0.0 }
0x1176   :  { %v7959_v4 = vadd.f32 %v7871_v21, %v2917_v35  ;;  %v2980_v43 = vsel %vm346_vm2, %v7946_v14, 0.0  ;;  %v3258_v61 = vmul.f32 %v7964_v20, %v7964_v20  ;;  %v3261_v34 = vsel %vm346_vm2, %v3257_v62, 0.0 }
0x1177   :  { %2981 = vadd.xlane.f32.xlu1 %v2980_v43  ;;  %v2989_v21 = vsel %vm346_vm2, %v7967_v28, 0.0  ;;  %v3260_v18 = vmul.f32 %v7979_v45, %v7979_v45 }
0x1178   :  { %v2983_v59 = vsel %vm346_vm2, %v7959_v4, 0.0  ;;  %v3264_v52 = vsel %vm346_vm2, %v3258_v61, 0.0 }
0x1179   :  { %2984 = vadd.xlane.f32.xlu0 %v2983_v59  ;;  %v3270_v55 = vsel %vm346_vm2, %v3260_v18, 0.0 }
0x117b   :  { %2987 = vadd.xlane.f32.xlu1 %v2986_v63 }
0x117d   :  { %2990 = vadd.xlane.f32.xlu0 %v2989_v21 }
0x117f   :  { %3262 = vadd.xlane.f32.xlu1 %v3261_v34 }
0x1181   :  { %3265 = vadd.xlane.f32.xlu0 %v3264_v52 }
0x1183   :  { %3268 = vadd.xlane.f32.xlu1 %v3267_v53 }
0x1185   :  { %3271 = vadd.xlane.f32.xlu0 %v3270_v55 }
0x11c0   :  { %v2946_v11 = vpop.xlane.xlu1 %2945 }
0x11c1   :  { %v2992_v27 = vmul.f32 0.03125, %v2946_v11 }
0x11c2   :  { %v2949_v48 = vpop.xlane.xlu0 %2948 }
0x11c3   :  { %v8000_v32 = vsub.f32 %v7876_v40, %v2992_v27  ;;  %v2993_v2 = vmul.f32 0.03125, %v2949_v48 }
0x11c4   :  { %v2952_v41 = vpop.xlane.xlu1 %2951 }
0x11c5   :  { %v8003_v23 = vsub.f32 %v7884_v3, %v2993_v2  ;;  %v2994_v25 = vmul.f32 0.03125, %v2952_v41  ;;  %v3024_v60 = vmul.f32 %v8000_v32, %v8000_v32 }
0x11c6   :  { %v2955_v42 = vpop.xlane.xlu0 %2954 }
0x11c7   :  { %v8008_v29 = vsub.f32 %v7881_v1, %v2994_v25  ;;  %v2995_v39 = vmul.f32 0.03125, %v2955_v42  ;;  %v3040_v56 = vsel %vm346_vm2, %v3024_v60, 0.0  ;;  %v3025_v40 = vmul.f32 %v8003_v23, %v8003_v23 }
0x11c8   :  { %v2958_v46 = vpop.xlane.xlu1 %2957  ;;  %3041 = vadd.xlane.f32.xlu1 %v3040_v56 }
0x11c9   :  { %v8014_v15 = vsub.f32 %v7889_v7, %v2995_v39  ;;  %v2996_v3 = vmul.f32 0.03125, %v2958_v46  ;;  %v3043_v17 = vsel %vm346_vm2, %v3025_v40, 0.0  ;;  %v3026_v36 = vmul.f32 %v8008_v29, %v8008_v29 }
0x11ca   :  { %v2961_v57 = vpop.xlane.xlu0 %2960  ;;  %3044 = vadd.xlane.f32.xlu0 %v3043_v17 }
0x11cb   :  { %v8020_v1 = vsub.f32 %v7898_v33, %v2996_v3  ;;  %v2997_v37 = vmul.f32 0.03125, %v2961_v57  ;;  %v3046_v44 = vsel %vm346_vm2, %v3026_v36, 0.0  ;;  %v3027_v47 = vmul.f32 %v8014_v15, %v8014_v15 }
0x11cc   :  { %v2964_v38 = vpop.xlane.xlu1 %2963  ;;  %3047 = vadd.xlane.f32.xlu1 %v3046_v44 }
0x11cd   :  { %v8026_v7 = vsub.f32 %v7908_v30, %v2997_v37  ;;  %v2998_v51 = vmul.f32 0.03125, %v2964_v38  ;;  %v3049_v10 = vsel %vm346_vm2, %v3027_v47, 0.0  ;;  %v3028_v16 = vmul.f32 %v8020_v1, %v8020_v1 }
0x11ce   :  { %v2967_v35 = vpop.xlane.xlu0 %2966  ;;  %3050 = vadd.xlane.f32.xlu0 %v3049_v10 }
0x11cf   :  { %v8032_v33 = vsub.f32 %v7905_v0, %v2998_v51  ;;  %v2999_v5 = vmul.f32 0.03125, %v2967_v35  ;;  %v3052_v50 = vsel %vm346_vm2, %v3028_v16, 0.0  ;;  %v3029_v26 = vmul.f32 %v8026_v7, %v8026_v7 }
0x11d0   :  { %3053 = vadd.xlane.f32.xlu1 %v3052_v50 }
0x11d1   :  { %v8038_v30 = vsub.f32 %v7913_v49, %v2999_v5  ;;  %v3055_v43 = vsel %vm346_vm2, %v3029_v26, 0.0  ;;  %v3030_v19 = vmul.f32 %v8032_v33, %v8032_v33  ;;  %v8050_v49 = vld [vmem:[%s8491_s15] sm:$0xff]  }
0x11d2   :  { %3056 = vadd.xlane.f32.xlu0 %v3055_v43  ;;  %5670 = vmatprep.subr.bf16.mxu1 %v8050_v49 }
0x11d3   :  { %v3058_v59 = vsel %vm346_vm2, %v3030_v19, 0.0  ;;  %v3031_v0 = vmul.f32 %v8038_v30, %v8038_v30 }
0x11d4   :  { %3059 = vadd.xlane.f32.xlu1 %v3058_v59 }
0x11d5   :  { %v3061_v63 = vsel %vm346_vm2, %v3031_v0, 0.0 }
0x11d6   :  { %3062 = vadd.xlane.f32.xlu0 %v3061_v63 }
0x11fc   :  { %v2970_v62 = vpop.xlane.xlu1 %2969 }
0x11fd   :  { %v3000_v21 = vmul.f32 0.03125, %v2970_v62 }
0x11fe   :  { %v2973_v61 = vpop.xlane.xlu0 %2972 }
0x11ff   :  { %v8054_v34 = vsub.f32 %v7924_v54, %v3000_v21  ;;  %v3001_v24 = vmul.f32 0.03125, %v2973_v61 }
0x1200   :  { %v2976_v52 = vpop.xlane.xlu1 %2975 }
0x1201   :  { %v8057_v18 = vsub.f32 %v7932_v9, %v3001_v24  ;;  %v3002_v53 = vmul.f32 0.03125, %v2976_v52  ;;  %v3032_v55 = vmul.f32 %v8054_v34, %v8054_v34 }
0x1202   :  { %v2979_v8 = vpop.xlane.xlu0 %2978 }
0x1203   :  { %v8062_v58 = vsub.f32 %v7929_v31, %v3002_v53  ;;  %v3003_v11 = vmul.f32 0.03125, %v2979_v8  ;;  %v3064_v27 = vsel %vm346_vm2, %v3032_v55, 0.0  ;;  %v3033_v54 = vmul.f32 %v8057_v18, %v8057_v18 }
0x1204   :  { %3065 = vadd.xlane.f32.xlu1 %v3064_v27  ;;  %v2982_v48 = vpop.xlane.xlu1 %2981 }
0x1205   :  { %v8068_v2 = vsub.f32 %v7937_v22, %v3003_v11  ;;  %v3004_v9 = vmul.f32 0.03125, %v2982_v48  ;;  %v3067_v41 = vsel %vm346_vm2, %v3033_v54, 0.0  ;;  %v3034_v25 = vmul.f32 %v8062_v58, %v8062_v58 }
0x1206   :  { %3068 = vadd.xlane.f32.xlu0 %v3067_v41  ;;  %v2985_v31 = vpop.xlane.xlu0 %2984 }
0x1207   :  { %v8074_v60 = vsub.f32 %v7946_v14, %v3004_v9  ;;  %v3005_v42 = vmul.f32 0.03125, %v2985_v31  ;;  %v3070_v39 = vsel %vm346_vm2, %v3034_v25, 0.0  ;;  %v3035_v56 = vmul.f32 %v8068_v2, %v8068_v2 }
0x1208   :  { %3071 = vadd.xlane.f32.xlu1 %v3070_v39  ;;  %v2988_v22 = vpop.xlane.xlu1 %2987 }
0x1209   :  { %v8080_v40 = vsub.f32 %v7959_v4, %v3005_v42  ;;  %v3006_v46 = vmul.f32 0.03125, %v2988_v22  ;;  %v3073_v3 = vsel %vm346_vm2, %v3035_v56, 0.0  ;;  %v3036_v17 = vmul.f32 %v8074_v60, %v8074_v60 }
0x120a   :  { %3074 = vadd.xlane.f32.xlu0 %v3073_v3  ;;  %v2991_v14 = vpop.xlane.xlu0 %2990 }
0x120b   :  { %v8086_v36 = vsub.f32 %v7956_v13, %v3006_v46  ;;  %v3007_v57 = vmul.f32 0.03125, %v2991_v14  ;;  %v3076_v37 = vsel %vm346_vm2, %v3036_v17, 0.0  ;;  %v3037_v44 = vmul.f32 %v8080_v40, %v8080_v40 }
0x120c   :  { %3077 = vadd.xlane.f32.xlu1 %v3076_v37  ;;  %v3263_v4 = vpop.xlane.xlu1 %3262 }
0x120d   :  { %v8092_v47 = vsub.f32 %v7967_v28, %v3007_v57  ;;  %v3273_v38 = vmul.f32 0.03125, %v3263_v4  ;;  %v3079_v51 = vsel %vm346_vm2, %v3037_v44, 0.0  ;;  %v3038_v10 = vmul.f32 %v8086_v36, %v8086_v36 }
0x120e   :  { %3080 = vadd.xlane.f32.xlu0 %v3079_v51  ;;  %v3266_v13 = vpop.xlane.xlu0 %3265 }
0x120f   :  { %v3277_v16 = vadd.f32 1e-06, %v3273_v38  ;;  %v3274_v35 = vmul.f32 0.03125, %v3266_v13  ;;  %v3082_v5 = vsel %vm346_vm2, %v3038_v10, 0.0  ;;  %v3039_v50 = vmul.f32 %v8092_v47, %v8092_v47 }
0x1210   :  { %3083 = vadd.xlane.f32.xlu1 %v3082_v5  ;;  %v3269_v26 = vpop.xlane.xlu1 %3268 }
0x1211   :  { %6156 = vrsqrt.f32 %v3277_v16  ;;  %v3278_v28 = vadd.f32 1e-06, %v3274_v35  ;;  %v3275_v43 = vmul.f32 0.03125, %v3269_v26  ;;  %v3085_v19 = vsel %vm346_vm2, %v3039_v50, 0.0 }
0x1212   :  { %3086 = vadd.xlane.f32.xlu0 %v3085_v19  ;;  %v3272_v59 = vpop.xlane.xlu0 %3271 }
0x1213   :  { %6158 = vrsqrt.f32 %v3278_v28  ;;  %v3279_v0 = vadd.f32 1e-06, %v3275_v43  ;;  %v3276_v63 = vmul.f32 0.03125, %v3272_v59 }
0x1215   :  { %6160 = vrsqrt.f32 %v3279_v0  ;;  %v3280_v62 = vadd.f32 1e-06, %v3276_v63 }
0x1217   :  { %6162 = vrsqrt.f32 %v3280_v62 }
0x121b   :  { %v6157_v21 = vpop.eup %6156 }
0x121c   :  { %v8102_v24 = vmul.f32 %v6157_v21, %v7953_v12 }
0x121d   :  { %v6159_v61 = vpop.eup %6158 }
0x121e   :  { %v8105_v52 = vmul.f32 %v6159_v61, %v7964_v20  ;;  %v5911_v20 = vld [vmem:[%s8491_s15 + $0x8] sm:$0xff]  }
0x121f   :  { %v6161_v53 = vpop.eup %6160 }
0x1220   :  { %v3289_v55 = vpack.c.bf16 %v8105_v52, %v8102_v24  ;;  %v8110_v11 = vmul.f32 %v6161_v53, %v7972_v6 }
0x1221   :  { %v6163_v8 = vpop.eup %6162 }
0x1222   :  { %v8113_v27 = vmul.f32 %v6163_v8, %v7979_v45  ;;  %5666 = vmatprep.mubr.msk.bf16.mxu1 %vm346_vm2, %v3289_v55 }
0x1224   :  { %v3290_v12 = vpack.c.bf16 %v8113_v27, %v8110_v11 }
0x1226   :  { %5667 = vmatmul.mubr.msk.bf16.vlgmr.msra.gmra.mrb[104].mxu1 %vm346_vm2, %v3290_v12 }
0x1227   :  { %5671 = vmatpush3.bf16.msra.mxu1 %v8050_v49 }
0x1228   :  { %5672 = vmatprep.subr.bf16.mxu1 %v5911_v20 }
0x122b   :  { %5673 = vmatpush3.bf16.msra.mxu1 %v5911_v20 }
0x1255   :  { %v3042_v6 = vpop.xlane.xlu1 %3041 }
0x1256   :  { %v3088_v54 = vmul.f32 0.03125, %v3042_v6 }
0x1257   :  { %v3045_v48 = vpop.xlane.xlu0 %3044 }
0x1258   :  { %v3104_v45 = vadd.f32 1e-06, %v3088_v54  ;;  %v3089_v9 = vmul.f32 0.03125, %v3045_v48 }
0x1259   :  { %v3048_v41 = vpop.xlane.xlu1 %3047 }
0x125a   :  { %6164 = vrsqrt.f32 %v3104_v45  ;;  %v3105_v25 = vadd.f32 1e-06, %v3089_v9  ;;  %v3090_v31 = vmul.f32 0.03125, %v3048_v41 }
0x125b   :  { %v3051_v42 = vpop.xlane.xlu0 %3050 }
0x125c   :  { %6166 = vrsqrt.f32 %v3105_v25  ;;  %v3106_v39 = vadd.f32 1e-06, %v3090_v31  ;;  %v3091_v56 = vmul.f32 0.03125, %v3051_v42 }
0x125d   :  { %v3054_v22 = vpop.xlane.xlu1 %3053 }
0x125e   :  { %6168 = vrsqrt.f32 %v3106_v39  ;;  %v3107_v46 = vadd.f32 1e-06, %v3091_v56  ;;  %v3092_v3 = vmul.f32 0.03125, %v3054_v22 }
0x125f   :  { %v3057_v49 = vpop.xlane.xlu0 %3056 }
0x1260   :  { %6170 = vrsqrt.f32 %v3107_v46  ;;  %v3108_v17 = vadd.f32 1e-06, %v3092_v3  ;;  %v3093_v14 = vmul.f32 0.03125, %v3057_v49 }
0x1261   :  { %v3060_v57 = vpop.xlane.xlu1 %3059 }
0x1262   :  { %6172 = vrsqrt.f32 %v3108_v17  ;;  %v3109_v37 = vadd.f32 1e-06, %v3093_v14  ;;  %v3094_v44 = vmul.f32 0.03125, %v3060_v57 }
0x1263   :  { %v3063_v4 = vpop.xlane.xlu0 %3062 }
0x1264   :  { %v6165_v38 = vpop.eup %6164  ;;  %6174 = vrsqrt.f32 %v3109_v37  ;;  %v3110_v51 = vadd.f32 1e-06, %v3094_v44  ;;  %v3095_v10 = vmul.f32 0.03125, %v3063_v4 }
0x1265   :  { %v3136_v35 = vmul.f32 %v6165_v38, %v8000_v32 }
0x1266   :  { %v6167_v13 = vpop.eup %6166  ;;  %6176 = vrsqrt.f32 %v3110_v51  ;;  %v3111_v16 = vadd.f32 1e-06, %v3095_v10 }
0x1267   :  { %v3137_v5 = vmul.f32 %v6167_v13, %v8003_v23 }
0x1268   :  { %v6169_v50 = vpop.eup %6168  ;;  %6178 = vrsqrt.f32 %v3111_v16 }
0x1269   :  { %v8125_v26 = vpack.c.bf16 %v3137_v5, %v3136_v35  ;;  %v3138_v43 = vmul.f32 %v6169_v50, %v8008_v29 }
0x126a   :  { %v6171_v28 = vpop.eup %6170 }
0x126b   :  { %v3139_v19 = vmul.f32 %v6171_v28, %v8014_v15  ;;  %5674 = vmatprep.mubr.msk.bf16.mxu1 %vm346_vm2, %v8125_v26 }
0x126c   :  { %v6173_v59 = vpop.eup %6172 }
0x126d   :  { %v8131_v0 = vpack.c.bf16 %v3139_v19, %v3138_v43  ;;  %v3140_v32 = vmul.f32 %v6173_v59, %v8020_v1 }
0x126e   :  { %v6175_v63 = vpop.eup %6174 }
0x126f   :  { %5675 = vmatmul.mubr.msk.bf16.vlgmr.msra.gmra.mrb[108].mxu1 %vm346_vm2, %v8131_v0  ;;  %v3141_v23 = vmul.f32 %v6175_v63, %v8026_v7 }
0x1270   :  { %v6177_v62 = vpop.eup %6176 }
0x1271   :  { %v8137_v21 = vpack.c.bf16 %v3141_v23, %v3140_v32  ;;  %v3142_v15 = vmul.f32 %v6177_v62, %v8032_v33 }
0x1272   :  { %v6179_v29 = vpop.eup %6178 }
0x1273   :  { %5678 = vmatprep.mubr.msk.bf16.mxu1 %vm346_vm2, %v8137_v21  ;;  %v3143_v61 = vmul.f32 %v6179_v29, %v8038_v30 }
0x1275   :  { %v8143_v53 = vpack.c.bf16 %v3143_v61, %v3142_v15 }
0x1277   :  { %5679 = vmatmul.mubr.msk.bf16.gmra.mrb[112].mxu1 %vm346_vm2, %v8143_v53 }
0x1291   :  { %v3066_v55 = vpop.xlane.xlu1 %3065 }
0x1292   :  { %v3096_v1 = vmul.f32 0.03125, %v3066_v55 }
0x1293   :  { %v3069_v8 = vpop.xlane.xlu0 %3068 }
0x1294   :  { %v3112_v7 = vadd.f32 1e-06, %v3096_v1  ;;  %v3097_v12 = vmul.f32 0.03125, %v3069_v8 }
0x1295   :  { %v3072_v20 = vpop.xlane.xlu1 %3071 }
0x1296   :  { %6180 = vrsqrt.f32 %v3112_v7  ;;  %v3113_v6 = vadd.f32 1e-06, %v3097_v12  ;;  %v3098_v54 = vmul.f32 0.03125, %v3072_v20 }
0x1297   :  { %v3075_v48 = vpop.xlane.xlu0 %3074 }
0x1298   :  { %6182 = vrsqrt.f32 %v3113_v6  ;;  %v3114_v45 = vadd.f32 1e-06, %v3098_v54  ;;  %v3099_v33 = vmul.f32 0.03125, %v3075_v48 }
0x1299   :  { %v3078_v9 = vpop.xlane.xlu1 %3077 }
0x129a   :  { %6184 = vrsqrt.f32 %v3114_v45  ;;  %v3115_v30 = vadd.f32 1e-06, %v3099_v33  ;;  %v3100_v41 = vmul.f32 0.03125, %v3078_v9 }
0x129b   :  { %v3081_v25 = vpop.xlane.xlu0 %3080 }
0x129c   :  { %6186 = vrsqrt.f32 %v3115_v30  ;;  %v3116_v31 = vadd.f32 1e-06, %v3100_v41  ;;  %v3101_v42 = vmul.f32 0.03125, %v3081_v25 }
0x129d   :  { %v3084_v39 = vpop.xlane.xlu1 %3083 }
0x129e   :  { %6188 = vrsqrt.f32 %v3116_v31  ;;  %v3117_v56 = vadd.f32 1e-06, %v3101_v42  ;;  %v3102_v22 = vmul.f32 0.03125, %v3084_v39 }
0x129f   :  { %v3087_v46 = vpop.xlane.xlu0 %3086 }
0x12a0   :  { %v6181_v3 = vpop.eup %6180  ;;  %6190 = vrsqrt.f32 %v3117_v56  ;;  %v3118_v49 = vadd.f32 1e-06, %v3102_v22  ;;  %v3103_v17 = vmul.f32 0.03125, %v3087_v46 }
0x12a1   :  { %v3144_v37 = vmul.f32 %v6181_v3, %v8054_v34 }
0x12a2   :  { %v6183_v14 = vpop.eup %6182  ;;  %6192 = vrsqrt.f32 %v3118_v49  ;;  %v3119_v57 = vadd.f32 1e-06, %v3103_v17 }
0x12a3   :  { %v3145_v44 = vmul.f32 %v6183_v14, %v8057_v18 }
0x12a4   :  { %v6185_v4 = vpop.eup %6184  ;;  %6194 = vrsqrt.f32 %v3119_v57 }
0x12a5   :  { %v8149_v38 = vpack.c.bf16 %v3145_v44, %v3144_v37  ;;  %v3146_v10 = vmul.f32 %v6185_v4, %v8062_v58 }
0x12a6   :  { %v6187_v51 = vpop.eup %6186 }
0x12a7   :  { %5682 = vmatprep.mubr.msk.bf16.mxu1 %vm346_vm2, %v8149_v38  ;;  %v3147_v13 = vmul.f32 %v6187_v51, %v8068_v2 }
0x12a8   :  { %v6189_v16 = vpop.eup %6188 }
0x12a9   :  { %v8155_v35 = vpack.c.bf16 %v3147_v13, %v3146_v10  ;;  %v3148_v34 = vmul.f32 %v6189_v16, %v8074_v60 }
0x12aa   :  { %v6191_v5 = vpop.eup %6190 }
0x12ab   :  { %5683 = vmatmul.mubr.msk.bf16.gmra.mrb[116].mxu1 %vm346_vm2, %v8155_v35  ;;  %v3149_v18 = vmul.f32 %v6191_v5, %v8080_v40 }
0x12ac   :  { %v6193_v50 = vpop.eup %6192 }
0x12ad   :  { %v8161_v28 = vpack.c.bf16 %v3149_v18, %v3148_v34  ;;  %v3150_v58 = vmul.f32 %v6193_v50, %v8086_v36 }
0x12ae   :  { %v6195_v43 = vpop.eup %6194 }
0x12af   :  { %5686 = vmatprep.mubr.msk.bf16.mxu1 %vm346_vm2, %v8161_v28  ;;  %v3151_v2 = vmul.f32 %v6195_v43, %v8092_v47 }
0x12b1   :  { %v8167_v19 = vpack.c.bf16 %v3151_v2, %v3150_v58 }
0x12b3   :  { %5687 = vmatmul.mubr.msk.bf16.gmra.mrb[120].mxu1 %vm346_vm2, %v8167_v19 }
0x12f9   :  { %v5668_v59 = vpop.f32.mrb[104].mxu1 }
0x12fa   :  { %v3347_v60 = vpop.f32.mrb[105].mxu1 }
0x12fb   :  { %v5669_v63 = vpop.f32.mrb[106].mxu1 }
0x12fc   :  { %v3508_v40 = vpack.c.bf16 %v5669_v63, %v5668_v59  ;;  %v3350_v32 = vpop.f32.mrb[107].mxu1 }
0x12fd   :  { %v3507_v23 = vpack.c.bf16 %v3350_v32, %v3347_v60  ;;  %v8203_v32 = vld [vmem:[%s8492_s3 + $0x10] sm:$0xff] }
0x12ff   :  { %5706 = vmatprep.mubr.msk.bf16.mxu0 %vm346_vm2, %v3507_v23 }
0x1342   :  { %v5676_v62 = vpop.f32.mrb[108].mxu1 }
0x1343   :  { %v3436_v29 = vpop.f32.mrb[109].mxu1 }
0x1344   :  { %v5677_v15 = vpop.f32.mrb[110].mxu1 }
0x1345   :  { %v3500_v61 = vpack.c.bf16 %v5677_v15, %v5676_v62  ;;  %v3439_v36 = vpop.f32.mrb[111].mxu1  ;;  %v8209_v15 = vld [vmem:[%s8492_s3] sm:$0xff] }
0x1346   :  { %v3499_v55 = vpack.c.bf16 %v3439_v36, %v3436_v29 }
0x1347   :  { %v3519_v54 = vsel %vm346_vm2, %v3500_v61, 0 }
0x1348   :  { %5872 = vmatprep.subr.msk.bf16.mxu0 %vm346_vm2, %v3499_v55  ;;  %v3516_v47 = vsel %vm346_vm2, %v3499_v55, 0 }
0x1349   :  { %5691 = vmatpush3.bf16.xpose.msra.mxu0 %v3516_v47 }
0x134a   :  { %v5680_v1 = vpop.f32.mrb[112].mxu1  ;;  %5873 = vmatprep.subr.msk.bf16.mxu0 %vm346_vm2, %v3500_v61 }
0x134b   :  { %v3452_v8 = vpop.f32.mrb[113].mxu1 }
0x134c   :  { %v5681_v7 = vpop.f32.mrb[114].mxu1 }
0x134d   :  { %v3502_v12 = vpack.c.bf16 %v5681_v7, %v5680_v1  ;;  %v3455_v20 = vpop.f32.mrb[115].mxu1 }
0x134e   :  { %v8175_v6 = vpack.c.bf16 %v3455_v20, %v3452_v8  ;;  %v8221_v8 = vld [vmem:[%s8492_s3 + $0x8] sm:$0xff] }
0x134f   :  { %v3525_v45 = vsel %vm346_vm2, %v3502_v12, 0 }
0x1350   :  { %v3522_v48 = vsel %vm346_vm2, %v8175_v6, 0 }
0x1351   :  { %5693 = vmatpush3.bf16.xpose.msra.mxu0 %v3519_v54 }
0x1352   :  { %5874 = vmatprep.subr.msk.bf16.mxu0 %vm346_vm2, %v8175_v6 }
0x1359   :  { %5695 = vmatpush3.bf16.xpose.msra.mxu0 %v3522_v48 }
0x135a   :  { %5875 = vmatprep.subr.msk.bf16.mxu0 %vm346_vm2, %v3502_v12 }
0x1361   :  { %5697 = vmatpush3.bf16.xpose.msra.mxu0 %v3525_v45 }
0x137e   :  { %v5684_v33 = vpop.f32.mrb[116].mxu1 }
0x137f   :  { %v3468_v9 = vpop.f32.mrb[117].mxu1 }
0x1380   :  { %v5685_v30 = vpop.f32.mrb[118].mxu1 }
0x1381   :  { %v3504_v41 = vpack.c.bf16 %v5685_v30, %v5684_v33  ;;  %v3471_v25 = vpop.f32.mrb[119].mxu1 }
0x1382   :  { %v3503_v31 = vpack.c.bf16 %v3471_v25, %v3468_v9 }
0x1383   :  { %v3531_v17 = vsel %vm346_vm2, %v3504_v41, 0 }
0x1384   :  { %5876 = vmatprep.subr.msk.bf16.mxu0 %vm346_vm2, %v3503_v31  ;;  %v3528_v42 = vsel %vm346_vm2, %v3503_v31, 0 }
0x1385   :  { %5699 = vmatpush3.bf16.xpose.msra.mxu0 %v3528_v42 }
0x1386   :  { %v5688_v39 = vpop.f32.mrb[120].mxu1  ;;  %5877 = vmatprep.subr.msk.bf16.mxu0 %vm346_vm2, %v3504_v41 }
0x1387   :  { %v3484_v56 = vpop.f32.mrb[121].mxu1 }
0x1388   :  { %v5689_v22 = vpop.f32.mrb[122].mxu1 }
0x1389   :  { %v3506_v46 = vpack.c.bf16 %v5689_v22, %v5688_v39  ;;  %v3487_v3 = vpop.f32.mrb[123].mxu1 }
0x138a   :  { %v3505_v49 = vpack.c.bf16 %v3487_v3, %v3484_v56 }
0x138b   :  { %v3537_v57 = vsel %vm346_vm2, %v3506_v46, 0 }
0x138c   :  { %v3534_v14 = vsel %vm346_vm2, %v3505_v49, 0 }
0x138d   :  { %5701 = vmatpush3.bf16.xpose.msra.mxu0 %v3531_v17 }
0x138e   :  { %5878 = vmatprep.subr.msk.bf16.mxu0 %vm346_vm2, %v3505_v49 }
0x1395   :  { %5703 = vmatpush3.bf16.xpose.msra.mxu0 %v3534_v14 }
0x1396   :  { %5879 = vmatprep.subr.msk.bf16.mxu0 %vm346_vm2, %v3506_v46 }
0x139d   :  { %5705 = vmatpush3.bf16.xpose.msra.mxu0 %v3537_v57 }
0x13a4   :  { %5707 = vmatmul.mubr.msk.bf16.vlgmr.msra.gmra.mrb[80].mxu0 %vm346_vm2, %v3508_v40 }
0x1477   :  { %v5708_v37 = vpop.f32.mrb[80].mxu0 }
0x1478   :  { %v3573_v44 = vpop.f32.mrb[81].mxu0 }
0x1479   :  { %3588 = vmax.xlane.f32.xlu1 %v3573_v44  ;;  %v5709_v4 = vpop.f32.mrb[82].mxu0 }
0x147a   :  { %v3576_v51 = vpop.f32.mrb[83].mxu0 }
0x147b   :  { %3590 = vmax.xlane.f32.xlu0 %v3576_v51 }
0x147d   :  { %3592 = vmax.xlane.f32.xlu1 %v5708_v37 }
0x147f   :  { %3594 = vmax.xlane.f32.xlu0 %v5709_v4 }
0x148e   :  { %3638 = vrot.lane.b32.xlu1 %v3499_v55, %s6284_s4  ;;  %v8215_v55 = vld [vmem:[%s8492_s3 + $0x18] sm:$0xff] }
0x1492   :  { %3640 = vrot.lane.b32.xlu1 %v3500_v61, %s6284_s4 }
0x1496   :  { %3644 = vrot.lane.b32.xlu1 %v3502_v12, %s6284_s4 }
0x149a   :  { %3646 = vrot.lane.b32.xlu1 %v3503_v31, %s6284_s4 }
0x149e   :  { %3648 = vrot.lane.b32.xlu1 %v3504_v41, %s6284_s4 }
0x14a2   :  { %3650 = vrot.lane.b32.xlu1 %v3505_v49, %s6284_s4 }
0x14a6   :  { %3652 = vrot.lane.b32.xlu1 %v3506_v46, %s6284_s4 }
0x1506   :  { %v3589_v10 = vpop.xlane.xlu1 %3588 }
0x1507   :  { %v3596_v16 = vsub.f32 %v3573_v44, %v3589_v10 }
0x1508   :  { %v3591_v13 = vpop.xlane.xlu0 %3590 }
0x1509   :  { %v3600_v50 = vmul.f32 1.442695, %v3596_v16  ;;  %v3597_v59 = vsub.f32 %v3576_v51, %v3591_v13 }
0x150a   :  { %v3593_v5 = vpop.xlane.xlu1 %3592 }
0x150b   :  { %v3598_v34 = vsub.f32 %v5708_v37, %v3593_v5  ;;  %v3602_v40 = vmul.f32 1.442695, %v3597_v59 }
0x150c   :  { %v3595_v18 = vpop.xlane.xlu0 %3594 }
0x150d   :  { %v3604_v43 = vmul.f32 1.442695, %v3598_v34  ;;  %v3599_v58 = vsub.f32 %v5709_v4, %v3595_v18 }
0x150e   :  { %v3639_v2 = vpop.permute.xlu1 %3638 }
0x150f   :  { %6196 = vpow2.f32 %v3604_v43  ;;  %5710 = vmatprep.subr.bf16.mxu1 %v3639_v2  ;;  %v3606_v60 = vmul.f32 1.442695, %v3599_v58 }
0x1510   :  { %5711 = vmatpush3.bf16.msra.mxu1 %v3639_v2  ;;  %6198 = vpow2.f32 %v3600_v50 }
0x1511   :  { %6200 = vpow2.f32 %v3606_v60 }
0x1512   :  { %v3641_v63 = vpop.permute.xlu1 %3640  ;;  %6202 = vpow2.f32 %v3602_v40 }
0x1513   :  { %5712 = vmatprep.subr.bf16.mxu1 %v3641_v63 }
0x1514   :  { %5713 = vmatpush3.bf16.msra.mxu1 %v3641_v63 }
0x1516   :  { %v3645_v48 = vpop.permute.xlu1 %3644 }
0x1519   :  { %v6197_v23 = vpop.eup %6196 }
0x151a   :  { %v3610_v62 = vmul.f32 %v6197_v23, %v8203_v32  ;;  %v6199_v29 = vpop.eup %6198  ;;  %v3647_v33 = vpop.permute.xlu1 %3646 }
0x151b   :  { %v3608_v61 = vmul.f32 %v6199_v29, %v8209_v15  ;;  %v6201_v36 = vpop.eup %6200 }
0x151c   :  { %3616 = vadd.xlane.f32.xlu0 %v3610_v62  ;;  %v3611_v47 = vmul.f32 %v6201_v36, %v8215_v55  ;;  %v6203_v1 = vpop.eup %6202 }
0x151d   :  { %v3609_v7 = vmul.f32 %v6203_v1, %v8221_v8 }
0x151e   :  { %v3649_v41 = vpop.permute.xlu1 %3648 }
0x1520   :  { %3612 = vadd.xlane.f32.xlu0 %v3608_v61 }
0x1522   :  { %v3651_v39 = vpop.permute.xlu1 %3650 }
0x1524   :  { %3618 = vadd.xlane.f32.xlu0 %v3611_v47 }
0x1526   :  { %v3653_v46 = vpop.permute.xlu1 %3652 }
0x1528   :  { %3614 = vadd.xlane.f32.xlu0 %v3609_v7 }
0x153e   :  { %3642 = vrot.lane.b32.xlu0 %v8175_v6, %s6284_s4 }
0x15a9   :  { %v3617_v12 = vpop.xlane.xlu0 %3616 }
0x15ad   :  { %v3613_v20 = vpop.xlane.xlu0 %3612 }
0x15ae   :  { %6204 = vrcp.f32 %v3613_v20  ;;  %v5913_v20 = vld [vmem:[%s8493_s16 + $0x8] sm:$0xff]  }
0x15b1   :  { %v3619_v54 = vpop.xlane.xlu0 %3618 }
0x15b5   :  { %v3615_v45 = vpop.xlane.xlu0 %3614 }
0x15b6   :  { %6206 = vrcp.f32 %v3615_v45 }
0x15b7   :  { %6208 = vrcp.f32 %v3619_v54  ;;  %v5914_v54 = vld [vmem:[%s8494_s18] sm:$0xff]  }
0x15b8   :  { %v6205_v30 = vpop.eup %6204  ;;  %6210 = vrcp.f32 %v3617_v12  ;;  %v5912_v12 = vld [vmem:[%s8493_s16] sm:$0xff]   ;;  %5738 = vmatprep.subr.bf16.mxu0 %v5914_v54 }
0x15b9   :  { %v3643_v9 = vpop.permute.xlu0 %3642  ;;  %v3624_v6 = vmul.f32 %v6205_v30, %v3608_v61  ;;  %5739 = vmatpush3.bf16.msra.mxu0 %v5914_v54 }
0x15ba   :  { %5714 = vmatprep.subr.bf16.mxu1 %v3643_v9 }
0x15bb   :  { %5715 = vmatpush3.bf16.msra.mxu1 %v3643_v9 }
0x15bc   :  { %5716 = vmatprep.subr.bf16.mxu1 %v3645_v48 }
0x15bf   :  { %5717 = vmatpush3.bf16.msra.mxu1 %v3645_v48  ;;  %v5915_v48 = vld [vmem:[%s8494_s18 + $0x8] sm:$0xff]  }
0x15c0   :  { %v6207_v25 = vpop.eup %6206  ;;  %5718 = vmatprep.subr.bf16.mxu1 %v3647_v33  ;;  %5740 = vmatprep.subr.bf16.mxu0 %v5915_v48 }
0x15c1   :  { %v3625_v31 = vmul.f32 %v6207_v25, %v3609_v7  ;;  %v6209_v56 = vpop.eup %6208  ;;  %5741 = vmatpush3.bf16.msra.mxu0 %v5915_v48 }
0x15c2   :  { %v6211_v22 = vpop.eup %6210  ;;  %v3627_v3 = vmul.f32 %v6209_v56, %v3611_v47 }
0x15c3   :  { %5719 = vmatpush3.bf16.msra.mxu1 %v3647_v33  ;;  %v3628_v42 = vpack.c.bf16 %v3625_v31, %v3624_v6  ;;  %v3626_v49 = vmul.f32 %v6211_v22, %v3610_v62 }
0x15c4   :  { %5720 = vmatprep.subr.bf16.mxu1 %v3649_v41 }
0x15c5   :  { %5726 = vmatprep.mubr.bf16.mxu1 %v3628_v42  ;;  %v3629_v17 = vpack.c.bf16 %v3627_v3, %v3626_v49 }
0x15c7   :  { %5721 = vmatpush3.bf16.msra.mxu1 %v3649_v41 }
0x15c8   :  { %5722 = vmatprep.subr.bf16.mxu1 %v3651_v39 }
0x15cb   :  { %5723 = vmatpush3.bf16.msra.mxu1 %v3651_v39 }
0x15cc   :  { %5724 = vmatprep.subr.bf16.mxu1 %v3653_v46 }
0x15cf   :  { %5725 = vmatpush3.bf16.msra.mxu1 %v3653_v46 }
0x15d0   :  { %5730 = vmatprep.subr.bf16.mxu1 %v5912_v12 }
0x15d2   :  { %5727 = vmatmul.mubr.bf16.vlgmr.msra.gmra.mrb[124].mxu1 %v3629_v17 }
0x15d3   :  { %5731 = vmatpush3.bf16.msra.mxu1 %v5912_v12 }
0x15d4   :  { %5732 = vmatprep.subr.bf16.mxu1 %v5913_v20 }
0x15d7   :  { %5733 = vmatpush3.bf16.msra.mxu1 %v5913_v20 }
0x16a5   :  { %v5728_v14 = vpop.f32.mrb[124].mxu1 }
0x16a6   :  { %v3696_v57 = vpop.f32.mrb[125].mxu1  ;;  %v3713_v51 = vadd.f32 %v5728_v14, %v8110_v11 }
0x16a7   :  { %v3711_v37 = vadd.f32 %v3696_v57, %v8102_v24  ;;  %v5729_v44 = vpop.f32.mrb[126].mxu1 }
0x16a8   :  { %v3699_v4 = vpop.f32.mrb[127].mxu1  ;;  %v3714_v5 = vadd.f32 %v5729_v44, %v8113_v27  ;;  %v3721_v34 = vsel %vm346_vm2, %v3713_v51, 0.0 }
0x16a9   :  { %v3712_v10 = vadd.f32 %v3699_v4, %v8105_v52  ;;  %v3715_v13 = vsel %vm346_vm2, %v3711_v37, 0.0 }
0x16aa   :  { %3716 = vadd.xlane.f32.xlu0 %v3715_v13  ;;  %v3724_v18 = vsel %vm346_vm2, %v3714_v5, 0.0  ;;  %v5917_v13 = vld [vmem:[%s8494_s18 + $0x18] sm:$0xff]  }
0x16ab   :  { %v3718_v16 = vsel %vm346_vm2, %v3712_v10, 0.0 }
0x16ac   :  { %3719 = vadd.xlane.f32.xlu1 %v3718_v16  ;;  %v5918_v16 = vld [vmem:[%s8491_s15 + $0x10] sm:$0xff]  }
0x16ae   :  { %3722 = vadd.xlane.f32.xlu0 %v3721_v34 }
0x16b2   :  { %3725 = vadd.xlane.f32.xlu0 %v3724_v18 }
0x1737   :  { %v3717_v24 = vpop.xlane.xlu0 %3716 }
0x1738   :  { %v3727_v50 = vmul.f32 0.03125, %v3717_v24 }
0x1739   :  { %v3720_v43 = vpop.xlane.xlu1 %3719 }
0x173a   :  { %v3731_v11 = vsub.f32 %v3711_v37, %v3727_v50  ;;  %v3728_v58 = vmul.f32 0.03125, %v3720_v43 }
0x173b   :  { %v3723_v52 = vpop.xlane.xlu0 %3722 }
0x173c   :  { %v3732_v2 = vsub.f32 %v3712_v10, %v3728_v58  ;;  %v3729_v59 = vmul.f32 0.03125, %v3723_v52  ;;  %v3735_v60 = vmul.f32 %v3731_v11, %v3731_v11  ;;  %v5916_v10 = vld [vmem:[%s8494_s18 + $0x10] sm:$0xff]  }
0x173d   :  { %5742 = vmatprep.subr.bf16.mxu0 %v5916_v10 }
0x173e   :  { %v3733_v63 = vsub.f32 %v3713_v51, %v3729_v59  ;;  %v3739_v40 = vsel %vm346_vm2, %v3735_v60, 0.0  ;;  %v3736_v23 = vmul.f32 %v3732_v2, %v3732_v2  ;;  %5743 = vmatpush3.bf16.msra.mxu0 %v5916_v10 }
0x173f   :  { %v3726_v27 = vpop.xlane.xlu0 %3725  ;;  %3740 = vadd.xlane.f32.xlu1 %v3739_v40  ;;  %5744 = vmatprep.subr.bf16.mxu0 %v5917_v13 }
0x1740   :  { %v3730_v62 = vmul.f32 0.03125, %v3726_v27  ;;  %v3742_v29 = vsel %vm346_vm2, %v3736_v23, 0.0  ;;  %v3737_v61 = vmul.f32 %v3733_v63, %v3733_v63  ;;  %v5919_v27 = vld [vmem:[%s8491_s15 + $0x18] sm:$0xff]  }
0x1741   :  { %3743 = vadd.xlane.f32.xlu0 %v3742_v29 }
0x1742   :  { %v3734_v36 = vsub.f32 %v3714_v5, %v3730_v62  ;;  %v3745_v47 = vsel %vm346_vm2, %v3737_v61, 0.0  ;;  %5745 = vmatpush3.bf16.msra.mxu0 %v5917_v13  ;;  %v5059_v5 = vld [vmem:[%s8495_s17] ss:$0 sm:$0xff] }
0x1743   :  { %3746 = vadd.xlane.f32.xlu1 %v3745_v47  ;;  %5766 = vmatprep.subr.bf16.mxu0 %v5918_v16 }
0x1744   :  { %v3738_v1 = vmul.f32 %v3734_v36, %v3734_v36 }
0x1746   :  { %v3748_v7 = vsel %vm346_vm2, %v3738_v1, 0.0 }
0x1747   :  { %3749 = vadd.xlane.f32.xlu0 %v3748_v7 }
0x17cc   :  { %v3741_v45 = vpop.xlane.xlu1 %3740 }
0x17cd   :  { %v3751_v33 = vmul.f32 0.03125, %v3741_v45 }
0x17ce   :  { %v3744_v9 = vpop.xlane.xlu0 %3743 }
0x17cf   :  { %v3755_v30 = vadd.f32 1e-06, %v3751_v33  ;;  %v3752_v41 = vmul.f32 0.03125, %v3744_v9 }
0x17d0   :  { %v3747_v25 = vpop.xlane.xlu1 %3746 }
0x17d1   :  { %6212 = vrsqrt.f32 %v3755_v30  ;;  %v3756_v6 = vadd.f32 1e-06, %v3752_v41  ;;  %v3753_v31 = vmul.f32 0.03125, %v3747_v25 }
0x17d3   :  { %6214 = vrsqrt.f32 %v3756_v6  ;;  %v3757_v42 = vadd.f32 1e-06, %v3753_v31 }
0x17d4   :  { %v3750_v39 = vpop.xlane.xlu0 %3749 }
0x17d5   :  { %v3754_v56 = vmul.f32 0.03125, %v3750_v39  ;;  %6216 = vrsqrt.f32 %v3757_v42 }
0x17d7   :  { %v3758_v22 = vadd.f32 1e-06, %v3754_v56 }
0x17d9   :  { %6218 = vrsqrt.f32 %v3758_v22 }
0x17db   :  { %v6213_v46 = vpop.eup %6212 }
0x17dc   :  { %v3763_v49 = vmul.f32 %v6213_v46, %v3731_v11 }
0x17dd   :  { %v6215_v3 = vpop.eup %6214 }
0x17de   :  { %v3764_v17 = vmul.f32 %v6215_v3, %v3732_v2 }
0x17df   :  { %v6217_v57 = vpop.eup %6216 }
0x17e0   :  { %v3767_v14 = vpack.c.bf16 %v3764_v17, %v3763_v49  ;;  %v3765_v44 = vmul.f32 %v6217_v57, %v3733_v63 }
0x17e2   :  { %5734 = vmatprep.mubr.msk.bf16.mxu1 %vm346_vm2, %v3767_v14 }
0x17e3   :  { %v6219_v37 = vpop.eup %6218 }
0x17e4   :  { %v3766_v4 = vmul.f32 %v6219_v37, %v3734_v36 }
0x17e6   :  { %v3768_v51 = vpack.c.bf16 %v3766_v4, %v3765_v44 }
0x17e8   :  { %5735 = vmatmul.mubr.msk.bf16.vlgmr.msra.gmra.mrb[128].mxu1 %vm346_vm2, %v3768_v51 }
0x18bb   :  { %v5736_v34 = vpop.f32.mrb[128].mxu1 }
0x18bc   :  { %v3841_v18 = vadd.f32 %v5736_v34, %v5059_v5  ;;  %v3832_v24 = vpop.f32.mrb[129].mxu1 }
0x18bd   :  { %v3833_v50 = vadd.f32 %v5059_v5, %v3832_v24  ;;  %v5737_v43 = vpop.f32.mrb[130].mxu1 }
0x18be   :  { %v3844_v11 = vadd.f32 %v5737_v43, %v5059_v5  ;;  %v3835_v58 = vpop.f32.mrb[131].mxu1  ;;  %v3849_v2 = vmax.f32 %v3841_v18, 0.0 }
0x18bf   :  { %v3836_v52 = vadd.f32 %v5059_v5, %v3835_v58  ;;  %v3847_v60 = vmax.f32 %v3833_v50, 0.0 }
0x18c0   :  { %v3850_v59 = vmax.f32 %v3844_v11, 0.0 }
0x18c1   :  { %v3848_v63 = vmax.f32 %v3836_v52, 0.0 }
0x18c2   :  { %v3852_v40 = vpack.c.bf16 %v3850_v59, %v3849_v2 }
0x18c3   :  { %v3851_v23 = vpack.c.bf16 %v3848_v63, %v3847_v60 }
0x18c5   :  { %5746 = vmatprep.mubr.msk.bf16.mxu0 %vm1367_vm3, %v3851_v23 }
0x18c6   :  { %5747 = vmatmul.mubr.msk.bf16.vlgmr.msra.gmra.mrb[84].mxu0 %vm1367_vm3, %v3852_v40 }
0x18c7   :  { %5767 = vmatpush3.bf16.msra.mxu0 %v5918_v16  ;;  %5770 = vmatprep.mubr.msk.bf16.mxu0 %vm346_vm2, %v8125_v26 }
0x18c8   :  { %5768 = vmatprep.subr.bf16.mxu0 %v5919_v27 }
0x18cb   :  { %5769 = vmatpush3.bf16.msra.mxu0 %v5919_v27 }
0x18ce   :  { %5771 = vmatmul.mubr.msk.bf16.vlgmr.msra.gmra.mrb[88].mxu0 %vm346_vm2, %v8131_v0  ;;  %v5070_v0 = vld [vmem:[%s8496_s19] ss:$0 sm:$0xff] }
0x18cf   :  { %5774 = vmatprep.mubr.msk.bf16.mxu0 %vm346_vm2, %v8137_v21 }
0x18d6   :  { %5775 = vmatmul.mubr.msk.bf16.gmra.mrb[92].mxu0 %vm346_vm2, %v8143_v53 }
0x18d7   :  { %5778 = vmatprep.mubr.msk.bf16.mxu0 %vm346_vm2, %v8149_v38 }
0x18de   :  { %5779 = vmatmul.mubr.msk.bf16.gmra.mrb[96].mxu0 %vm346_vm2, %v8155_v35 }
0x18df   :  { %5782 = vmatprep.mubr.msk.bf16.mxu0 %vm346_vm2, %v8161_v28 }
0x18e6   :  { %5783 = vmatmul.mubr.msk.bf16.gmra.mrb[100].mxu0 %vm346_vm2, %v8167_v19 }
0x1999   :  { %v5748_v26 = vpop.f32.mrb[84].mxu0 }
0x199a   :  { %v3925_v21 = vpop.f32.mrb[85].mxu0  ;;  %v3942_v62 = vadd.f32 %v5748_v26, %v3765_v44 }
0x199b   :  { %v3940_v53 = vadd.f32 %v3925_v21, %v3763_v49  ;;  %v5749_v29 = vpop.f32.mrb[86].mxu0  ;;  %v5921_v21 = vld [vmem:[%s8488_s13 + $0x18] sm:$0xff]  }
0x199c   :  { %v3928_v61 = vpop.f32.mrb[87].mxu0  ;;  %v3943_v36 = vadd.f32 %v5749_v29, %v3766_v4  ;;  %v3953_v35 = vadd.f32 %v5070_v0, %v3942_v62  ;;  %v5922_v62 = vld [vmem:[%s8490_s14 + $0x10] sm:$0xff]  }
0x199d   :  { %v3951_v38 = vadd.f32 %v5070_v0, %v3940_v53  ;;  %v3941_v47 = vadd.f32 %v3928_v61, %v3764_v17 }
0x199e   :  { %v3954_v7 = vadd.f32 %v5070_v0, %v3943_v36  ;;  %v3961_v48 = vsel %vm346_vm2, %v3953_v35, 0.0 }
0x199f   :  { %v3952_v1 = vadd.f32 %v5070_v0, %v3941_v47  ;;  %v3955_v28 = vsel %vm346_vm2, %v3951_v38, 0.0  ;;  %v5920_v0 = vld [vmem:[%s8488_s13 + $0x10] sm:$0xff]  }
0x19a0   :  { %3956 = vadd.xlane.f32.xlu1 %v3955_v28  ;;  %v3964_v30 = vsel %vm346_vm2, %v3954_v7, 0.0  ;;  %5750 = vmatprep.subr.bf16.mxu1 %v5920_v0 }
0x19a1   :  { %v5772_v19 = vpop.f32.mrb[88].mxu0  ;;  %v3958_v12 = vsel %vm346_vm2, %v3952_v1, 0.0  ;;  %5751 = vmatpush3.bf16.msra.mxu1 %v5920_v0 }
0x19a2   :  { %v4262_v20 = vpop.f32.mrb[89].mxu0  ;;  %3959 = vadd.xlane.f32.xlu0 %v3958_v12  ;;  %5752 = vmatprep.subr.bf16.mxu1 %v5921_v21 }
0x19a3   :  { %v5773_v54 = vpop.f32.mrb[90].mxu0 }
0x19a4   :  { %v8291_v45 = vpack.c.bf16 %v5773_v54, %v5772_v19  ;;  %3962 = vadd.xlane.f32.xlu1 %v3961_v48  ;;  %v4265_v33 = vpop.f32.mrb[91].mxu0 }
0x19a5   :  { %v8293_v9 = vpack.c.bf16 %v4265_v33, %v4262_v20  ;;  %5753 = vmatpush3.bf16.msra.mxu1 %v5921_v21 }
0x19a6   :  { %3965 = vadd.xlane.f32.xlu0 %v3964_v30  ;;  %5758 = vmatprep.subr.bf16.mxu1 %v5922_v62 }
0x19a9   :  { %v5776_v41 = vpop.f32.mrb[92].mxu0 }
0x19aa   :  { %v4278_v25 = vpop.f32.mrb[93].mxu0 }
0x19ab   :  { %v5777_v6 = vpop.f32.mrb[94].mxu0 }
0x19ac   :  { %v8296_v31 = vpack.c.bf16 %v5777_v6, %v5776_v41  ;;  %v4281_v42 = vpop.f32.mrb[95].mxu0 }
0x19ad   :  { %v8298_v39 = vpack.c.bf16 %v4281_v42, %v4278_v25 }
0x19b1   :  { %v5780_v56 = vpop.f32.mrb[96].mxu0 }
0x19b2   :  { %v4294_v22 = vpop.f32.mrb[97].mxu0 }
0x19b3   :  { %v5781_v46 = vpop.f32.mrb[98].mxu0 }
0x19b4   :  { %v8300_v3 = vpack.c.bf16 %v5781_v46, %v5780_v56  ;;  %v4297_v49 = vpop.f32.mrb[99].mxu0 }
0x19b5   :  { %v8302_v17 = vpack.c.bf16 %v4297_v49, %v4294_v22  ;;  %v5923_v22 = vld [vmem:[%s8490_s14 + $0x18] sm:$0xff]  }
0x19b9   :  { %v5784_v14 = vpop.f32.mrb[100].mxu0 }
0x19ba   :  { %v4310_v57 = vpop.f32.mrb[101].mxu0 }
0x19bb   :  { %v5785_v37 = vpop.f32.mrb[102].mxu0 }
0x19bc   :  { %v8304_v44 = vpack.c.bf16 %v5785_v37, %v5784_v14  ;;  %v4313_v4 = vpop.f32.mrb[103].mxu0 }
0x19bd   :  { %v8306_v51 = vpack.c.bf16 %v4313_v4, %v4310_v57 }
0x1a2d   :  { %v3957_v10 = vpop.xlane.xlu1 %3956 }
0x1a2e   :  { %v3967_v13 = vmul.f32 0.03125, %v3957_v10 }
0x1a2f   :  { %v3960_v16 = vpop.xlane.xlu0 %3959 }
0x1a30   :  { %v3971_v5 = vsub.f32 %v3951_v38, %v3967_v13  ;;  %v3968_v34 = vmul.f32 0.03125, %v3960_v16 }
0x1a31   :  { %v3963_v18 = vpop.xlane.xlu1 %3962 }
0x1a32   :  { %v3972_v24 = vsub.f32 %v3952_v1, %v3968_v34  ;;  %v3969_v50 = vmul.f32 0.03125, %v3963_v18  ;;  %v3975_v43 = vmul.f32 %v3971_v5, %v3971_v5 }
0x1a33   :  { %v3966_v11 = vpop.xlane.xlu0 %3965 }
0x1a34   :  { %v3973_v58 = vsub.f32 %v3953_v35, %v3969_v50  ;;  %v3970_v52 = vmul.f32 0.03125, %v3966_v11  ;;  %v3979_v2 = vsel %vm346_vm2, %v3975_v43, 0.0  ;;  %v3976_v59 = vmul.f32 %v3972_v24, %v3972_v24 }
0x1a35   :  { %3980 = vadd.xlane.f32.xlu1 %v3979_v2 }
0x1a36   :  { %v3974_v60 = vsub.f32 %v3954_v7, %v3970_v52  ;;  %v3982_v63 = vsel %vm346_vm2, %v3976_v59, 0.0  ;;  %v3977_v40 = vmul.f32 %v3973_v58, %v3973_v58 }
0x1a37   :  { %3983 = vadd.xlane.f32.xlu0 %v3982_v63 }
0x1a38   :  { %v3985_v23 = vsel %vm346_vm2, %v3977_v40, 0.0  ;;  %v3978_v27 = vmul.f32 %v3974_v60, %v3974_v60 }
0x1a39   :  { %3986 = vadd.xlane.f32.xlu1 %v3985_v23 }
0x1a3a   :  { %v3988_v26 = vsel %vm346_vm2, %v3978_v27, 0.0 }
0x1a3b   :  { %3989 = vadd.xlane.f32.xlu0 %v3988_v26 }
0x1ac2   :  { %v3981_v53 = vpop.xlane.xlu1 %3980 }
0x1ac3   :  { %v3991_v29 = vmul.f32 0.03125, %v3981_v53 }
0x1ac4   :  { %v3984_v61 = vpop.xlane.xlu0 %3983 }
0x1ac5   :  { %v3995_v38 = vadd.f32 1e-06, %v3991_v29  ;;  %v3992_v36 = vmul.f32 0.03125, %v3984_v61 }
0x1ac6   :  { %v3987_v47 = vpop.xlane.xlu1 %3986 }
0x1ac7   :  { %6220 = vrsqrt.f32 %v3995_v38  ;;  %v3996_v35 = vadd.f32 1e-06, %v3992_v36  ;;  %v3993_v1 = vmul.f32 0.03125, %v3987_v47 }
0x1ac8   :  { %v3990_v28 = vpop.xlane.xlu0 %3989 }
0x1ac9   :  { %6222 = vrsqrt.f32 %v3996_v35  ;;  %v3997_v7 = vadd.f32 1e-06, %v3993_v1  ;;  %v3994_v19 = vmul.f32 0.03125, %v3990_v28 }
0x1acb   :  { %6224 = vrsqrt.f32 %v3997_v7  ;;  %v3998_v12 = vadd.f32 1e-06, %v3994_v19 }
0x1acd   :  { %6226 = vrsqrt.f32 %v3998_v12 }
0x1ad1   :  { %v6221_v20 = vpop.eup %6220 }
0x1ad2   :  { %v4003_v48 = vmul.f32 %v6221_v20, %v3971_v5 }
0x1ad3   :  { %v6223_v54 = vpop.eup %6222 }
0x1ad4   :  { %v4004_v33 = vmul.f32 %v6223_v54, %v3972_v24 }
0x1ad5   :  { %v6225_v30 = vpop.eup %6224 }
0x1ad6   :  { %v4007_v41 = vpack.c.bf16 %v4004_v33, %v4003_v48  ;;  %v4005_v6 = vmul.f32 %v6225_v30, %v3973_v58 }
0x1ad7   :  { %v6227_v25 = vpop.eup %6226 }
0x1ad8   :  { %v4006_v42 = vmul.f32 %v6227_v25, %v3974_v60  ;;  %5754 = vmatprep.mubr.msk.bf16.mxu1 %vm346_vm2, %v4007_v41 }
0x1ada   :  { %v4008_v56 = vpack.c.bf16 %v4006_v42, %v4005_v6 }
0x1adc   :  { %5755 = vmatmul.mubr.msk.bf16.vlgmr.msra.gmra.mrb[132].mxu1 %vm346_vm2, %v4008_v56 }
0x1add   :  { %5759 = vmatpush3.bf16.msra.mxu1 %v5922_v62 }
0x1ade   :  { %5760 = vmatprep.subr.bf16.mxu1 %v5923_v22 }
0x1ae1   :  { %5761 = vmatpush3.bf16.msra.mxu1 %v5923_v22 }
0x1ae2   :  { %5880 = vmatprep.subr.msk.bf16.mxu1 %vm346_vm2, %v8293_v9 }
0x1baf   :  { %v5756_v46 = vpop.f32.mrb[132].mxu1 }
0x1bb0   :  { %v4066_v49 = vpop.f32.mrb[133].mxu1  ;;  %v4083_v4 = vadd.f32 %v5756_v46, %v4005_v6 }
0x1bb1   :  { %v4081_v14 = vadd.f32 %v4066_v49, %v4003_v48  ;;  %v5757_v57 = vpop.f32.mrb[134].mxu1 }
0x1bb2   :  { %v4069_v37 = vpop.f32.mrb[135].mxu1  ;;  %v4084_v16 = vadd.f32 %v5757_v57, %v4006_v42  ;;  %v4091_v34 = vsel %vm346_vm2, %v4083_v4, 0.0  ;;  %v4345_v57 = vsel %vm346_vm2, %v8291_v45, 0 }
0x1bb3   :  { %v4082_v10 = vadd.f32 %v4069_v37, %v4004_v33  ;;  %v4085_v13 = vsel %vm346_vm2, %v4081_v14, 0.0  ;;  %v4348_v37 = vsel %vm346_vm2, %v8298_v39, 0 }
0x1bb4   :  { %4086 = vadd.xlane.f32.xlu1 %v4085_v13  ;;  %v4094_v18 = vsel %vm346_vm2, %v4084_v16, 0.0  ;;  %v4357_v13 = vsel %vm346_vm2, %v8300_v3, 0 }
0x1bb5   :  { %v4088_v5 = vsel %vm346_vm2, %v4082_v10, 0.0 }
0x1bb6   :  { %4089 = vadd.xlane.f32.xlu0 %v4088_v5  ;;  %v4363_v5 = vsel %vm346_vm2, %v8304_v44, 0 }
0x1bb8   :  { %4092 = vadd.xlane.f32.xlu1 %v4091_v34 }
0x1bba   :  { %4095 = vadd.xlane.f32.xlu0 %v4094_v18 }
0x1c41   :  { %v4087_v24 = vpop.xlane.xlu1 %4086 }
0x1c42   :  { %v4097_v50 = vmul.f32 0.03125, %v4087_v24 }
0x1c43   :  { %v4090_v43 = vpop.xlane.xlu0 %4089 }
0x1c44   :  { %v4101_v11 = vsub.f32 %v4081_v14, %v4097_v50  ;;  %v4098_v58 = vmul.f32 0.03125, %v4090_v43  ;;  %v4342_v14 = vsel %vm346_vm2, %v8293_v9, 0 }
0x1c45   :  { %v4093_v52 = vpop.xlane.xlu1 %4092 }
0x1c46   :  { %v4102_v2 = vsub.f32 %v4082_v10, %v4098_v58  ;;  %v4099_v59 = vmul.f32 0.03125, %v4093_v52  ;;  %v4105_v60 = vmul.f32 %v4101_v11, %v4101_v11  ;;  %v4354_v10 = vsel %vm346_vm2, %v8302_v17, 0 }
0x1c47   :  { %v4096_v63 = vpop.xlane.xlu0 %4095 }
0x1c48   :  { %v4103_v40 = vsub.f32 %v4083_v4, %v4099_v59  ;;  %v4100_v23 = vmul.f32 0.03125, %v4096_v63  ;;  %v4109_v27 = vsel %vm346_vm2, %v4105_v60, 0.0  ;;  %v4106_v26 = vmul.f32 %v4102_v2, %v4102_v2 }
0x1c49   :  { %4110 = vadd.xlane.f32.xlu1 %v4109_v27  ;;  %v4351_v4 = vsel %vm346_vm2, %v8296_v31, 0 }
0x1c4a   :  { %v4104_v0 = vsub.f32 %v4084_v16, %v4100_v23  ;;  %v4112_v21 = vsel %vm346_vm2, %v4106_v26, 0.0  ;;  %v4107_v62 = vmul.f32 %v4103_v40, %v4103_v40  ;;  %v4360_v16 = vsel %vm346_vm2, %v8306_v51, 0 }
0x1c4b   :  { %4113 = vadd.xlane.f32.xlu0 %v4112_v21 }
0x1c4c   :  { %v4115_v53 = vsel %vm346_vm2, %v4107_v62, 0.0  ;;  %v4108_v29 = vmul.f32 %v4104_v0, %v4104_v0 }
0x1c4d   :  { %4116 = vadd.xlane.f32.xlu1 %v4115_v53 }
0x1c4e   :  { %v4118_v61 = vsel %vm346_vm2, %v4108_v29, 0.0 }
0x1c4f   :  { %4119 = vadd.xlane.f32.xlu0 %v4118_v61 }
0x1cd6   :  { %v4111_v38 = vpop.xlane.xlu1 %4110 }
0x1cd7   :  { %v4121_v36 = vmul.f32 0.03125, %v4111_v38 }
0x1cd8   :  { %v4114_v47 = vpop.xlane.xlu0 %4113 }
0x1cd9   :  { %v4125_v35 = vadd.f32 1e-06, %v4121_v36  ;;  %v4122_v1 = vmul.f32 0.03125, %v4114_v47 }
0x1cda   :  { %v4117_v28 = vpop.xlane.xlu1 %4116 }
0x1cdb   :  { %6228 = vrsqrt.f32 %v4125_v35  ;;  %v4126_v7 = vadd.f32 1e-06, %v4122_v1  ;;  %v4123_v19 = vmul.f32 0.03125, %v4117_v28 }
0x1cdc   :  { %v4120_v12 = vpop.xlane.xlu0 %4119 }
0x1cdd   :  { %6230 = vrsqrt.f32 %v4126_v7  ;;  %v4127_v20 = vadd.f32 1e-06, %v4123_v19  ;;  %v4124_v54 = vmul.f32 0.03125, %v4120_v12 }
0x1cdf   :  { %6232 = vrsqrt.f32 %v4127_v20  ;;  %v4128_v48 = vadd.f32 1e-06, %v4124_v54 }
0x1ce1   :  { %6234 = vrsqrt.f32 %v4128_v48 }
0x1ce5   :  { %v6229_v33 = vpop.eup %6228 }
0x1ce6   :  { %v8336_v41 = vmul.f32 %v6229_v33, %v4101_v11 }
0x1ce7   :  { %v6231_v30 = vpop.eup %6230 }
0x1ce8   :  { %v8338_v25 = vmul.f32 %v6231_v30, %v4102_v2 }
0x1ce9   :  { %v6233_v6 = vpop.eup %6232 }
0x1cea   :  { %v4137_v42 = vpack.c.bf16 %v8338_v25, %v8336_v41  ;;  %v8342_v22 = vmul.f32 %v6233_v6, %v4103_v40 }
0x1ceb   :  { %v6235_v56 = vpop.eup %6234 }
0x1cec   :  { %v8344_v46 = vmul.f32 %v6235_v56, %v4104_v0  ;;  %5762 = vmatprep.mubr.msk.bf16.mxu1 %vm346_vm2, %v4137_v42 }
0x1cee   :  { %v4138_v49 = vpack.c.bf16 %v8344_v46, %v8342_v22 }
0x1cf0   :  { %5763 = vmatmul.mubr.msk.bf16.vlgmr.msra.gmra.mrb[136].mxu1 %vm346_vm2, %v4138_v49 }
0x1cf1   :  { %5787 = vmatpush3.bf16.xpose.msra.mxu1 %v4342_v14 }
0x1cf2   :  { %5881 = vmatprep.subr.msk.bf16.mxu1 %vm346_vm2, %v8291_v45 }
0x1cf9   :  { %5789 = vmatpush3.bf16.xpose.msra.mxu1 %v4345_v57 }
0x1cfa   :  { %5882 = vmatprep.subr.msk.bf16.mxu1 %vm346_vm2, %v8298_v39 }
0x1d01   :  { %5791 = vmatpush3.bf16.xpose.msra.mxu1 %v4348_v37 }
0x1d02   :  { %5883 = vmatprep.subr.msk.bf16.mxu1 %vm346_vm2, %v8296_v31 }
0x1d09   :  { %5793 = vmatpush3.bf16.xpose.msra.mxu1 %v4351_v4 }
0x1d0a   :  { %5884 = vmatprep.subr.msk.bf16.mxu1 %vm346_vm2, %v8302_v17 }
0x1d11   :  { %5795 = vmatpush3.bf16.xpose.msra.mxu1 %v4354_v10 }
0x1d12   :  { %5885 = vmatprep.subr.msk.bf16.mxu1 %vm346_vm2, %v8300_v3 }
0x1d19   :  { %5797 = vmatpush3.bf16.xpose.msra.mxu1 %v4357_v13 }
0x1d1a   :  { %5886 = vmatprep.subr.msk.bf16.mxu1 %vm346_vm2, %v8306_v51 }
0x1d21   :  { %5799 = vmatpush3.bf16.xpose.msra.mxu1 %v4360_v16 }
0x1d22   :  { %5887 = vmatprep.subr.msk.bf16.mxu1 %vm346_vm2, %v8304_v44 }
0x1d29   :  { %5801 = vmatpush3.bf16.xpose.msra.mxu1 %v4363_v5 }
0x1dc3   :  { %v5764_v34 = vpop.f32.mrb[136].mxu1 }
0x1dc4   :  { %v4196_v18 = vpop.f32.mrb[137].mxu1 }
0x1dc5   :  { %v5765_v24 = vpop.f32.mrb[138].mxu1 }
0x1dc6   :  { %v4334_v50 = vpack.c.bf16 %v5765_v24, %v5764_v34  ;;  %v4199_v43 = vpop.f32.mrb[139].mxu1 }
0x1dc7   :  { %v4333_v11 = vpack.c.bf16 %v4199_v43, %v4196_v18 }
0x1dc9   :  { %5802 = vmatprep.mubr.msk.bf16.mxu1 %vm346_vm2, %v4333_v11 }
0x1dca   :  { %5803 = vmatmul.mubr.msk.bf16.vlgmr.msra.gmra.mrb[140].mxu1 %vm346_vm2, %v4334_v50 }
0x1e9d   :  { %v5804_v58 = vpop.f32.mrb[140].mxu1 }
0x1e9e   :  { %v4399_v52 = vpop.f32.mrb[141].mxu1 }
0x1e9f   :  { %4414 = vmax.xlane.f32.xlu1 %v4399_v52  ;;  %v5805_v2 = vpop.f32.mrb[142].mxu1 }
0x1ea0   :  { %v4402_v59 = vpop.f32.mrb[143].mxu1 }
0x1ea1   :  { %4416 = vmax.xlane.f32.xlu0 %v4402_v59 }
0x1ea3   :  { %4418 = vmax.xlane.f32.xlu1 %v5804_v58 }
0x1ea5   :  { %4420 = vmax.xlane.f32.xlu0 %v5805_v2 }
0x1eb4   :  { %4464 = vrot.lane.b32.xlu1 %v8293_v9, %s6284_s4 }
0x1eb8   :  { %4466 = vrot.lane.b32.xlu1 %v8291_v45, %s6284_s4 }
0x1ebc   :  { %4470 = vrot.lane.b32.xlu1 %v8296_v31, %s6284_s4 }
0x1ec0   :  { %4472 = vrot.lane.b32.xlu1 %v8302_v17, %s6284_s4 }
0x1ec4   :  { %4474 = vrot.lane.b32.xlu1 %v8300_v3, %s6284_s4 }
0x1ec8   :  { %4476 = vrot.lane.b32.xlu1 %v8306_v51, %s6284_s4 }
0x1ecc   :  { %4478 = vrot.lane.b32.xlu1 %v8304_v44, %s6284_s4 }
0x1f2c   :  { %v4415_v60 = vpop.xlane.xlu1 %4414 }
0x1f2d   :  { %v4422_v63 = vsub.f32 %v4399_v52, %v4415_v60 }
0x1f2e   :  { %v4417_v9 = vpop.xlane.xlu0 %4416 }
0x1f2f   :  { %v4426_v27 = vmul.f32 1.442695, %v4422_v63  ;;  %v4423_v3 = vsub.f32 %v4402_v59, %v4417_v9 }
0x1f30   :  { %v4419_v40 = vpop.xlane.xlu1 %4418 }
0x1f31   :  { %v4424_v45 = vsub.f32 %v5804_v58, %v4419_v40  ;;  %v4428_v44 = vmul.f32 1.442695, %v4423_v3  ;;  %v5924_v3 = vld [vmem:[%s8493_s16 + $0x10] sm:$0xff]  }
0x1f32   :  { %v4421_v23 = vpop.xlane.xlu0 %4420 }
0x1f33   :  { %v4430_v31 = vmul.f32 1.442695, %v4424_v45  ;;  %v4425_v26 = vsub.f32 %v5805_v2, %v4421_v23 }
0x1f34   :  { %v4465_v0 = vpop.permute.xlu1 %4464 }
0x1f35   :  { %6236 = vpow2.f32 %v4430_v31  ;;  %5806 = vmatprep.subr.bf16.mxu0 %v4465_v0  ;;  %v4432_v17 = vmul.f32 1.442695, %v4425_v26 }
0x1f36   :  { %5807 = vmatpush3.bf16.msra.mxu0 %v4465_v0  ;;  %6238 = vpow2.f32 %v4426_v27 }
0x1f37   :  { %6240 = vpow2.f32 %v4432_v17  ;;  %v5925_v17 = vld [vmem:[%s8493_s16 + $0x18] sm:$0xff]  }
0x1f38   :  { %v4467_v51 = vpop.permute.xlu1 %4466  ;;  %6242 = vpow2.f32 %v4428_v44 }
0x1f39   :  { %5808 = vmatprep.subr.bf16.mxu0 %v4467_v51 }
0x1f3a   :  { %5809 = vmatpush3.bf16.msra.mxu0 %v4467_v51  ;;  %v5926_v51 = vld [vmem:[%s8494_s18 + $0x20] sm:$0xff]  }
0x1f3f   :  { %v6237_v21 = vpop.eup %6236 }
0x1f40   :  { %v4436_v62 = vmul.f32 %v6237_v21, %v8203_v32  ;;  %v6239_v53 = vpop.eup %6238  ;;  %v4471_v32 = vpop.permute.xlu1 %4470 }
0x1f41   :  { %v4434_v29 = vmul.f32 %v6239_v53, %v8209_v15  ;;  %v6241_v61 = vpop.eup %6240 }
0x1f42   :  { %4442 = vadd.xlane.f32.xlu0 %v4436_v62  ;;  %v4437_v38 = vmul.f32 %v6241_v61, %v8215_v55  ;;  %v6243_v36 = vpop.eup %6242 }
0x1f43   :  { %v4435_v47 = vmul.f32 %v6243_v36, %v8221_v8 }
0x1f44   :  { %v4473_v15 = vpop.permute.xlu1 %4472 }
0x1f46   :  { %4438 = vadd.xlane.f32.xlu0 %v4434_v29 }
0x1f48   :  { %v4475_v12 = vpop.permute.xlu1 %4474 }
0x1f4a   :  { %4444 = vadd.xlane.f32.xlu0 %v4437_v38 }
0x1f4c   :  { %v4477_v48 = vpop.permute.xlu1 %4476 }
0x1f4e   :  { %4440 = vadd.xlane.f32.xlu0 %v4435_v47 }
0x1f50   :  { %v4479_v6 = vpop.permute.xlu1 %4478 }
0x1f64   :  { %4468 = vrot.lane.b32.xlu0 %v8298_v39, %s6284_s4 }
0x1fcf   :  { %v4443_v35 = vpop.xlane.xlu0 %4442 }
0x1fd3   :  { %v4439_v1 = vpop.xlane.xlu0 %4438 }
0x1fd4   :  { %6244 = vrcp.f32 %v4439_v1 }
0x1fd7   :  { %v4445_v28 = vpop.xlane.xlu0 %4444 }
0x1fdb   :  { %v4441_v7 = vpop.xlane.xlu0 %4440 }
0x1fdc   :  { %6246 = vrcp.f32 %v4441_v7 }
0x1fdd   :  { %6248 = vrcp.f32 %v4445_v28 }
0x1fde   :  { %v6245_v55 = vpop.eup %6244  ;;  %6250 = vrcp.f32 %v4443_v35 }
0x1fdf   :  { %v4469_v19 = vpop.permute.xlu0 %4468  ;;  %v4450_v39 = vmul.f32 %v6245_v55, %v4434_v29 }
0x1fe0   :  { %5810 = vmatprep.subr.bf16.mxu0 %v4469_v19 }
0x1fe1   :  { %5811 = vmatpush3.bf16.msra.mxu0 %v4469_v19 }
0x1fe2   :  { %5812 = vmatprep.subr.bf16.mxu0 %v4471_v32 }
0x1fe5   :  { %5813 = vmatpush3.bf16.msra.mxu0 %v4471_v32 }
0x1fe6   :  { %v6247_v8 = vpop.eup %6246  ;;  %5814 = vmatprep.subr.bf16.mxu0 %v4473_v15 }
0x1fe7   :  { %v4451_v20 = vmul.f32 %v6247_v8, %v4435_v47  ;;  %v6249_v33 = vpop.eup %6248 }
0x1fe8   :  { %v6251_v30 = vpop.eup %6250  ;;  %v4453_v42 = vmul.f32 %v6249_v33, %v4437_v38  ;;  %v5928_v33 = vld [vmem:[%s8494_s18 + $0x30] sm:$0xff]  }
0x1fe9   :  { %5815 = vmatpush3.bf16.msra.mxu0 %v4473_v15  ;;  %v4454_v54 = vpack.c.bf16 %v4451_v20, %v4450_v39  ;;  %v4452_v56 = vmul.f32 %v6251_v30, %v4436_v62  ;;  %v5929_v30 = vld [vmem:[%s8494_s18 + $0x38] sm:$0xff]  }
0x1fea   :  { %5816 = vmatprep.subr.bf16.mxu0 %v4475_v12 }
0x1feb   :  { %5822 = vmatprep.mubr.bf16.mxu0 %v4454_v54  ;;  %v4455_v49 = vpack.c.bf16 %v4453_v42, %v4452_v56 }
0x1fed   :  { %5817 = vmatpush3.bf16.msra.mxu0 %v4475_v12 }
0x1fee   :  { %5818 = vmatprep.subr.bf16.mxu0 %v4477_v48 }
0x1ff1   :  { %5819 = vmatpush3.bf16.msra.mxu0 %v4477_v48  ;;  %v5927_v48 = vld [vmem:[%s8494_s18 + $0x28] sm:$0xff]  }
0x1ff2   :  { %5820 = vmatprep.subr.bf16.mxu0 %v4479_v6 }
0x1ff5   :  { %5821 = vmatpush3.bf16.msra.mxu0 %v4479_v6  ;;  %v5108_v6 = vld [vmem:[%s8495_s17 + $0x1] ss:$0 sm:$0xff] }
0x1ff6   :  { %5826 = vmatprep.subr.bf16.mxu0 %v5924_v3 }
0x1ff8   :  { %5823 = vmatmul.mubr.bf16.vlgmr.msra.gmra.mrb[104].mxu0 %v4455_v49 }
0x1ff9   :  { %5827 = vmatpush3.bf16.msra.mxu0 %v5924_v3 }
0x1ffa   :  { %5828 = vmatprep.subr.bf16.mxu0 %v5925_v17 }
0x1ffd   :  { %5829 = vmatpush3.bf16.msra.mxu0 %v5925_v17 }
0x1ffe   :  { %5834 = vmatprep.subr.bf16.mxu0 %v5926_v51 }
0x20cb   :  { %v5824_v14 = vpop.f32.mrb[104].mxu0 }
0x20cc   :  { %v4522_v57 = vpop.f32.mrb[105].mxu0  ;;  %v4539_v13 = vadd.f32 %v5824_v14, %v8342_v22 }
0x20cd   :  { %v4537_v37 = vadd.f32 %v4522_v57, %v8336_v41  ;;  %v5825_v4 = vpop.f32.mrb[106].mxu0 }
0x20ce   :  { %v4525_v10 = vpop.f32.mrb[107].mxu0  ;;  %v4540_v18 = vadd.f32 %v5825_v4, %v8344_v46  ;;  %v4547_v24 = vsel %vm346_vm2, %v4539_v13, 0.0 }
0x20cf   :  { %v4538_v16 = vadd.f32 %v4525_v10, %v8338_v25  ;;  %v4541_v5 = vsel %vm346_vm2, %v4537_v37, 0.0 }
0x20d0   :  { %4542 = vadd.xlane.f32.xlu0 %v4541_v5  ;;  %v4550_v50 = vsel %vm346_vm2, %v4540_v18, 0.0 }
0x20d1   :  { %v4544_v34 = vsel %vm346_vm2, %v4538_v16, 0.0 }
0x20d2   :  { %4545 = vadd.xlane.f32.xlu1 %v4544_v34 }
0x20d4   :  { %4548 = vadd.xlane.f32.xlu0 %v4547_v24 }
0x20d8   :  { %4551 = vadd.xlane.f32.xlu0 %v4550_v50 }
0x215d   :  { %v4543_v41 = vpop.xlane.xlu0 %4542 }
0x215e   :  { %v4553_v43 = vmul.f32 0.03125, %v4543_v41  ;;  %v5128_v41 = vld [vmem:[%s8496_s19 + $0x1] ss:$0 sm:$0xff] }
0x215f   :  { %v4546_v11 = vpop.xlane.xlu1 %4545 }
0x2160   :  { %v4557_v22 = vsub.f32 %v4537_v37, %v4553_v43  ;;  %v4554_v58 = vmul.f32 0.03125, %v4546_v11 }
0x2161   :  { %v4549_v25 = vpop.xlane.xlu0 %4548 }
0x2162   :  { %v4558_v52 = vsub.f32 %v4538_v16, %v4554_v58  ;;  %v4555_v2 = vmul.f32 0.03125, %v4549_v25  ;;  %v4561_v59 = vmul.f32 %v4557_v22, %v4557_v22 }
0x2164   :  { %v4559_v60 = vsub.f32 %v4539_v13, %v4555_v2  ;;  %v4565_v9 = vsel %vm346_vm2, %v4561_v59, 0.0  ;;  %v4562_v63 = vmul.f32 %v4558_v52, %v4558_v52 }
0x2165   :  { %v4552_v46 = vpop.xlane.xlu0 %4551  ;;  %4566 = vadd.xlane.f32.xlu1 %v4565_v9 }
0x2166   :  { %v4556_v40 = vmul.f32 0.03125, %v4552_v46  ;;  %v4568_v45 = vsel %vm346_vm2, %v4562_v63, 0.0  ;;  %v4563_v23 = vmul.f32 %v4559_v60, %v4559_v60 }
0x2167   :  { %4569 = vadd.xlane.f32.xlu0 %v4568_v45 }
0x2168   :  { %v4560_v27 = vsub.f32 %v4540_v18, %v4556_v40  ;;  %v4571_v31 = vsel %vm346_vm2, %v4563_v23, 0.0 }
0x2169   :  { %4572 = vadd.xlane.f32.xlu1 %v4571_v31 }
0x216a   :  { %v4564_v26 = vmul.f32 %v4560_v27, %v4560_v27 }
0x216c   :  { %v4574_v0 = vsel %vm346_vm2, %v4564_v26, 0.0 }
0x216d   :  { %4575 = vadd.xlane.f32.xlu0 %v4574_v0 }
0x21f2   :  { %v4567_v44 = vpop.xlane.xlu1 %4566 }
0x21f3   :  { %v4577_v21 = vmul.f32 0.03125, %v4567_v44 }
0x21f4   :  { %v4570_v62 = vpop.xlane.xlu0 %4569 }
0x21f5   :  { %v4581_v53 = vadd.f32 1e-06, %v4577_v21  ;;  %v4578_v29 = vmul.f32 0.03125, %v4570_v62 }
0x21f6   :  { %v4573_v61 = vpop.xlane.xlu1 %4572 }
0x21f7   :  { %6252 = vrsqrt.f32 %v4581_v53  ;;  %v4582_v38 = vadd.f32 1e-06, %v4578_v29  ;;  %v4579_v36 = vmul.f32 0.03125, %v4573_v61 }
0x21f9   :  { %6254 = vrsqrt.f32 %v4582_v38  ;;  %v4583_v47 = vadd.f32 1e-06, %v4579_v36 }
0x21fa   :  { %v4576_v35 = vpop.xlane.xlu0 %4575 }
0x21fb   :  { %v4580_v1 = vmul.f32 0.03125, %v4576_v35  ;;  %6256 = vrsqrt.f32 %v4583_v47 }
0x21fd   :  { %v4584_v28 = vadd.f32 1e-06, %v4580_v1 }
0x21ff   :  { %6258 = vrsqrt.f32 %v4584_v28 }
0x2201   :  { %v6253_v32 = vpop.eup %6252 }
0x2202   :  { %v4589_v15 = vmul.f32 %v6253_v32, %v4557_v22 }
0x2203   :  { %v6255_v7 = vpop.eup %6254 }
0x2204   :  { %v4590_v19 = vmul.f32 %v6255_v7, %v4558_v52  ;;  %v5930_v7 = vld [vmem:[%s8497_s20] sm:$0xff]  }
0x2205   :  { %v6257_v12 = vpop.eup %6256 }
0x2206   :  { %v4593_v55 = vpack.c.bf16 %v4590_v19, %v4589_v15  ;;  %v4591_v39 = vmul.f32 %v6257_v12, %v4559_v60 }
0x2208   :  { %5830 = vmatprep.mubr.msk.bf16.mxu0 %vm346_vm2, %v4593_v55 }
0x2209   :  { %v6259_v8 = vpop.eup %6258 }
0x220a   :  { %v4592_v20 = vmul.f32 %v6259_v8, %v4560_v27 }
0x220c   :  { %v4594_v54 = vpack.c.bf16 %v4592_v20, %v4591_v39 }
0x220e   :  { %5831 = vmatmul.mubr.msk.bf16.vlgmr.msra.gmra.mrb[108].mxu0 %vm346_vm2, %v4594_v54 }
0x220f   :  { %5835 = vmatpush3.bf16.msra.mxu0 %v5926_v51 }
0x2210   :  { %5836 = vmatprep.subr.bf16.mxu0 %v5927_v48 }
0x2213   :  { %5837 = vmatpush3.bf16.msra.mxu0 %v5927_v48 }
0x2214   :  { %5838 = vmatprep.subr.bf16.mxu0 %v5928_v33 }
0x2217   :  { %5839 = vmatpush3.bf16.msra.mxu0 %v5928_v33 }
0x2218   :  { %5840 = vmatprep.subr.bf16.mxu0 %v5929_v30 }
0x221b   :  { %5841 = vmatpush3.bf16.msra.mxu0 %v5929_v30 }
0x221c   :  { %5846 = vmatprep.subr.bf16.mxu0 %v5930_v7 }
0x22e1   :  { %v5832_v42 = vpop.f32.mrb[108].mxu0 }
0x22e2   :  { %v4669_v56 = vadd.f32 %v5832_v42, %v5108_v6  ;;  %v4660_v49 = vpop.f32.mrb[109].mxu0 }
0x22e3   :  { %v4661_v14 = vadd.f32 %v5108_v6, %v4660_v49  ;;  %v5833_v57 = vpop.f32.mrb[110].mxu0 }
0x22e4   :  { %v4672_v37 = vadd.f32 %v5833_v57, %v5108_v6  ;;  %v4663_v4 = vpop.f32.mrb[111].mxu0  ;;  %v4677_v13 = vmax.f32 %v4669_v56, 0.0 }
0x22e5   :  { %v4664_v10 = vadd.f32 %v5108_v6, %v4663_v4  ;;  %v4675_v5 = vmax.f32 %v4661_v14, 0.0 }
0x22e6   :  { %v4678_v16 = vmax.f32 %v4672_v37, 0.0 }
0x22e7   :  { %v4676_v34 = vmax.f32 %v4664_v10, 0.0 }
0x22e8   :  { %v4680_v18 = vpack.c.bf16 %v4678_v16, %v4677_v13 }
0x22e9   :  { %v4679_v24 = vpack.c.bf16 %v4676_v34, %v4675_v5  ;;  %v5129_v34 = vld [vmem:[%s8498_s21] ss:$0 sm:$0xff] }
0x22eb   :  { %5842 = vmatprep.mubr.msk.bf16.mxu0 %vm1367_vm3, %v4679_v24 }
0x22ec   :  { %5843 = vmatmul.mubr.msk.bf16.vlgmr.msra.gmra.mrb[112].mxu0 %vm1367_vm3, %v4680_v18 }
0x22ed   :  { %5847 = vmatpush3.bf16.msra.mxu0 %v5930_v7 }
0x23bf   :  { %v5844_v50 = vpop.f32.mrb[112].mxu0 }
0x23c0   :  { %v4754_v43 = vpop.f32.mrb[113].mxu0  ;;  %v4771_v11 = vadd.f32 %v5844_v50, %v4591_v39 }
0x23c1   :  { %v4769_v22 = vadd.f32 %v4754_v43, %v4589_v15  ;;  %v5845_v58 = vpop.f32.mrb[114].mxu0  ;;  %v5931_v15 = vld [vmem:[%s8497_s20 + $0x8] sm:$0xff]  }
0x23c2   :  { %v4757_v25 = vpop.f32.mrb[115].mxu0  ;;  %v4772_v2 = vadd.f32 %v5845_v58, %v4592_v20  ;;  %v4783_v60 = vadd.f32 %v5128_v41, %v4771_v11  ;;  %5848 = vmatprep.subr.bf16.mxu0 %v5931_v15 }
0x23c3   :  { %v4781_v52 = vadd.f32 %v5128_v41, %v4769_v22  ;;  %v4770_v59 = vadd.f32 %v4757_v25, %v4590_v19  ;;  %5849 = vmatpush3.bf16.msra.mxu0 %v5931_v15 }
0x23c4   :  { %v4784_v46 = vadd.f32 %v5128_v41, %v4772_v2  ;;  %v4791_v45 = vsel %vm346_vm2, %v4783_v60, 0.0 }
0x23c5   :  { %v4782_v9 = vadd.f32 %v5128_v41, %v4770_v59  ;;  %v4785_v63 = vsel %vm346_vm2, %v4781_v52, 0.0 }
0x23c6   :  { %4786 = vadd.xlane.f32.xlu1 %v4785_v63  ;;  %v4794_v23 = vsel %vm346_vm2, %v4784_v46, 0.0 }
0x23c7   :  { %v4788_v40 = vsel %vm346_vm2, %v4782_v9, 0.0 }
0x23c8   :  { %4789 = vadd.xlane.f32.xlu0 %v4788_v40 }
0x23ca   :  { %4792 = vadd.xlane.f32.xlu1 %v4791_v45 }
0x23cc   :  { %4795 = vadd.xlane.f32.xlu0 %v4794_v23 }
0x2453   :  { %v4787_v27 = vpop.xlane.xlu1 %4786 }
0x2454   :  { %v4797_v31 = vmul.f32 0.03125, %v4787_v27 }
0x2455   :  { %v4790_v26 = vpop.xlane.xlu0 %4789 }
0x2456   :  { %v4801_v0 = vsub.f32 %v4781_v52, %v4797_v31  ;;  %v4798_v3 = vmul.f32 0.03125, %v4790_v26 }
0x2457   :  { %v4793_v17 = vpop.xlane.xlu1 %4792 }
0x2458   :  { %v4802_v51 = vsub.f32 %v4782_v9, %v4798_v3  ;;  %v4799_v44 = vmul.f32 0.03125, %v4793_v17  ;;  %v4805_v21 = vmul.f32 %v4801_v0, %v4801_v0 }
0x2459   :  { %v4796_v62 = vpop.xlane.xlu0 %4795 }
0x245a   :  { %v4803_v53 = vsub.f32 %v4783_v60, %v4799_v44  ;;  %v4800_v29 = vmul.f32 0.03125, %v4796_v62  ;;  %v4809_v61 = vsel %vm346_vm2, %v4805_v21, 0.0  ;;  %v4806_v38 = vmul.f32 %v4802_v51, %v4802_v51 }
0x245b   :  { %4810 = vadd.xlane.f32.xlu1 %v4809_v61 }
0x245c   :  { %v4804_v36 = vsub.f32 %v4784_v46, %v4800_v29  ;;  %v4812_v47 = vsel %vm346_vm2, %v4806_v38, 0.0  ;;  %v4807_v35 = vmul.f32 %v4803_v53, %v4803_v53 }
0x245d   :  { %4813 = vadd.xlane.f32.xlu0 %v4812_v47 }
0x245e   :  { %v4815_v1 = vsel %vm346_vm2, %v4807_v35, 0.0  ;;  %v4808_v28 = vmul.f32 %v4804_v36, %v4804_v36 }
0x245f   :  { %4816 = vadd.xlane.f32.xlu1 %v4815_v1 }
0x2460   :  { %v4818_v32 = vsel %vm346_vm2, %v4808_v28, 0.0 }
0x2461   :  { %4819 = vadd.xlane.f32.xlu0 %v4818_v32 }
0x24e8   :  { %v4811_v19 = vpop.xlane.xlu1 %4810 }
0x24e9   :  { %v4821_v55 = vmul.f32 0.03125, %v4811_v19 }
0x24ea   :  { %v4814_v12 = vpop.xlane.xlu0 %4813 }
0x24eb   :  { %v4825_v8 = vadd.f32 1e-06, %v4821_v55  ;;  %v4822_v39 = vmul.f32 0.03125, %v4814_v12 }
0x24ec   :  { %v4817_v20 = vpop.xlane.xlu1 %4816 }
0x24ed   :  { %6260 = vrsqrt.f32 %v4825_v8  ;;  %v4826_v54 = vadd.f32 1e-06, %v4822_v39  ;;  %v4823_v48 = vmul.f32 0.03125, %v4817_v20 }
0x24ee   :  { %v4820_v33 = vpop.xlane.xlu0 %4819 }
0x24ef   :  { %6262 = vrsqrt.f32 %v4826_v54  ;;  %v4827_v30 = vadd.f32 1e-06, %v4823_v48  ;;  %v4824_v6 = vmul.f32 0.03125, %v4820_v33 }
0x24f1   :  { %6264 = vrsqrt.f32 %v4827_v30  ;;  %v4828_v42 = vadd.f32 1e-06, %v4824_v6 }
0x24f3   :  { %6266 = vrsqrt.f32 %v4828_v42 }
0x24f7   :  { %v6261_v56 = vpop.eup %6260 }
0x24f8   :  { %v4833_v14 = vmul.f32 %v6261_v56, %v4801_v0 }
0x24f9   :  { %v6263_v49 = vpop.eup %6262 }
0x24fa   :  { %v4834_v57 = vmul.f32 %v6263_v49, %v4802_v51 }
0x24fb   :  { %v6265_v37 = vpop.eup %6264 }
0x24fc   :  { %v4837_v4 = vpack.c.bf16 %v4834_v57, %v4833_v14  ;;  %v4835_v13 = vmul.f32 %v6265_v37, %v4803_v53 }
0x24fd   :  { %v6267_v10 = vpop.eup %6266 }
0x24fe   :  { %v4836_v16 = vmul.f32 %v6267_v10, %v4804_v36  ;;  %5850 = vmatprep.mubr.msk.bf16.mxu0 %vm346_vm2, %v4837_v4 }
0x2500   :  { %v4838_v5 = vpack.c.bf16 %v4836_v16, %v4835_v13 }
0x2502   :  { %5851 = vmatmul.mubr.msk.bf16.vlgmr.msra.gmra.mrb[116].mxu0 %vm346_vm2, %v4838_v5 }
0x25d5   :  { %v5852_v18 = vpop.f32.mrb[116].mxu0 }
0x25d6   :  { %v4911_v24 = vadd.f32 %v5852_v18, %v5129_v34  ;;  %v4902_v50 = vpop.f32.mrb[117].mxu0 }
0x25d7   :  { %v4903_v41 = vadd.f32 %v5129_v34, %v4902_v50  ;;  %v5853_v43 = vpop.f32.mrb[118].mxu0 }
0x25d8   :  { %4919 = vst.msk [vmem:[%s8499_s22 + $0x10] sm:$0xff] %vm130_vm1, %v4911_v24  ;;  %v4914_v11 = vadd.f32 %v5853_v43, %v5129_v34  ;;  %v4905_v22 = vpop.f32.mrb[119].mxu0 }
0x25d9   :  { %4917 = vst.msk [vmem:[%s8499_s22] sm:$0xff] %vm130_vm1, %v4903_v41  ;;  %v4906_v58 = vadd.f32 %v5129_v34, %v4905_v22 }
0x25da   :  { %4920 = vst.msk [vmem:[%s8499_s22 + $0x18] sm:$0xff] %vm130_vm1, %v4914_v11 }
0x25db   :  { %4918 = vst.msk [vmem:[%s8499_s22 + $0x8] sm:$0xff] %vm130_vm1, %v4906_v58 }

</bundles_post_ra>
